<compile_context>
chip_gen: v6e
topology: v6e:2x2x1
jax: 0.10.0
libtpu: 0.0.40
codegen_flags: <defaults>
</compile_context>

<pallas_src>
import functools
import numpy as np
import jax
import jax.numpy as jnp
from jax import lax
from jax.experimental import pallas as pl
from jax.experimental.pallas import tpu as pltpu


# ----------------------------------------------------------------------------
# Pallas kernel: all ticks, all three neuron groups and all three GRU synapse
# banks fully on-chip (state lives in VMEM scratch / the output ref).
# ----------------------------------------------------------------------------
def sfnn_kernel(lr_ref,                                     # SMEM scalar (1,1)
                inp_ref, post0_ref, hid0_ref,               # input signal / initial state
                nW_ref, nb_ref,                             # neuron Linear params (stacked in/hid/out)
                Wp_ref, Wq_ref, Whh_ref, gib_ref, bhh_ref,  # fused GRU params (gate bands on lanes)
                adj_ref,                                    # adjacency mask (N*N, 1) float {0,1}
                post_out_ref,                               # output: final post_neuron_state (N, D)
                hid_scr, ph_scr,                            # VMEM scratch: GRU hidden / placeholder (N*N, D)
                *, N, D, G, I, H, O, TICKS):
    lr = lr_ref[0, 0]

    # initialize resident state
    post_out_ref[...] = post0_ref[...]
    hid_scr[...] = hid0_ref[...]
    ph_scr[...] = jnp.zeros_like(ph_scr)

    def dot(a, b):
        return jnp.dot(a, b, preferred_element_type=jnp.float32)

    # Input-layer neurons are tick-invariant (the input signal never changes and
    # rows 0:I are written nowhere else) -> hoisted out of the tick loop.
    post_out_ref[0:I, :] = jnp.tanh(dot(inp_ref[...], nW_ref[0]) + nb_ref[0])

    groups = ((0, I), (I, H), (I + H, O))        # (start, count) for input / hidden / output

    def build_pre(start, count):
        """pre[k=i*N+j] = post[i]: per-source-row sublane broadcast, stacked."""
        rows = [jnp.broadcast_to(post_out_ref[start + ii:start + ii + 1, :], (N, D))
                for ii in range(count)]
        return rows[0] if count == 1 else jnp.concatenate(rows, axis=0)

    # Input-layer synapse bank: the `pre` stream (= hoisted input-layer post state)
    # never changes across ticks, so its gate matmul is hoisted too.
    pre0 = build_pre(0, I)
    gi_pre0 = dot(pre0, Wp_ref[0]) + gib_ref[0]

    def synapse(g, pre=None, gi_pre=None):
        """GRU synapse bank g, applied only to its contiguous source-row block
        k in [start*N, (start+count)*N); adjacency selects which pairs update."""
        start, count = groups[g]
        r0 = start * N
        r1 = r0 + count * N

        if pre is None:
            pre = build_pre(start, count)
            gi_pre = dot(pre, Wp_ref[g]) + gib_ref[g]

        post_all = post_out_ref[...]                          # (N, D)
        # pq[k=i*N+j] = post[j]: `count` stacked copies of the whole post state.
        pq = post_all if count == 1 else jnp.concatenate([post_all] * count, axis=0)

        h = hid_scr[r0:r1, :]                                 # (count*N, D)

        # fused gates: one 3-gate-wide matmul per input stream (3 matmuls/bank vs 9)
        gi = gi_pre + dot(pq, Wq_ref[g])                      # (count*N, 3G)
        gh = dot(h, Whh_ref[g]) + bhh_ref[g]                  # (count*N, 3G)

        # gate bands start at lane offsets 0, G, 2G (G = D when 3*D <= 128)
        r = jax.nn.sigmoid(gi[:, 0:D] + gh[:, 0:D])
        z = jax.nn.sigmoid(gi[:, G:G + D] + gh[:, G:G + D])
        n = jnp.tanh(gi[:, 2 * G:2 * G + D] + r * gh[:, 2 * G:2 * G + D])
        gru_out = (1.0 - z) * n + z * h
        delta = gru_out * lr                                  # updated_hidden_state - h
        upd = h + delta

        m = adj_ref[r0:r1, :]                                 # (count*N, 1) float {0,1}
        hid_scr[r0:r1, :] = h + m * delta                     # == h + m*(upd - h)
        ph = ph_scr[r0:r1, :]
        ph_scr[r0:r1, :] = ph + m * (upd * pre - ph)          # Synapse_output = upd * pre

    def neuron(g):
        """post[start:start+count] = tanh(Linear_g(sum over sources of placeholder))."""
        start, count = groups[g]
        # per-target sum over all N sources: pairwise tree add over source blocks
        parts = [ph_scr[ii * N:(ii + 1) * N, :] for ii in range(N)]
        while len(parts) > 1:
            nxt = [parts[i] + parts[i + 1] for i in range(0, len(parts) - 1, 2)]
            if len(parts) % 2:
                nxt.append(parts[-1])
            parts = nxt
        x = parts[0][start:start + count, :]
        post_out_ref[start:start + count, :] = jnp.tanh(dot(x, nW_ref[g]) + nb_ref[g])

    def tick():
        synapse(0, pre0, gi_pre0)   # input-layer synapses (pre / gate matmul hoisted)
        neuron(1)                   # hidden-layer neurons
        synapse(1)                  # hidden-layer synapses
        neuron(2)                   # output-layer neurons
        synapse(2)                  # output-layer synapses

    if TICKS <= 4:
        for _ in range(TICKS):            # small tick counts: keep unrolled
            tick()
    else:
        def body(_, carry):               # large tick counts: bound trace / live ranges
            tick()
            return carry
        lax.fori_loop(0, TICKS, body, 0)


# ----------------------------------------------------------------------------
# Wrapper: parameter packing + pallas_call
# ----------------------------------------------------------------------------
def sfnn_forward(obs, reward, lr, neuron_params, syn_params, adj, hid0, post0, I, O, ticks):
    N, D = post0.shape
    H = N - I - O
    K = N * N
    # gate stride: dense (G = D) when all three gate bands fit in one 128-lane tile,
    # otherwise 128-aligned bands (keeps lane slices aligned for large D)
    G = D if 3 * D <= 128 else ((D + 127) // 128) * 128

    # neuron Linear params: stacked W^T and biases for [input, hidden, output]
    nW = np.stack([W.T for (W, _) in neuron_params]).astype(np.float32)           # (3, D, D)
    nb = np.stack([b for (_, b) in neuron_params]).reshape(3, 1, D).astype(np.float32)

    # fused GRU params: gate q in (r, z, n) occupies lanes [q*G, q*G + D)
    Wp_f = np.zeros((3, D, 3 * G), np.float32)    # acts on pre-neuron
    Wq_f = np.zeros((3, D, 3 * G), np.float32)    # acts on post-neuron
    Whh_f = np.zeros((3, D, 3 * G), np.float32)   # acts on GRU hidden state
    wr_f = np.zeros((3, 1, 3 * G), np.float32)    # acts on the reward scalar
    bih_f = np.zeros((3, 1, 3 * G), np.float32)
    bhh_f = np.zeros((3, 1, 3 * G), np.float32)
    for g, (Wih, Whh, bih, bhh) in enumerate(syn_params):
        for q in range(3):                         # PyTorch GRUCell gate order: r, z, n
            blk = Wih[q * D:(q + 1) * D]           # (D, 2D+1), columns [pre | post | reward]
            c0 = q * G
            Wp_f[g, :, c0:c0 + D] = blk[:, :D].T
            Wq_f[g, :, c0:c0 + D] = blk[:, D:2 * D].T
            wr_f[g, 0, c0:c0 + D] = blk[:, 2 * D]
            bih_f[g, 0, c0:c0 + D] = bih[q * D:(q + 1) * D]
            Whh_f[g, :, c0:c0 + D] = Whh[q * D:(q + 1) * D].T
            bhh_f[g, 0, c0:c0 + D] = bhh[q * D:(q + 1) * D]

    # adjacency flattened as k = i*N + j; source-group selection is handled by
    # block slicing in the kernel, so only the raw adjacency mask is needed.
    adj_mask = np.asarray(adj, np.float32).reshape(K, 1)

    inp_sig = np.ascontiguousarray(
        np.broadcast_to(np.asarray(obs, np.float32).reshape(I, 1), (I, D)))
    lr_arr = np.array([[float(lr)]], np.float32)
    hid0_flat = np.asarray(hid0, np.float32).reshape(K, D)
    post0 = np.asarray(post0, np.float32)

    # reward is tick-invariant: fold reward * w_r + b_ih into one bias (host-side)
    reward_s = float(np.asarray(reward).reshape(-1)[0])
    gib = (reward_s * wr_f + bih_f).astype(np.float32)        # (3, 1, 3G)

    kernel = functools.partial(sfnn_kernel, N=N, D=D, G=G, I=I, H=H, O=O, TICKS=ticks)
    smem = pl.BlockSpec(memory_space=pltpu.MemorySpace.SMEM)
    vmem = pl.BlockSpec(memory_space=pltpu.MemorySpace.VMEM)

    post_final = pl.pallas_call(
        kernel,
        out_shape=jax.ShapeDtypeStruct((N, D), jnp.float32),
        in_specs=[smem] + [vmem] * 11,
        out_specs=vmem,
        scratch_shapes=[pltpu.VMEM((K, D), jnp.float32),    # GRU hidden-state matrix
                        pltpu.VMEM((K, D), jnp.float32)],   # placeholder matrix
    )(lr_arr, inp_sig, post0, hid0_flat, nW, nb,
      Wp_f, Wq_f, Whh_f, gib, bhh_f, adj_mask)

    action = jnp.argmax(post_final[I + H:, 0])     # glue: matches torch return value
    return action, post_final


# ----------------------------------------------------------------------------
# Pure NumPy reference mirroring the PyTorch forward pass (for verification)
# ----------------------------------------------------------------------------
def sfnn_reference(obs, reward, lr, neuron_params, syn_params, adj, hid0, post0, I, O, ticks):
    N, D = post0.shape
    H = N - I - O
    hid = np.array(hid0, np.float32, copy=True)
    post = np.array(post0, np.float32, copy=True)
    ph = np.zeros((N, N, D), np.float32)
    rew = float(np.asarray(reward).reshape(-1)[0])

    def sigmoid(x):
        return 1.0 / (1.0 + np.exp(-x))

    def neuron_fwd(x, W, b):
        return np.tanh(x @ W.T + b)

    def synapse_fwd(pre, postn, rvec, h, Wih, Whh, bih, bhh):
        x = np.concatenate([pre, postn, rvec], axis=1)
        gi = x @ Wih.T + bih
        gh = h @ Whh.T + bhh
        r = sigmoid(gi[:, :D] + gh[:, :D])
        z = sigmoid(gi[:, D:2 * D] + gh[:, D:2 * D])
        n = np.tanh(gi[:, 2 * D:] + r * gh[:, 2 * D:])
        out = (1.0 - z) * n + z * h
        upd = h + out * lr
        return upd * pre, upd

    inp_sig = np.broadcast_to(np.asarray(obs, np.float32).reshape(I, 1), (I, D))
    groups = [(0, I, 0), (I, H, 1), (I + H, O, 2)]
    for _ in range(ticks):
        post[:I] = neuron_fwd(inp_sig, *neuron_params[0])
        for start, count, g in groups:
            if g == 1:
                post[I:I + H] = neuron_fwd(ph[:, I:I + H].sum(axis=0), *neuron_params[1])
            if g == 2:
                post[I + H:] = neuron_fwd(ph[:, I + H:].sum(axis=0), *neuron_params[2])
            conn = adj[start:start + count] == 1
            for i in range(count):
                ri = start + i
                m = conn[i]
                cnt = int(m.sum())
                if cnt == 0:
                    continue
                so, uh = synapse_fwd(np.tile(post[ri], (cnt, 1)), post[m],
                                     np.full((cnt, 1), rew, np.float32),
                                     hid[ri, m], *syn_params[g])
                ph[ri, m] = so
                hid[ri, m] = uh
    action = int(np.argmax(post[I + H:, 0]))
    return action, post


# ----------------------------------------------------------------------------
if __name__ == "__main__":
    D, N, I, O = 4, 8, 3, 2          # neuron_size, total_neurons, input/output layer sizes
    H = N - I - O
    TICKS = 2
    LR = 0.05

    key = jax.random.PRNGKey(0)
    ks = jax.random.split(key, 16)

    def linear_init(k, out_f, in_f):
        bnd = 1.0 / np.sqrt(in_f)
        k1, k2 = jax.random.split(k)
        W = np.asarray(jax.random.uniform(k1, (out_f, in_f), jnp.float32, -bnd, bnd))
        b = np.asarray(jax.random.uniform(k2, (out_f,), jnp.float32, -bnd, bnd))
        return W, b

    def gru_init(k, in_f, hid):
        bnd = 1.0 / np.sqrt(hid)
        k1, k2, k3, k4 = jax.random.split(k, 4)
        Wih = np.asarray(jax.random.uniform(k1, (3 * hid, in_f), jnp.float32, -bnd, bnd))
        Whh = np.asarray(jax.random.uniform(k2, (3 * hid, hid), jnp.float32, -bnd, bnd))
        bih = np.asarray(jax.random.uniform(k3, (3 * hid,), jnp.float32, -bnd, bnd))
        bhh = np.asarray(jax.random.uniform(k4, (3 * hid,), jnp.float32, -bnd, bnd))
        return Wih, Whh, bih, bhh

    neuron_params = [linear_init(ks[0], D, D),
                     linear_init(ks[1], D, D),
                     linear_init(ks[2], D, D)]
    syn_params = [gru_init(ks[3], 2 * D + 1, D),
                  gru_init(ks[4], 2 * D + 1, D),
                  gru_init(ks[5], 2 * D + 1, D)]

    # adjacency matrix (Bernoulli(0.5)) + the same structural constraints as the module
    adj = np.asarray((jax.random.uniform(ks[6], (N, N)) < 0.5)).astype(np.float32)
    adj[:I, :I] = 0
    adj[:I, N - O:] = 0
    adj[I:I + H, :I] = 0
    adj[N - O:, :I] = 0
    adj[N - O:, N - O:] = 0
    if adj[:I].sum() == 0:
        adj[0, I] = 1

    hid0 = np.asarray(jax.random.normal(ks[7], (N, N, D)), np.float32)
    post0 = np.asarray(jax.random.normal(ks[8], (N, D)), np.float32)
    obs = np.asarray(jax.random.normal(ks[9], (I,)), np.float32)
    reward = np.asarray(jax.random.normal(ks[10], (1,)), np.float32)

    action, post_final = sfnn_forward(obs, reward, LR, neuron_params, syn_params,
                                      adj, hid0, post0, I, O, TICKS)
    post_final = jax.block_until_ready(post_final)
    action = int(jax.block_until_ready(action))

    action_ref, post_ref = sfnn_reference(obs, reward, LR, neuron_params, syn_params,
                                          adj, hid0, post0, I, O, TICKS)
    np.testing.assert_allclose(np.asarray(post_final), post_ref, rtol=2e-2, atol=2e-2)

    print("KERNEL_OK")
</pallas_src>

<mosaic_0001>
module attributes {stable_mosaic.version = 11 : i64} {
  func.func @sfnn_kernel(%arg0: memref<1x1xf32, #tpu.memory_space<smem>>, %arg1: memref<3x4xf32, #tpu.memory_space<vmem>>, %arg2: memref<8x4xf32, #tpu.memory_space<vmem>>, %arg3: memref<64x4xf32, #tpu.memory_space<vmem>>, %arg4: memref<3x4x4xf32, #tpu.memory_space<vmem>>, %arg5: memref<3x1x4xf32, #tpu.memory_space<vmem>>, %arg6: memref<3x4x12xf32, #tpu.memory_space<vmem>>, %arg7: memref<3x4x12xf32, #tpu.memory_space<vmem>>, %arg8: memref<3x4x12xf32, #tpu.memory_space<vmem>>, %arg9: memref<3x1x12xf32, #tpu.memory_space<vmem>>, %arg10: memref<3x1x12xf32, #tpu.memory_space<vmem>>, %arg11: memref<64x1xf32, #tpu.memory_space<vmem>>, %arg12: memref<8x4xf32, #tpu.memory_space<vmem>>, %arg13: memref<64x4xf32, #tpu.memory_space<vmem>>, %arg14: memref<64x4xf32, #tpu.memory_space<vmem>>) attributes {dimension_semantics = [], scalar_prefetch = 0 : i64, scratch_operands = 2 : i64, tpu.core_type = #tpu.core_type<tc>} {
    %c0 = arith.constant 0 : index
    %c0_0 = arith.constant 0 : index
    %0 = memref.load %arg0[%c0, %c0_0] : memref<1x1xf32, #tpu.memory_space<smem>>
    %c0_1 = arith.constant 0 : index
    %c0_2 = arith.constant 0 : index
    %1 = vector.load %arg2[%c0_1, %c0_2] : memref<8x4xf32, #tpu.memory_space<vmem>>, vector<8x4xf32>
    %c0_3 = arith.constant 0 : index
    %c0_4 = arith.constant 0 : index
    %2 = vector.load %arg12[%c0_3, %c0_4] : memref<8x4xf32, #tpu.memory_space<vmem>>, vector<8x4xf32>
    tpu.vector_store %arg12[%c0_3, %c0_4], %1 {strides = array<i32>} : memref<8x4xf32, #tpu.memory_space<vmem>>, vector<8x4xf32>,
    %c0_5 = arith.constant 0 : index
    %c0_6 = arith.constant 0 : index
    %3 = vector.load %arg3[%c0_5, %c0_6] : memref<64x4xf32, #tpu.memory_space<vmem>>, vector<64x4xf32>
    %c0_7 = arith.constant 0 : index
    %c0_8 = arith.constant 0 : index
    %4 = vector.load %arg13[%c0_7, %c0_8] : memref<64x4xf32, #tpu.memory_space<vmem>>, vector<64x4xf32>
    tpu.vector_store %arg13[%c0_7, %c0_8], %3 {strides = array<i32>} : memref<64x4xf32, #tpu.memory_space<vmem>>, vector<64x4xf32>,
    %cst = arith.constant 0.000000e+00 : f32
    %5 = vector.broadcast %cst : f32 to vector<64x4xf32>
    %c0_9 = arith.constant 0 : index
    %c0_10 = arith.constant 0 : index
    %6 = vector.load %arg14[%c0_9, %c0_10] : memref<64x4xf32, #tpu.memory_space<vmem>>, vector<64x4xf32>
    tpu.vector_store %arg14[%c0_9, %c0_10], %5 {strides = array<i32>} : memref<64x4xf32, #tpu.memory_space<vmem>>, vector<64x4xf32>,
    %c0_11 = arith.constant 0 : index
    %c0_12 = arith.constant 0 : index
    %7 = vector.load %arg1[%c0_11, %c0_12] : memref<3x4xf32, #tpu.memory_space<vmem>>, vector<3x4xf32>
    %c0_13 = arith.constant 0 : index
    %c0_14 = arith.constant 0 : index
    %c0_15 = arith.constant 0 : index
    %8 = vector.load %arg4[%c0_13, %c0_14, %c0_15] : memref<3x4x4xf32, #tpu.memory_space<vmem>>, vector<1x4x4xf32>
    %9 = vector.shape_cast %8 : vector<1x4x4xf32> to vector<4x4xf32>
    %cst_16 = arith.constant dense<0.000000e+00> : vector<3x4xf32>
    %10 = tpu.matmul %7, %9, %cst_16 {dimension_numbers = #tpu.dot_dimension_numbers<[1], [0], [0], [1], [0, 0, 1, 1], [], []>} : vector<3x4xf32>, vector<4x4xf32>, vector<3x4xf32> -> vector<3x4xf32>
    %c0_17 = arith.constant 0 : index
    %c0_18 = arith.constant 0 : index
    %c0_19 = arith.constant 0 : index
    %11 = vector.load %arg5[%c0_17, %c0_18, %c0_19] : memref<3x1x4xf32, #tpu.memory_space<vmem>>, vector<1x1x4xf32>
    %12 = vector.shape_cast %11 : vector<1x1x4xf32> to vector<1x4xf32>
    %13 = vector.broadcast %12 : vector<1x4xf32> to vector<3x4xf32>
    %14 = arith.addf %10, %13 : vector<3x4xf32>
    %15 = math.tanh %14 : vector<3x4xf32>
    %c0_20 = arith.constant 0 : index
    %c0_21 = arith.constant 0 : index
    %16 = vector.load %arg12[%c0_20, %c0_21] : memref<8x4xf32, #tpu.memory_space<vmem>>, vector<3x4xf32>
    tpu.vector_store %arg12[%c0_20, %c0_21], %15 {strides = array<i32>} : memref<8x4xf32, #tpu.memory_space<vmem>>, vector<3x4xf32>,
    %c0_22 = arith.constant 0 : index
    %c0_23 = arith.constant 0 : index
    %17 = vector.load %arg12[%c0_22, %c0_23] : memref<8x4xf32, #tpu.memory_space<vmem>>, vector<1x4xf32>
    %18 = vector.shape_cast %17 : vector<1x4xf32> to vector<1x4xf32>
    %19 = vector.broadcast %18 : vector<1x4xf32> to vector<8x4xf32>
    %c1 = arith.constant 1 : index
    %c0_24 = arith.constant 0 : index
    %20 = vector.load %arg12[%c1, %c0_24] : memref<8x4xf32, #tpu.memory_space<vmem>>, vector<1x4xf32>
    %21 = vector.shape_cast %20 : vector<1x4xf32> to vector<1x4xf32>
    %22 = vector.broadcast %21 : vector<1x4xf32> to vector<8x4xf32>
    %c2 = arith.constant 2 : index
    %c0_25 = arith.constant 0 : index
    %23 = vector.load %arg12[%c2, %c0_25] : memref<8x4xf32, #tpu.memory_space<vmem>>, vector<1x4xf32>
    %24 = vector.shape_cast %23 : vector<1x4xf32> to vector<1x4xf32>
    %25 = vector.broadcast %24 : vector<1x4xf32> to vector<8x4xf32>
    %26 = tpu.concatenate %19, %22, %25 in 0 : vector<8x4xf32>, vector<8x4xf32>, vector<8x4xf32> -> vector<24x4xf32>
    %c0_26 = arith.constant 0 : index
    %c0_27 = arith.constant 0 : index
    %c0_28 = arith.constant 0 : index
    %27 = vector.load %arg6[%c0_26, %c0_27, %c0_28] : memref<3x4x12xf32, #tpu.memory_space<vmem>>, vector<1x4x12xf32>
    %28 = vector.shape_cast %27 : vector<1x4x12xf32> to vector<4x12xf32>
    %cst_29 = arith.constant dense<0.000000e+00> : vector<24x12xf32>
    %29 = tpu.matmul %26, %28, %cst_29 {dimension_numbers = #tpu.dot_dimension_numbers<[1], [0], [0], [1], [0, 0, 1, 1], [], []>} : vector<24x4xf32>, vector<4x12xf32>, vector<24x12xf32> -> vector<24x12xf32>
    %c0_30 = arith.constant 0 : index
    %c0_31 = arith.constant 0 : index
    %c0_32 = arith.constant 0 : index
    %30 = vector.load %arg9[%c0_30, %c0_31, %c0_32] : memref<3x1x12xf32, #tpu.memory_space<vmem>>, vector<1x1x12xf32>
    %31 = vector.shape_cast %30 : vector<1x1x12xf32> to vector<1x12xf32>
    %32 = vector.broadcast %31 : vector<1x12xf32> to vector<24x12xf32>
    %33 = arith.addf %29, %32 : vector<24x12xf32>
    %c0_33 = arith.constant 0 : index
    %c0_34 = arith.constant 0 : index
    %34 = vector.load %arg12[%c0_33, %c0_34] : memref<8x4xf32, #tpu.memory_space<vmem>>, vector<8x4xf32>
    %35 = tpu.concatenate %34, %34, %34 in 0 : vector<8x4xf32>, vector<8x4xf32>, vector<8x4xf32> -> vector<24x4xf32>
    %c0_35 = arith.constant 0 : index
    %c0_36 = arith.constant 0 : index
    %36 = vector.load %arg13[%c0_35, %c0_36] : memref<64x4xf32, #tpu.memory_space<vmem>>, vector<24x4xf32>
    %c0_37 = arith.constant 0 : index
    %c0_38 = arith.constant 0 : index
    %c0_39 = arith.constant 0 : index
    %37 = vector.load %arg7[%c0_37, %c0_38, %c0_39] : memref<3x4x12xf32, #tpu.memory_space<vmem>>, vector<1x4x12xf32>
    %38 = vector.shape_cast %37 : vector<1x4x12xf32> to vector<4x12xf32>
    %cst_40 = arith.constant dense<0.000000e+00> : vector<24x12xf32>
    %39 = tpu.matmul %35, %38, %cst_40 {dimension_numbers = #tpu.dot_dimension_numbers<[1], [0], [0], [1], [0, 0, 1, 1], [], []>} : vector<24x4xf32>, vector<4x12xf32>, vector<24x12xf32> -> vector<24x12xf32>
    %40 = arith.addf %33, %39 : vector<24x12xf32>
    %c0_41 = arith.constant 0 : index
    %c0_42 = arith.constant 0 : index
    %c0_43 = arith.constant 0 : index
    %41 = vector.load %arg8[%c0_41, %c0_42, %c0_43] : memref<3x4x12xf32, #tpu.memory_space<vmem>>, vector<1x4x12xf32>
    %42 = vector.shape_cast %41 : vector<1x4x12xf32> to vector<4x12xf32>
    %cst_44 = arith.constant dense<0.000000e+00> : vector<24x12xf32>
    %43 = tpu.matmul %36, %42, %cst_44 {dimension_numbers = #tpu.dot_dimension_numbers<[1], [0], [0], [1], [0, 0, 1, 1], [], []>} : vector<24x4xf32>, vector<4x12xf32>, vector<24x12xf32> -> vector<24x12xf32>
    %c0_45 = arith.constant 0 : index
    %c0_46 = arith.constant 0 : index
    %c0_47 = arith.constant 0 : index
    %44 = vector.load %arg10[%c0_45, %c0_46, %c0_47] : memref<3x1x12xf32, #tpu.memory_space<vmem>>, vector<1x1x12xf32>
    %45 = vector.shape_cast %44 : vector<1x1x12xf32> to vector<1x12xf32>
    %46 = vector.broadcast %45 : vector<1x12xf32> to vector<24x12xf32>
    %47 = arith.addf %43, %46 : vector<24x12xf32>
    %48 = vector.extract_strided_slice %40 {offsets = [0, 0], sizes = [24, 4], strides = [1, 1]} : vector<24x12xf32> to vector<24x4xf32>
    %49 = vector.extract_strided_slice %47 {offsets = [0, 0], sizes = [24, 4], strides = [1, 1]} : vector<24x12xf32> to vector<24x4xf32>
    %50 = arith.addf %48, %49 : vector<24x4xf32>
    %51 = arith.negf %50 : vector<24x4xf32>
    %52 = math.exp %51 : vector<24x4xf32>
    %cst_48 = arith.constant 1.000000e+00 : f32
    %53 = vector.broadcast %cst_48 : f32 to vector<24x4xf32>
    %54 = arith.addf %53, %52 : vector<24x4xf32>
    %55 = arith.divf %53, %54 : vector<24x4xf32>
    %56 = vector.extract_strided_slice %40 {offsets = [0, 4], sizes = [24, 4], strides = [1, 1]} : vector<24x12xf32> to vector<24x4xf32>
    %57 = vector.extract_strided_slice %47 {offsets = [0, 4], sizes = [24, 4], strides = [1, 1]} : vector<24x12xf32> to vector<24x4xf32>
    %58 = arith.addf %56, %57 : vector<24x4xf32>
    %59 = arith.negf %58 : vector<24x4xf32>
    %60 = math.exp %59 : vector<24x4xf32>
    %cst_49 = arith.constant 1.000000e+00 : f32
    %61 = vector.broadcast %cst_49 : f32 to vector<24x4xf32>
    %62 = arith.addf %61, %60 : vector<24x4xf32>
    %63 = arith.divf %61, %62 : vector<24x4xf32>
    %64 = vector.extract_strided_slice %40 {offsets = [0, 8], sizes = [24, 4], strides = [1, 1]} : vector<24x12xf32> to vector<24x4xf32>
    %65 = vector.extract_strided_slice %47 {offsets = [0, 8], sizes = [24, 4], strides = [1, 1]} : vector<24x12xf32> to vector<24x4xf32>
    %66 = arith.mulf %55, %65 : vector<24x4xf32>
    %67 = arith.addf %64, %66 : vector<24x4xf32>
    %68 = math.tanh %67 : vector<24x4xf32>
    %cst_50 = arith.constant 1.000000e+00 : f32
    %69 = vector.broadcast %cst_50 : f32 to vector<24x4xf32>
    %70 = arith.subf %69, %63 : vector<24x4xf32>
    %71 = arith.mulf %70, %68 : vector<24x4xf32>
    %72 = arith.mulf %63, %36 : vector<24x4xf32>
    %73 = arith.addf %71, %72 : vector<24x4xf32>
    %74 = vector.broadcast %0 : f32 to vector<24x4xf32>
    %75 = arith.mulf %73, %74 : vector<24x4xf32>
    %76 = arith.addf %36, %75 : vector<24x4xf32>
    %c0_51 = arith.constant 0 : index
    %c0_52 = arith.constant 0 : index
    %77 = vector.load %arg11[%c0_51, %c0_52] : memref<64x1xf32, #tpu.memory_space<vmem>>, vector<24x1xf32>
    %78 = vector.broadcast %77 : vector<24x1xf32> to vector<24x4xf32>
    %79 = arith.mulf %78, %75 : vector<24x4xf32>
    %80 = arith.addf %36, %79 : vector<24x4xf32>
    %c0_53 = arith.constant 0 : index
    %c0_54 = arith.constant 0 : index
    %81 = vector.load %arg13[%c0_53, %c0_54] : memref<64x4xf32, #tpu.memory_space<vmem>>, vector<24x4xf32>
    tpu.vector_store %arg13[%c0_53, %c0_54], %80 {strides = array<i32>} : memref<64x4xf32, #tpu.memory_space<vmem>>, vector<24x4xf32>,
    %c0_55 = arith.constant 0 : index
    %c0_56 = arith.constant 0 : index
    %82 = vector.load %arg14[%c0_55, %c0_56] : memref<64x4xf32, #tpu.memory_space<vmem>>, vector<24x4xf32>
    %83 = arith.mulf %76, %26 : vector<24x4xf32>
    %84 = arith.subf %83, %82 : vector<24x4xf32>
    %85 = vector.broadcast %77 : vector<24x1xf32> to vector<24x4xf32>
    %86 = arith.mulf %85, %84 : vector<24x4xf32>
    %87 = arith.addf %82, %86 : vector<24x4xf32>
    %c0_57 = arith.constant 0 : index
    %c0_58 = arith.constant 0 : index
    %88 = vector.load %arg14[%c0_57, %c0_58] : memref<64x4xf32, #tpu.memory_space<vmem>>, vector<24x4xf32>
    tpu.vector_store %arg14[%c0_57, %c0_58], %87 {strides = array<i32>} : memref<64x4xf32, #tpu.memory_space<vmem>>, vector<24x4xf32>,
    %c0_59 = arith.constant 0 : index
    %c0_60 = arith.constant 0 : index
    %89 = vector.load %arg14[%c0_59, %c0_60] : memref<64x4xf32, #tpu.memory_space<vmem>>, vector<8x4xf32>
    %c8 = arith.constant 8 : index
    %c0_61 = arith.constant 0 : index
    %90 = vector.load %arg14[%c8, %c0_61] : memref<64x4xf32, #tpu.memory_space<vmem>>, vector<8x4xf32>
    %c16 = arith.constant 16 : index
    %c0_62 = arith.constant 0 : index
    %91 = vector.load %arg14[%c16, %c0_62] : memref<64x4xf32, #tpu.memory_space<vmem>>, vector<8x4xf32>
    %c24 = arith.constant 24 : index
    %c0_63 = arith.constant 0 : index
    %92 = vector.load %arg14[%c24, %c0_63] : memref<64x4xf32, #tpu.memory_space<vmem>>, vector<8x4xf32>
    %c32 = arith.constant 32 : index
    %c0_64 = arith.constant 0 : index
    %93 = vector.load %arg14[%c32, %c0_64] : memref<64x4xf32, #tpu.memory_space<vmem>>, vector<8x4xf32>
    %c40 = arith.constant 40 : index
    %c0_65 = arith.constant 0 : index
    %94 = vector.load %arg14[%c40, %c0_65] : memref<64x4xf32, #tpu.memory_space<vmem>>, vector<8x4xf32>
    %c48 = arith.constant 48 : index
    %c0_66 = arith.constant 0 : index
    %95 = vector.load %arg14[%c48, %c0_66] : memref<64x4xf32, #tpu.memory_space<vmem>>, vector<8x4xf32>
    %c56 = arith.constant 56 : index
    %c0_67 = arith.constant 0 : index
    %96 = vector.load %arg14[%c56, %c0_67] : memref<64x4xf32, #tpu.memory_space<vmem>>, vector<8x4xf32>
    %97 = arith.addf %89, %90 : vector<8x4xf32>
    %98 = arith.addf %91, %92 : vector<8x4xf32>
    %99 = arith.addf %93, %94 : vector<8x4xf32>
    %100 = arith.addf %95, %96 : vector<8x4xf32>
    %101 = arith.addf %97, %98 : vector<8x4xf32>
    %102 = arith.addf %99, %100 : vector<8x4xf32>
    %103 = arith.addf %101, %102 : vector<8x4xf32>
    %104 = vector.extract_strided_slice %103 {offsets = [3, 0], sizes = [3, 4], strides = [1, 1]} : vector<8x4xf32> to vector<3x4xf32>
    %c1_68 = arith.constant 1 : index
    %c0_69 = arith.constant 0 : index
    %c0_70 = arith.constant 0 : index
    %105 = vector.load %arg4[%c1_68, %c0_69, %c0_70] : memref<3x4x4xf32, #tpu.memory_space<vmem>>, vector<1x4x4xf32>
    %106 = vector.shape_cast %105 : vector<1x4x4xf32> to vector<4x4xf32>
    %cst_71 = arith.constant dense<0.000000e+00> : vector<3x4xf32>
    %107 = tpu.matmul %104, %106, %cst_71 {dimension_numbers = #tpu.dot_dimension_numbers<[1], [0], [0], [1], [0, 0, 1, 1], [], []>} : vector<3x4xf32>, vector<4x4xf32>, vector<3x4xf32> -> vector<3x4xf32>
    %c1_72 = arith.constant 1 : index
    %c0_73 = arith.constant 0 : index
    %c0_74 = arith.constant 0 : index
    %108 = vector.load %arg5[%c1_72, %c0_73, %c0_74] : memref<3x1x4xf32, #tpu.memory_space<vmem>>, vector<1x1x4xf32>
    %109 = vector.shape_cast %108 : vector<1x1x4xf32> to vector<1x4xf32>
    %110 = vector.broadcast %109 : vector<1x4xf32> to vector<3x4xf32>
    %111 = arith.addf %107, %110 : vector<3x4xf32>
    %112 = math.tanh %111 : vector<3x4xf32>
    %c3 = arith.constant 3 : index
    %c0_75 = arith.constant 0 : index
    %113 = vector.load %arg12[%c3, %c0_75] : memref<8x4xf32, #tpu.memory_space<vmem>>, vector<3x4xf32>
    tpu.vector_store %arg12[%c3, %c0_75], %112 {strides = array<i32>} : memref<8x4xf32, #tpu.memory_space<vmem>>, vector<3x4xf32>,
    %c3_76 = arith.constant 3 : index
    %c0_77 = arith.constant 0 : index
    %114 = vector.load %arg12[%c3_76, %c0_77] : memref<8x4xf32, #tpu.memory_space<vmem>>, vector<1x4xf32>
    %115 = vector.shape_cast %114 : vector<1x4xf32> to vector<1x4xf32>
    %116 = vector.broadcast %115 : vector<1x4xf32> to vector<8x4xf32>
    %c4 = arith.constant 4 : index
    %c0_78 = arith.constant 0 : index
    %117 = vector.load %arg12[%c4, %c0_78] : memref<8x4xf32, #tpu.memory_space<vmem>>, vector<1x4xf32>
    %118 = vector.shape_cast %117 : vector<1x4xf32> to vector<1x4xf32>
    %119 = vector.broadcast %118 : vector<1x4xf32> to vector<8x4xf32>
    %c5 = arith.constant 5 : index
    %c0_79 = arith.constant 0 : index
    %120 = vector.load %arg12[%c5, %c0_79] : memref<8x4xf32, #tpu.memory_space<vmem>>, vector<1x4xf32>
    %121 = vector.shape_cast %120 : vector<1x4xf32> to vector<1x4xf32>
    %122 = vector.broadcast %121 : vector<1x4xf32> to vector<8x4xf32>
    %123 = tpu.concatenate %116, %119, %122 in 0 : vector<8x4xf32>, vector<8x4xf32>, vector<8x4xf32> -> vector<24x4xf32>
    %c1_80 = arith.constant 1 : index
    %c0_81 = arith.constant 0 : index
    %c0_82 = arith.constant 0 : index
    %124 = vector.load %arg6[%c1_80, %c0_81, %c0_82] : memref<3x4x12xf32, #tpu.memory_space<vmem>>, vector<1x4x12xf32>
    %125 = vector.shape_cast %124 : vector<1x4x12xf32> to vector<4x12xf32>
    %cst_83 = arith.constant dense<0.000000e+00> : vector<24x12xf32>
    %126 = tpu.matmul %123, %125, %cst_83 {dimension_numbers = #tpu.dot_dimension_numbers<[1], [0], [0], [1], [0, 0, 1, 1], [], []>} : vector<24x4xf32>, vector<4x12xf32>, vector<24x12xf32> -> vector<24x12xf32>
    %c1_84 = arith.constant 1 : index
    %c0_85 = arith.constant 0 : index
    %c0_86 = arith.constant 0 : index
    %127 = vector.load %arg9[%c1_84, %c0_85, %c0_86] : memref<3x1x12xf32, #tpu.memory_space<vmem>>, vector<1x1x12xf32>
    %128 = vector.shape_cast %127 : vector<1x1x12xf32> to vector<1x12xf32>
    %129 = vector.broadcast %128 : vector<1x12xf32> to vector<24x12xf32>
    %130 = arith.addf %126, %129 : vector<24x12xf32>
    %c0_87 = arith.constant 0 : index
    %c0_88 = arith.constant 0 : index
    %131 = vector.load %arg12[%c0_87, %c0_88] : memref<8x4xf32, #tpu.memory_space<vmem>>, vector<8x4xf32>
    %132 = tpu.concatenate %131, %131, %131 in 0 : vector<8x4xf32>, vector<8x4xf32>, vector<8x4xf32> -> vector<24x4xf32>
    %c24_89 = arith.constant 24 : index
    %c0_90 = arith.constant 0 : index
    %133 = vector.load %arg13[%c24_89, %c0_90] : memref<64x4xf32, #tpu.memory_space<vmem>>, vector<24x4xf32>
    %c1_91 = arith.constant 1 : index
    %c0_92 = arith.constant 0 : index
    %c0_93 = arith.constant 0 : index
    %134 = vector.load %arg7[%c1_91, %c0_92, %c0_93] : memref<3x4x12xf32, #tpu.memory_space<vmem>>, vector<1x4x12xf32>
    %135 = vector.shape_cast %134 : vector<1x4x12xf32> to vector<4x12xf32>
    %cst_94 = arith.constant dense<0.000000e+00> : vector<24x12xf32>
    %136 = tpu.matmul %132, %135, %cst_94 {dimension_numbers = #tpu.dot_dimension_numbers<[1], [0], [0], [1], [0, 0, 1, 1], [], []>} : vector<24x4xf32>, vector<4x12xf32>, vector<24x12xf32> -> vector<24x12xf32>
    %137 = arith.addf %130, %136 : vector<24x12xf32>
    %c1_95 = arith.constant 1 : index
    %c0_96 = arith.constant 0 : index
    %c0_97 = arith.constant 0 : index
    %138 = vector.load %arg8[%c1_95, %c0_96, %c0_97] : memref<3x4x12xf32, #tpu.memory_space<vmem>>, vector<1x4x12xf32>
    %139 = vector.shape_cast %138 : vector<1x4x12xf32> to vector<4x12xf32>
    %cst_98 = arith.constant dense<0.000000e+00> : vector<24x12xf32>
    %140 = tpu.matmul %133, %139, %cst_98 {dimension_numbers = #tpu.dot_dimension_numbers<[1], [0], [0], [1], [0, 0, 1, 1], [], []>} : vector<24x4xf32>, vector<4x12xf32>, vector<24x12xf32> -> vector<24x12xf32>
    %c1_99 = arith.constant 1 : index
    %c0_100 = arith.constant 0 : index
    %c0_101 = arith.constant 0 : index
    %141 = vector.load %arg10[%c1_99, %c0_100, %c0_101] : memref<3x1x12xf32, #tpu.memory_space<vmem>>, vector<1x1x12xf32>
    %142 = vector.shape_cast %141 : vector<1x1x12xf32> to vector<1x12xf32>
    %143 = vector.broadcast %142 : vector<1x12xf32> to vector<24x12xf32>
    %144 = arith.addf %140, %143 : vector<24x12xf32>
    %145 = vector.extract_strided_slice %137 {offsets = [0, 0], sizes = [24, 4], strides = [1, 1]} : vector<24x12xf32> to vector<24x4xf32>
    %146 = vector.extract_strided_slice %144 {offsets = [0, 0], sizes = [24, 4], strides = [1, 1]} : vector<24x12xf32> to vector<24x4xf32>
    %147 = arith.addf %145, %146 : vector<24x4xf32>
    %148 = arith.negf %147 : vector<24x4xf32>
    %149 = math.exp %148 : vector<24x4xf32>
    %cst_102 = arith.constant 1.000000e+00 : f32
    %150 = vector.broadcast %cst_102 : f32 to vector<24x4xf32>
    %151 = arith.addf %150, %149 : vector<24x4xf32>
    %152 = arith.divf %150, %151 : vector<24x4xf32>
    %153 = vector.extract_strided_slice %137 {offsets = [0, 4], sizes = [24, 4], strides = [1, 1]} : vector<24x12xf32> to vector<24x4xf32>
    %154 = vector.extract_strided_slice %144 {offsets = [0, 4], sizes = [24, 4], strides = [1, 1]} : vector<24x12xf32> to vector<24x4xf32>
    %155 = arith.addf %153, %154 : vector<24x4xf32>
    %156 = arith.negf %155 : vector<24x4xf32>
    %157 = math.exp %156 : vector<24x4xf32>
    %cst_103 = arith.constant 1.000000e+00 : f32
    %158 = vector.broadcast %cst_103 : f32 to vector<24x4xf32>
    %159 = arith.addf %158, %157 : vector<24x4xf32>
    %160 = arith.divf %158, %159 : vector<24x4xf32>
    %161 = vector.extract_strided_slice %137 {offsets = [0, 8], sizes = [24, 4], strides = [1, 1]} : vector<24x12xf32> to vector<24x4xf32>
    %162 = vector.extract_strided_slice %144 {offsets = [0, 8], sizes = [24, 4], strides = [1, 1]} : vector<24x12xf32> to vector<24x4xf32>
    %163 = arith.mulf %152, %162 : vector<24x4xf32>
    %164 = arith.addf %161, %163 : vector<24x4xf32>
    %165 = math.tanh %164 : vector<24x4xf32>
    %cst_104 = arith.constant 1.000000e+00 : f32
    %166 = vector.broadcast %cst_104 : f32 to vector<24x4xf32>
    %167 = arith.subf %166, %160 : vector<24x4xf32>
    %168 = arith.mulf %167, %165 : vector<24x4xf32>
    %169 = arith.mulf %160, %133 : vector<24x4xf32>
    %170 = arith.addf %168, %169 : vector<24x4xf32>
    %171 = vector.broadcast %0 : f32 to vector<24x4xf32>
    %172 = arith.mulf %170, %171 : vector<24x4xf32>
    %173 = arith.addf %133, %172 : vector<24x4xf32>
    %c24_105 = arith.constant 24 : index
    %c0_106 = arith.constant 0 : index
    %174 = vector.load %arg11[%c24_105, %c0_106] : memref<64x1xf32, #tpu.memory_space<vmem>>, vector<24x1xf32>
    %175 = vector.broadcast %174 : vector<24x1xf32> to vector<24x4xf32>
    %176 = arith.mulf %175, %172 : vector<24x4xf32>
    %177 = arith.addf %133, %176 : vector<24x4xf32>
    %c24_107 = arith.constant 24 : index
    %c0_108 = arith.constant 0 : index
    %178 = vector.load %arg13[%c24_107, %c0_108] : memref<64x4xf32, #tpu.memory_space<vmem>>, vector<24x4xf32>
    tpu.vector_store %arg13[%c24_107, %c0_108], %177 {strides = array<i32>} : memref<64x4xf32, #tpu.memory_space<vmem>>, vector<24x4xf32>,
    %c24_109 = arith.constant 24 : index
    %c0_110 = arith.constant 0 : index
    %179 = vector.load %arg14[%c24_109, %c0_110] : memref<64x4xf32, #tpu.memory_space<vmem>>, vector<24x4xf32>
    %180 = arith.mulf %173, %123 : vector<24x4xf32>
    %181 = arith.subf %180, %179 : vector<24x4xf32>
    %182 = vector.broadcast %174 : vector<24x1xf32> to vector<24x4xf32>
    %183 = arith.mulf %182, %181 : vector<24x4xf32>
    %184 = arith.addf %179, %183 : vector<24x4xf32>
    %c24_111 = arith.constant 24 : index
    %c0_112 = arith.constant 0 : index
    %185 = vector.load %arg14[%c24_111, %c0_112] : memref<64x4xf32, #tpu.memory_space<vmem>>, vector<24x4xf32>
    tpu.vector_store %arg14[%c24_111, %c0_112], %184 {strides = array<i32>} : memref<64x4xf32, #tpu.memory_space<vmem>>, vector<24x4xf32>,
    %c0_113 = arith.constant 0 : index
    %c0_114 = arith.constant 0 : index
    %186 = vector.load %arg14[%c0_113, %c0_114] : memref<64x4xf32, #tpu.memory_space<vmem>>, vector<8x4xf32>
    %c8_115 = arith.constant 8 : index
    %c0_116 = arith.constant 0 : index
    %187 = vector.load %arg14[%c8_115, %c0_116] : memref<64x4xf32, #tpu.memory_space<vmem>>, vector<8x4xf32>
    %c16_117 = arith.constant 16 : index
    %c0_118 = arith.constant 0 : index
    %188 = vector.load %arg14[%c16_117, %c0_118] : memref<64x4xf32, #tpu.memory_space<vmem>>, vector<8x4xf32>
    %c24_119 = arith.constant 24 : index
    %c0_120 = arith.constant 0 : index
    %189 = vector.load %arg14[%c24_119, %c0_120] : memref<64x4xf32, #tpu.memory_space<vmem>>, vector<8x4xf32>
    %c32_121 = arith.constant 32 : index
    %c0_122 = arith.constant 0 : index
    %190 = vector.load %arg14[%c32_121, %c0_122] : memref<64x4xf32, #tpu.memory_space<vmem>>, vector<8x4xf32>
    %c40_123 = arith.constant 40 : index
    %c0_124 = arith.constant 0 : index
    %191 = vector.load %arg14[%c40_123, %c0_124] : memref<64x4xf32, #tpu.memory_space<vmem>>, vector<8x4xf32>
    %c48_125 = arith.constant 48 : index
    %c0_126 = arith.constant 0 : index
    %192 = vector.load %arg14[%c48_125, %c0_126] : memref<64x4xf32, #tpu.memory_space<vmem>>, vector<8x4xf32>
    %c56_127 = arith.constant 56 : index
    %c0_128 = arith.constant 0 : index
    %193 = vector.load %arg14[%c56_127, %c0_128] : memref<64x4xf32, #tpu.memory_space<vmem>>, vector<8x4xf32>
    %194 = arith.addf %186, %187 : vector<8x4xf32>
    %195 = arith.addf %188, %189 : vector<8x4xf32>
    %196 = arith.addf %190, %191 : vector<8x4xf32>
    %197 = arith.addf %192, %193 : vector<8x4xf32>
    %198 = arith.addf %194, %195 : vector<8x4xf32>
    %199 = arith.addf %196, %197 : vector<8x4xf32>
    %200 = arith.addf %198, %199 : vector<8x4xf32>
    %201 = vector.extract_strided_slice %200 {offsets = [6, 0], sizes = [2, 4], strides = [1, 1]} : vector<8x4xf32> to vector<2x4xf32>
    %c2_129 = arith.constant 2 : index
    %c0_130 = arith.constant 0 : index
    %c0_131 = arith.constant 0 : index
    %202 = vector.load %arg4[%c2_129, %c0_130, %c0_131] : memref<3x4x4xf32, #tpu.memory_space<vmem>>, vector<1x4x4xf32>
    %203 = vector.shape_cast %202 : vector<1x4x4xf32> to vector<4x4xf32>
    %cst_132 = arith.constant dense<0.000000e+00> : vector<2x4xf32>
    %204 = tpu.matmul %201, %203, %cst_132 {dimension_numbers = #tpu.dot_dimension_numbers<[1], [0], [0], [1], [0, 0, 1, 1], [], []>} : vector<2x4xf32>, vector<4x4xf32>, vector<2x4xf32> -> vector<2x4xf32>
    %c2_133 = arith.constant 2 : index
    %c0_134 = arith.constant 0 : index
    %c0_135 = arith.constant 0 : index
    %205 = vector.load %arg5[%c2_133, %c0_134, %c0_135] : memref<3x1x4xf32, #tpu.memory_space<vmem>>, vector<1x1x4xf32>
    %206 = vector.shape_cast %205 : vector<1x1x4xf32> to vector<1x4xf32>
    %207 = vector.broadcast %206 : vector<1x4xf32> to vector<2x4xf32>
    %208 = arith.addf %204, %207 : vector<2x4xf32>
    %209 = math.tanh %208 : vector<2x4xf32>
    %c6 = arith.constant 6 : index
    %c0_136 = arith.constant 0 : index
    %210 = vector.load %arg12[%c6, %c0_136] : memref<8x4xf32, #tpu.memory_space<vmem>>, vector<2x4xf32>
    tpu.vector_store %arg12[%c6, %c0_136], %209 {strides = array<i32>} : memref<8x4xf32, #tpu.memory_space<vmem>>, vector<2x4xf32>,
    %c6_137 = arith.constant 6 : index
    %c0_138 = arith.constant 0 : index
    %211 = vector.load %arg12[%c6_137, %c0_138] : memref<8x4xf32, #tpu.memory_space<vmem>>, vector<1x4xf32>
    %212 = vector.shape_cast %211 : vector<1x4xf32> to vector<1x4xf32>
    %213 = vector.broadcast %212 : vector<1x4xf32> to vector<8x4xf32>
    %c7 = arith.constant 7 : index
    %c0_139 = arith.constant 0 : index
    %214 = vector.load %arg12[%c7, %c0_139] : memref<8x4xf32, #tpu.memory_space<vmem>>, vector<1x4xf32>
    %215 = vector.shape_cast %214 : vector<1x4xf32> to vector<1x4xf32>
    %216 = vector.broadcast %215 : vector<1x4xf32> to vector<8x4xf32>
    %217 = tpu.concatenate %213, %216 in 0 : vector<8x4xf32>, vector<8x4xf32> -> vector<16x4xf32>
    %c2_140 = arith.constant 2 : index
    %c0_141 = arith.constant 0 : index
    %c0_142 = arith.constant 0 : index
    %218 = vector.load %arg6[%c2_140, %c0_141, %c0_142] : memref<3x4x12xf32, #tpu.memory_space<vmem>>, vector<1x4x12xf32>
    %219 = vector.shape_cast %218 : vector<1x4x12xf32> to vector<4x12xf32>
    %cst_143 = arith.constant dense<0.000000e+00> : vector<16x12xf32>
    %220 = tpu.matmul %217, %219, %cst_143 {dimension_numbers = #tpu.dot_dimension_numbers<[1], [0], [0], [1], [0, 0, 1, 1], [], []>} : vector<16x4xf32>, vector<4x12xf32>, vector<16x12xf32> -> vector<16x12xf32>
    %c2_144 = arith.constant 2 : index
    %c0_145 = arith.constant 0 : index
    %c0_146 = arith.constant 0 : index
    %221 = vector.load %arg9[%c2_144, %c0_145, %c0_146] : memref<3x1x12xf32, #tpu.memory_space<vmem>>, vector<1x1x12xf32>
    %222 = vector.shape_cast %221 : vector<1x1x12xf32> to vector<1x12xf32>
    %223 = vector.broadcast %222 : vector<1x12xf32> to vector<16x12xf32>
    %224 = arith.addf %220, %223 : vector<16x12xf32>
    %c0_147 = arith.constant 0 : index
    %c0_148 = arith.constant 0 : index
    %225 = vector.load %arg12[%c0_147, %c0_148] : memref<8x4xf32, #tpu.memory_space<vmem>>, vector<8x4xf32>
    %226 = tpu.concatenate %225, %225 in 0 : vector<8x4xf32>, vector<8x4xf32> -> vector<16x4xf32>
    %c48_149 = arith.constant 48 : index
    %c0_150 = arith.constant 0 : index
    %227 = vector.load %arg13[%c48_149, %c0_150] : memref<64x4xf32, #tpu.memory_space<vmem>>, vector<16x4xf32>
    %c2_151 = arith.constant 2 : index
    %c0_152 = arith.constant 0 : index
    %c0_153 = arith.constant 0 : index
    %228 = vector.load %arg7[%c2_151, %c0_152, %c0_153] : memref<3x4x12xf32, #tpu.memory_space<vmem>>, vector<1x4x12xf32>
    %229 = vector.shape_cast %228 : vector<1x4x12xf32> to vector<4x12xf32>
    %cst_154 = arith.constant dense<0.000000e+00> : vector<16x12xf32>
    %230 = tpu.matmul %226, %229, %cst_154 {dimension_numbers = #tpu.dot_dimension_numbers<[1], [0], [0], [1], [0, 0, 1, 1], [], []>} : vector<16x4xf32>, vector<4x12xf32>, vector<16x12xf32> -> vector<16x12xf32>
    %231 = arith.addf %224, %230 : vector<16x12xf32>
    %c2_155 = arith.constant 2 : index
    %c0_156 = arith.constant 0 : index
    %c0_157 = arith.constant 0 : index
    %232 = vector.load %arg8[%c2_155, %c0_156, %c0_157] : memref<3x4x12xf32, #tpu.memory_space<vmem>>, vector<1x4x12xf32>
    %233 = vector.shape_cast %232 : vector<1x4x12xf32> to vector<4x12xf32>
    %cst_158 = arith.constant dense<0.000000e+00> : vector<16x12xf32>
    %234 = tpu.matmul %227, %233, %cst_158 {dimension_numbers = #tpu.dot_dimension_numbers<[1], [0], [0], [1], [0, 0, 1, 1], [], []>} : vector<16x4xf32>, vector<4x12xf32>, vector<16x12xf32> -> vector<16x12xf32>
    %c2_159 = arith.constant 2 : index
    %c0_160 = arith.constant 0 : index
    %c0_161 = arith.constant 0 : index
    %235 = vector.load %arg10[%c2_159, %c0_160, %c0_161] : memref<3x1x12xf32, #tpu.memory_space<vmem>>, vector<1x1x12xf32>
    %236 = vector.shape_cast %235 : vector<1x1x12xf32> to vector<1x12xf32>
    %237 = vector.broadcast %236 : vector<1x12xf32> to vector<16x12xf32>
    %238 = arith.addf %234, %237 : vector<16x12xf32>
    %239 = vector.extract_strided_slice %231 {offsets = [0, 0], sizes = [16, 4], strides = [1, 1]} : vector<16x12xf32> to vector<16x4xf32>
    %240 = vector.extract_strided_slice %238 {offsets = [0, 0], sizes = [16, 4], strides = [1, 1]} : vector<16x12xf32> to vector<16x4xf32>
    %241 = arith.addf %239, %240 : vector<16x4xf32>
    %242 = arith.negf %241 : vector<16x4xf32>
    %243 = math.exp %242 : vector<16x4xf32>
    %cst_162 = arith.constant 1.000000e+00 : f32
    %244 = vector.broadcast %cst_162 : f32 to vector<16x4xf32>
    %245 = arith.addf %244, %243 : vector<16x4xf32>
    %246 = arith.divf %244, %245 : vector<16x4xf32>
    %247 = vector.extract_strided_slice %231 {offsets = [0, 4], sizes = [16, 4], strides = [1, 1]} : vector<16x12xf32> to vector<16x4xf32>
    %248 = vector.extract_strided_slice %238 {offsets = [0, 4], sizes = [16, 4], strides = [1, 1]} : vector<16x12xf32> to vector<16x4xf32>
    %249 = arith.addf %247, %248 : vector<16x4xf32>
    %250 = arith.negf %249 : vector<16x4xf32>
    %251 = math.exp %250 : vector<16x4xf32>
    %cst_163 = arith.constant 1.000000e+00 : f32
    %252 = vector.broadcast %cst_163 : f32 to vector<16x4xf32>
    %253 = arith.addf %252, %251 : vector<16x4xf32>
    %254 = arith.divf %252, %253 : vector<16x4xf32>
    %255 = vector.extract_strided_slice %231 {offsets = [0, 8], sizes = [16, 4], strides = [1, 1]} : vector<16x12xf32> to vector<16x4xf32>
    %256 = vector.extract_strided_slice %238 {offsets = [0, 8], sizes = [16, 4], strides = [1, 1]} : vector<16x12xf32> to vector<16x4xf32>
    %257 = arith.mulf %246, %256 : vector<16x4xf32>
    %258 = arith.addf %255, %257 : vector<16x4xf32>
    %259 = math.tanh %258 : vector<16x4xf32>
    %cst_164 = arith.constant 1.000000e+00 : f32
    %260 = vector.broadcast %cst_164 : f32 to vector<16x4xf32>
    %261 = arith.subf %260, %254 : vector<16x4xf32>
    %262 = arith.mulf %261, %259 : vector<16x4xf32>
    %263 = arith.mulf %254, %227 : vector<16x4xf32>
    %264 = arith.addf %262, %263 : vector<16x4xf32>
    %265 = vector.broadcast %0 : f32 to vector<16x4xf32>
    %266 = arith.mulf %264, %265 : vector<16x4xf32>
    %267 = arith.addf %227, %266 : vector<16x4xf32>
    %c48_165 = arith.constant 48 : index
    %c0_166 = arith.constant 0 : index
    %268 = vector.load %arg11[%c48_165, %c0_166] : memref<64x1xf32, #tpu.memory_space<vmem>>, vector<16x1xf32>
    %269 = vector.broadcast %268 : vector<16x1xf32> to vector<16x4xf32>
    %270 = arith.mulf %269, %266 : vector<16x4xf32>
    %271 = arith.addf %227, %270 : vector<16x4xf32>
    %c48_167 = arith.constant 48 : index
    %c0_168 = arith.constant 0 : index
    %272 = vector.load %arg13[%c48_167, %c0_168] : memref<64x4xf32, #tpu.memory_space<vmem>>, vector<16x4xf32>
    tpu.vector_store %arg13[%c48_167, %c0_168], %271 {strides = array<i32>} : memref<64x4xf32, #tpu.memory_space<vmem>>, vector<16x4xf32>,
    %c48_169 = arith.constant 48 : index
    %c0_170 = arith.constant 0 : index
    %273 = vector.load %arg14[%c48_169, %c0_170] : memref<64x4xf32, #tpu.memory_space<vmem>>, vector<16x4xf32>
    %274 = arith.mulf %267, %217 : vector<16x4xf32>
    %275 = arith.subf %274, %273 : vector<16x4xf32>
    %276 = vector.broadcast %268 : vector<16x1xf32> to vector<16x4xf32>
    %277 = arith.mulf %276, %275 : vector<16x4xf32>
    %278 = arith.addf %273, %277 : vector<16x4xf32>
    %c48_171 = arith.constant 48 : index
    %c0_172 = arith.constant 0 : index
    %279 = vector.load %arg14[%c48_171, %c0_172] : memref<64x4xf32, #tpu.memory_space<vmem>>, vector<16x4xf32>
    tpu.vector_store %arg14[%c48_171, %c0_172], %278 {strides = array<i32>} : memref<64x4xf32, #tpu.memory_space<vmem>>, vector<16x4xf32>,
    %c0_173 = arith.constant 0 : index
    %c0_174 = arith.constant 0 : index
    %280 = vector.load %arg12[%c0_173, %c0_174] : memref<8x4xf32, #tpu.memory_space<vmem>>, vector<8x4xf32>
    %281 = tpu.concatenate %280, %280, %280 in 0 : vector<8x4xf32>, vector<8x4xf32>, vector<8x4xf32> -> vector<24x4xf32>
    %c0_175 = arith.constant 0 : index
    %c0_176 = arith.constant 0 : index
    %282 = vector.load %arg13[%c0_175, %c0_176] : memref<64x4xf32, #tpu.memory_space<vmem>>, vector<24x4xf32>
    %c0_177 = arith.constant 0 : index
    %c0_178 = arith.constant 0 : index
    %c0_179 = arith.constant 0 : index
    %283 = vector.load %arg7[%c0_177, %c0_178, %c0_179] : memref<3x4x12xf32, #tpu.memory_space<vmem>>, vector<1x4x12xf32>
    %284 = vector.shape_cast %283 : vector<1x4x12xf32> to vector<4x12xf32>
    %cst_180 = arith.constant dense<0.000000e+00> : vector<24x12xf32>
    %285 = tpu.matmul %281, %284, %cst_180 {dimension_numbers = #tpu.dot_dimension_numbers<[1], [0], [0], [1], [0, 0, 1, 1], [], []>} : vector<24x4xf32>, vector<4x12xf32>, vector<24x12xf32> -> vector<24x12xf32>
    %286 = arith.addf %33, %285 : vector<24x12xf32>
    %c0_181 = arith.constant 0 : index
    %c0_182 = arith.constant 0 : index
    %c0_183 = arith.constant 0 : index
    %287 = vector.load %arg8[%c0_181, %c0_182, %c0_183] : memref<3x4x12xf32, #tpu.memory_space<vmem>>, vector<1x4x12xf32>
    %288 = vector.shape_cast %287 : vector<1x4x12xf32> to vector<4x12xf32>
    %cst_184 = arith.constant dense<0.000000e+00> : vector<24x12xf32>
    %289 = tpu.matmul %282, %288, %cst_184 {dimension_numbers = #tpu.dot_dimension_numbers<[1], [0], [0], [1], [0, 0, 1, 1], [], []>} : vector<24x4xf32>, vector<4x12xf32>, vector<24x12xf32> -> vector<24x12xf32>
    %c0_185 = arith.constant 0 : index
    %c0_186 = arith.constant 0 : index
    %c0_187 = arith.constant 0 : index
    %290 = vector.load %arg10[%c0_185, %c0_186, %c0_187] : memref<3x1x12xf32, #tpu.memory_space<vmem>>, vector<1x1x12xf32>
    %291 = vector.shape_cast %290 : vector<1x1x12xf32> to vector<1x12xf32>
    %292 = vector.broadcast %291 : vector<1x12xf32> to vector<24x12xf32>
    %293 = arith.addf %289, %292 : vector<24x12xf32>
    %294 = vector.extract_strided_slice %286 {offsets = [0, 0], sizes = [24, 4], strides = [1, 1]} : vector<24x12xf32> to vector<24x4xf32>
    %295 = vector.extract_strided_slice %293 {offsets = [0, 0], sizes = [24, 4], strides = [1, 1]} : vector<24x12xf32> to vector<24x4xf32>
    %296 = arith.addf %294, %295 : vector<24x4xf32>
    %297 = arith.negf %296 : vector<24x4xf32>
    %298 = math.exp %297 : vector<24x4xf32>
    %cst_188 = arith.constant 1.000000e+00 : f32
    %299 = vector.broadcast %cst_188 : f32 to vector<24x4xf32>
    %300 = arith.addf %299, %298 : vector<24x4xf32>
    %301 = arith.divf %299, %300 : vector<24x4xf32>
    %302 = vector.extract_strided_slice %286 {offsets = [0, 4], sizes = [24, 4], strides = [1, 1]} : vector<24x12xf32> to vector<24x4xf32>
    %303 = vector.extract_strided_slice %293 {offsets = [0, 4], sizes = [24, 4], strides = [1, 1]} : vector<24x12xf32> to vector<24x4xf32>
    %304 = arith.addf %302, %303 : vector<24x4xf32>
    %305 = arith.negf %304 : vector<24x4xf32>
    %306 = math.exp %305 : vector<24x4xf32>
    %cst_189 = arith.constant 1.000000e+00 : f32
    %307 = vector.broadcast %cst_189 : f32 to vector<24x4xf32>
    %308 = arith.addf %307, %306 : vector<24x4xf32>
    %309 = arith.divf %307, %308 : vector<24x4xf32>
    %310 = vector.extract_strided_slice %286 {offsets = [0, 8], sizes = [24, 4], strides = [1, 1]} : vector<24x12xf32> to vector<24x4xf32>
    %311 = vector.extract_strided_slice %293 {offsets = [0, 8], sizes = [24, 4], strides = [1, 1]} : vector<24x12xf32> to vector<24x4xf32>
    %312 = arith.mulf %301, %311 : vector<24x4xf32>
    %313 = arith.addf %310, %312 : vector<24x4xf32>
    %314 = math.tanh %313 : vector<24x4xf32>
    %cst_190 = arith.constant 1.000000e+00 : f32
    %315 = vector.broadcast %cst_190 : f32 to vector<24x4xf32>
    %316 = arith.subf %315, %309 : vector<24x4xf32>
    %317 = arith.mulf %316, %314 : vector<24x4xf32>
    %318 = arith.mulf %309, %282 : vector<24x4xf32>
    %319 = arith.addf %317, %318 : vector<24x4xf32>
    %320 = vector.broadcast %0 : f32 to vector<24x4xf32>
    %321 = arith.mulf %319, %320 : vector<24x4xf32>
    %322 = arith.addf %282, %321 : vector<24x4xf32>
    %c0_191 = arith.constant 0 : index
    %c0_192 = arith.constant 0 : index
    %323 = vector.load %arg11[%c0_191, %c0_192] : memref<64x1xf32, #tpu.memory_space<vmem>>, vector<24x1xf32>
    %324 = vector.broadcast %323 : vector<24x1xf32> to vector<24x4xf32>
    %325 = arith.mulf %324, %321 : vector<24x4xf32>
    %326 = arith.addf %282, %325 : vector<24x4xf32>
    %c0_193 = arith.constant 0 : index
    %c0_194 = arith.constant 0 : index
    %327 = vector.load %arg13[%c0_193, %c0_194] : memref<64x4xf32, #tpu.memory_space<vmem>>, vector<24x4xf32>
    tpu.vector_store %arg13[%c0_193, %c0_194], %326 {strides = array<i32>} : memref<64x4xf32, #tpu.memory_space<vmem>>, vector<24x4xf32>,
    %c0_195 = arith.constant 0 : index
    %c0_196 = arith.constant 0 : index
    %328 = vector.load %arg14[%c0_195, %c0_196] : memref<64x4xf32, #tpu.memory_space<vmem>>, vector<24x4xf32>
    %329 = arith.mulf %322, %26 : vector<24x4xf32>
    %330 = arith.subf %329, %328 : vector<24x4xf32>
    %331 = vector.broadcast %323 : vector<24x1xf32> to vector<24x4xf32>
    %332 = arith.mulf %331, %330 : vector<24x4xf32>
    %333 = arith.addf %328, %332 : vector<24x4xf32>
    %c0_197 = arith.constant 0 : index
    %c0_198 = arith.constant 0 : index
    %334 = vector.load %arg14[%c0_197, %c0_198] : memref<64x4xf32, #tpu.memory_space<vmem>>, vector<24x4xf32>
    tpu.vector_store %arg14[%c0_197, %c0_198], %333 {strides = array<i32>} : memref<64x4xf32, #tpu.memory_space<vmem>>, vector<24x4xf32>,
    %c0_199 = arith.constant 0 : index
    %c0_200 = arith.constant 0 : index
    %335 = vector.load %arg14[%c0_199, %c0_200] : memref<64x4xf32, #tpu.memory_space<vmem>>, vector<8x4xf32>
    %c8_201 = arith.constant 8 : index
    %c0_202 = arith.constant 0 : index
    %336 = vector.load %arg14[%c8_201, %c0_202] : memref<64x4xf32, #tpu.memory_space<vmem>>, vector<8x4xf32>
    %c16_203 = arith.constant 16 : index
    %c0_204 = arith.constant 0 : index
    %337 = vector.load %arg14[%c16_203, %c0_204] : memref<64x4xf32, #tpu.memory_space<vmem>>, vector<8x4xf32>
    %c24_205 = arith.constant 24 : index
    %c0_206 = arith.constant 0 : index
    %338 = vector.load %arg14[%c24_205, %c0_206] : memref<64x4xf32, #tpu.memory_space<vmem>>, vector<8x4xf32>
    %c32_207 = arith.constant 32 : index
    %c0_208 = arith.constant 0 : index
    %339 = vector.load %arg14[%c32_207, %c0_208] : memref<64x4xf32, #tpu.memory_space<vmem>>, vector<8x4xf32>
    %c40_209 = arith.constant 40 : index
    %c0_210 = arith.constant 0 : index
    %340 = vector.load %arg14[%c40_209, %c0_210] : memref<64x4xf32, #tpu.memory_space<vmem>>, vector<8x4xf32>
    %c48_211 = arith.constant 48 : index
    %c0_212 = arith.constant 0 : index
    %341 = vector.load %arg14[%c48_211, %c0_212] : memref<64x4xf32, #tpu.memory_space<vmem>>, vector<8x4xf32>
    %c56_213 = arith.constant 56 : index
    %c0_214 = arith.constant 0 : index
    %342 = vector.load %arg14[%c56_213, %c0_214] : memref<64x4xf32, #tpu.memory_space<vmem>>, vector<8x4xf32>
    %343 = arith.addf %335, %336 : vector<8x4xf32>
    %344 = arith.addf %337, %338 : vector<8x4xf32>
    %345 = arith.addf %339, %340 : vector<8x4xf32>
    %346 = arith.addf %341, %342 : vector<8x4xf32>
    %347 = arith.addf %343, %344 : vector<8x4xf32>
    %348 = arith.addf %345, %346 : vector<8x4xf32>
    %349 = arith.addf %347, %348 : vector<8x4xf32>
    %350 = vector.extract_strided_slice %349 {offsets = [3, 0], sizes = [3, 4], strides = [1, 1]} : vector<8x4xf32> to vector<3x4xf32>
    %c1_215 = arith.constant 1 : index
    %c0_216 = arith.constant 0 : index
    %c0_217 = arith.constant 0 : index
    %351 = vector.load %arg4[%c1_215, %c0_216, %c0_217] : memref<3x4x4xf32, #tpu.memory_space<vmem>>, vector<1x4x4xf32>
    %352 = vector.shape_cast %351 : vector<1x4x4xf32> to vector<4x4xf32>
    %cst_218 = arith.constant dense<0.000000e+00> : vector<3x4xf32>
    %353 = tpu.matmul %350, %352, %cst_218 {dimension_numbers = #tpu.dot_dimension_numbers<[1], [0], [0], [1], [0, 0, 1, 1], [], []>} : vector<3x4xf32>, vector<4x4xf32>, vector<3x4xf32> -> vector<3x4xf32>
    %c1_219 = arith.constant 1 : index
    %c0_220 = arith.constant 0 : index
    %c0_221 = arith.constant 0 : index
    %354 = vector.load %arg5[%c1_219, %c0_220, %c0_221] : memref<3x1x4xf32, #tpu.memory_space<vmem>>, vector<1x1x4xf32>
    %355 = vector.shape_cast %354 : vector<1x1x4xf32> to vector<1x4xf32>
    %356 = vector.broadcast %355 : vector<1x4xf32> to vector<3x4xf32>
    %357 = arith.addf %353, %356 : vector<3x4xf32>
    %358 = math.tanh %357 : vector<3x4xf32>
    %c3_222 = arith.constant 3 : index
    %c0_223 = arith.constant 0 : index
    %359 = vector.load %arg12[%c3_222, %c0_223] : memref<8x4xf32, #tpu.memory_space<vmem>>, vector<3x4xf32>
    tpu.vector_store %arg12[%c3_222, %c0_223], %358 {strides = array<i32>} : memref<8x4xf32, #tpu.memory_space<vmem>>, vector<3x4xf32>,
    %c3_224 = arith.constant 3 : index
    %c0_225 = arith.constant 0 : index
    %360 = vector.load %arg12[%c3_224, %c0_225] : memref<8x4xf32, #tpu.memory_space<vmem>>, vector<1x4xf32>
    %361 = vector.shape_cast %360 : vector<1x4xf32> to vector<1x4xf32>
    %362 = vector.broadcast %361 : vector<1x4xf32> to vector<8x4xf32>
    %c4_226 = arith.constant 4 : index
    %c0_227 = arith.constant 0 : index
    %363 = vector.load %arg12[%c4_226, %c0_227] : memref<8x4xf32, #tpu.memory_space<vmem>>, vector<1x4xf32>
    %364 = vector.shape_cast %363 : vector<1x4xf32> to vector<1x4xf32>
    %365 = vector.broadcast %364 : vector<1x4xf32> to vector<8x4xf32>
    %c5_228 = arith.constant 5 : index
    %c0_229 = arith.constant 0 : index
    %366 = vector.load %arg12[%c5_228, %c0_229] : memref<8x4xf32, #tpu.memory_space<vmem>>, vector<1x4xf32>
    %367 = vector.shape_cast %366 : vector<1x4xf32> to vector<1x4xf32>
    %368 = vector.broadcast %367 : vector<1x4xf32> to vector<8x4xf32>
    %369 = tpu.concatenate %362, %365, %368 in 0 : vector<8x4xf32>, vector<8x4xf32>, vector<8x4xf32> -> vector<24x4xf32>
    %c1_230 = arith.constant 1 : index
    %c0_231 = arith.constant 0 : index
    %c0_232 = arith.constant 0 : index
    %370 = vector.load %arg6[%c1_230, %c0_231, %c0_232] : memref<3x4x12xf32, #tpu.memory_space<vmem>>, vector<1x4x12xf32>
    %371 = vector.shape_cast %370 : vector<1x4x12xf32> to vector<4x12xf32>
    %cst_233 = arith.constant dense<0.000000e+00> : vector<24x12xf32>
    %372 = tpu.matmul %369, %371, %cst_233 {dimension_numbers = #tpu.dot_dimension_numbers<[1], [0], [0], [1], [0, 0, 1, 1], [], []>} : vector<24x4xf32>, vector<4x12xf32>, vector<24x12xf32> -> vector<24x12xf32>
    %c1_234 = arith.constant 1 : index
    %c0_235 = arith.constant 0 : index
    %c0_236 = arith.constant 0 : index
    %373 = vector.load %arg9[%c1_234, %c0_235, %c0_236] : memref<3x1x12xf32, #tpu.memory_space<vmem>>, vector<1x1x12xf32>
    %374 = vector.shape_cast %373 : vector<1x1x12xf32> to vector<1x12xf32>
    %375 = vector.broadcast %374 : vector<1x12xf32> to vector<24x12xf32>
    %376 = arith.addf %372, %375 : vector<24x12xf32>
    %c0_237 = arith.constant 0 : index
    %c0_238 = arith.constant 0 : index
    %377 = vector.load %arg12[%c0_237, %c0_238] : memref<8x4xf32, #tpu.memory_space<vmem>>, vector<8x4xf32>
    %378 = tpu.concatenate %377, %377, %377 in 0 : vector<8x4xf32>, vector<8x4xf32>, vector<8x4xf32> -> vector<24x4xf32>
    %c24_239 = arith.constant 24 : index
    %c0_240 = arith.constant 0 : index
    %379 = vector.load %arg13[%c24_239, %c0_240] : memref<64x4xf32, #tpu.memory_space<vmem>>, vector<24x4xf32>
    %c1_241 = arith.constant 1 : index
    %c0_242 = arith.constant 0 : index
    %c0_243 = arith.constant 0 : index
    %380 = vector.load %arg7[%c1_241, %c0_242, %c0_243] : memref<3x4x12xf32, #tpu.memory_space<vmem>>, vector<1x4x12xf32>
    %381 = vector.shape_cast %380 : vector<1x4x12xf32> to vector<4x12xf32>
    %cst_244 = arith.constant dense<0.000000e+00> : vector<24x12xf32>
    %382 = tpu.matmul %378, %381, %cst_244 {dimension_numbers = #tpu.dot_dimension_numbers<[1], [0], [0], [1], [0, 0, 1, 1], [], []>} : vector<24x4xf32>, vector<4x12xf32>, vector<24x12xf32> -> vector<24x12xf32>
    %383 = arith.addf %376, %382 : vector<24x12xf32>
    %c1_245 = arith.constant 1 : index
    %c0_246 = arith.constant 0 : index
    %c0_247 = arith.constant 0 : index
    %384 = vector.load %arg8[%c1_245, %c0_246, %c0_247] : memref<3x4x12xf32, #tpu.memory_space<vmem>>, vector<1x4x12xf32>
    %385 = vector.shape_cast %384 : vector<1x4x12xf32> to vector<4x12xf32>
    %cst_248 = arith.constant dense<0.000000e+00> : vector<24x12xf32>
    %386 = tpu.matmul %379, %385, %cst_248 {dimension_numbers = #tpu.dot_dimension_numbers<[1], [0], [0], [1], [0, 0, 1, 1], [], []>} : vector<24x4xf32>, vector<4x12xf32>, vector<24x12xf32> -> vector<24x12xf32>
    %c1_249 = arith.constant 1 : index
    %c0_250 = arith.constant 0 : index
    %c0_251 = arith.constant 0 : index
    %387 = vector.load %arg10[%c1_249, %c0_250, %c0_251] : memref<3x1x12xf32, #tpu.memory_space<vmem>>, vector<1x1x12xf32>
    %388 = vector.shape_cast %387 : vector<1x1x12xf32> to vector<1x12xf32>
    %389 = vector.broadcast %388 : vector<1x12xf32> to vector<24x12xf32>
    %390 = arith.addf %386, %389 : vector<24x12xf32>
    %391 = vector.extract_strided_slice %383 {offsets = [0, 0], sizes = [24, 4], strides = [1, 1]} : vector<24x12xf32> to vector<24x4xf32>
    %392 = vector.extract_strided_slice %390 {offsets = [0, 0], sizes = [24, 4], strides = [1, 1]} : vector<24x12xf32> to vector<24x4xf32>
    %393 = arith.addf %391, %392 : vector<24x4xf32>
    %394 = arith.negf %393 : vector<24x4xf32>
    %395 = math.exp %394 : vector<24x4xf32>
    %cst_252 = arith.constant 1.000000e+00 : f32
    %396 = vector.broadcast %cst_252 : f32 to vector<24x4xf32>
    %397 = arith.addf %396, %395 : vector<24x4xf32>
    %398 = arith.divf %396, %397 : vector<24x4xf32>
    %399 = vector.extract_strided_slice %383 {offsets = [0, 4], sizes = [24, 4], strides = [1, 1]} : vector<24x12xf32> to vector<24x4xf32>
    %400 = vector.extract_strided_slice %390 {offsets = [0, 4], sizes = [24, 4], strides = [1, 1]} : vector<24x12xf32> to vector<24x4xf32>
    %401 = arith.addf %399, %400 : vector<24x4xf32>
    %402 = arith.negf %401 : vector<24x4xf32>
    %403 = math.exp %402 : vector<24x4xf32>
    %cst_253 = arith.constant 1.000000e+00 : f32
    %404 = vector.broadcast %cst_253 : f32 to vector<24x4xf32>
    %405 = arith.addf %404, %403 : vector<24x4xf32>
    %406 = arith.divf %404, %405 : vector<24x4xf32>
    %407 = vector.extract_strided_slice %383 {offsets = [0, 8], sizes = [24, 4], strides = [1, 1]} : vector<24x12xf32> to vector<24x4xf32>
    %408 = vector.extract_strided_slice %390 {offsets = [0, 8], sizes = [24, 4], strides = [1, 1]} : vector<24x12xf32> to vector<24x4xf32>
    %409 = arith.mulf %398, %408 : vector<24x4xf32>
    %410 = arith.addf %407, %409 : vector<24x4xf32>
    %411 = math.tanh %410 : vector<24x4xf32>
    %cst_254 = arith.constant 1.000000e+00 : f32
    %412 = vector.broadcast %cst_254 : f32 to vector<24x4xf32>
    %413 = arith.subf %412, %406 : vector<24x4xf32>
    %414 = arith.mulf %413, %411 : vector<24x4xf32>
    %415 = arith.mulf %406, %379 : vector<24x4xf32>
    %416 = arith.addf %414, %415 : vector<24x4xf32>
    %417 = vector.broadcast %0 : f32 to vector<24x4xf32>
    %418 = arith.mulf %416, %417 : vector<24x4xf32>
    %419 = arith.addf %379, %418 : vector<24x4xf32>
    %c24_255 = arith.constant 24 : index
    %c0_256 = arith.constant 0 : index
    %420 = vector.load %arg11[%c24_255, %c0_256] : memref<64x1xf32, #tpu.memory_space<vmem>>, vector<24x1xf32>
    %421 = vector.broadcast %420 : vector<24x1xf32> to vector<24x4xf32>
    %422 = arith.mulf %421, %418 : vector<24x4xf32>
    %423 = arith.addf %379, %422 : vector<24x4xf32>
    %c24_257 = arith.constant 24 : index
    %c0_258 = arith.constant 0 : index
    %424 = vector.load %arg13[%c24_257, %c0_258] : memref<64x4xf32, #tpu.memory_space<vmem>>, vector<24x4xf32>
    tpu.vector_store %arg13[%c24_257, %c0_258], %423 {strides = array<i32>} : memref<64x4xf32, #tpu.memory_space<vmem>>, vector<24x4xf32>,
    %c24_259 = arith.constant 24 : index
    %c0_260 = arith.constant 0 : index
    %425 = vector.load %arg14[%c24_259, %c0_260] : memref<64x4xf32, #tpu.memory_space<vmem>>, vector<24x4xf32>
    %426 = arith.mulf %419, %369 : vector<24x4xf32>
    %427 = arith.subf %426, %425 : vector<24x4xf32>
    %428 = vector.broadcast %420 : vector<24x1xf32> to vector<24x4xf32>
    %429 = arith.mulf %428, %427 : vector<24x4xf32>
    %430 = arith.addf %425, %429 : vector<24x4xf32>
    %c24_261 = arith.constant 24 : index
    %c0_262 = arith.constant 0 : index
    %431 = vector.load %arg14[%c24_261, %c0_262] : memref<64x4xf32, #tpu.memory_space<vmem>>, vector<24x4xf32>
    tpu.vector_store %arg14[%c24_261, %c0_262], %430 {strides = array<i32>} : memref<64x4xf32, #tpu.memory_space<vmem>>, vector<24x4xf32>,
    %c0_263 = arith.constant 0 : index
    %c0_264 = arith.constant 0 : index
    %432 = vector.load %arg14[%c0_263, %c0_264] : memref<64x4xf32, #tpu.memory_space<vmem>>, vector<8x4xf32>
    %c8_265 = arith.constant 8 : index
    %c0_266 = arith.constant 0 : index
    %433 = vector.load %arg14[%c8_265, %c0_266] : memref<64x4xf32, #tpu.memory_space<vmem>>, vector<8x4xf32>
    %c16_267 = arith.constant 16 : index
    %c0_268 = arith.constant 0 : index
    %434 = vector.load %arg14[%c16_267, %c0_268] : memref<64x4xf32, #tpu.memory_space<vmem>>, vector<8x4xf32>
    %c24_269 = arith.constant 24 : index
    %c0_270 = arith.constant 0 : index
    %435 = vector.load %arg14[%c24_269, %c0_270] : memref<64x4xf32, #tpu.memory_space<vmem>>, vector<8x4xf32>
    %c32_271 = arith.constant 32 : index
    %c0_272 = arith.constant 0 : index
    %436 = vector.load %arg14[%c32_271, %c0_272] : memref<64x4xf32, #tpu.memory_space<vmem>>, vector<8x4xf32>
    %c40_273 = arith.constant 40 : index
    %c0_274 = arith.constant 0 : index
    %437 = vector.load %arg14[%c40_273, %c0_274] : memref<64x4xf32, #tpu.memory_space<vmem>>, vector<8x4xf32>
    %c48_275 = arith.constant 48 : index
    %c0_276 = arith.constant 0 : index
    %438 = vector.load %arg14[%c48_275, %c0_276] : memref<64x4xf32, #tpu.memory_space<vmem>>, vector<8x4xf32>
    %c56_277 = arith.constant 56 : index
    %c0_278 = arith.constant 0 : index
    %439 = vector.load %arg14[%c56_277, %c0_278] : memref<64x4xf32, #tpu.memory_space<vmem>>, vector<8x4xf32>
    %440 = arith.addf %432, %433 : vector<8x4xf32>
    %441 = arith.addf %434, %435 : vector<8x4xf32>
    %442 = arith.addf %436, %437 : vector<8x4xf32>
    %443 = arith.addf %438, %439 : vector<8x4xf32>
    %444 = arith.addf %440, %441 : vector<8x4xf32>
    %445 = arith.addf %442, %443 : vector<8x4xf32>
    %446 = arith.addf %444, %445 : vector<8x4xf32>
    %447 = vector.extract_strided_slice %446 {offsets = [6, 0], sizes = [2, 4], strides = [1, 1]} : vector<8x4xf32> to vector<2x4xf32>
    %c2_279 = arith.constant 2 : index
    %c0_280 = arith.constant 0 : index
    %c0_281 = arith.constant 0 : index
    %448 = vector.load %arg4[%c2_279, %c0_280, %c0_281] : memref<3x4x4xf32, #tpu.memory_space<vmem>>, vector<1x4x4xf32>
    %449 = vector.shape_cast %448 : vector<1x4x4xf32> to vector<4x4xf32>
    %cst_282 = arith.constant dense<0.000000e+00> : vector<2x4xf32>
    %450 = tpu.matmul %447, %449, %cst_282 {dimension_numbers = #tpu.dot_dimension_numbers<[1], [0], [0], [1], [0, 0, 1, 1], [], []>} : vector<2x4xf32>, vector<4x4xf32>, vector<2x4xf32> -> vector<2x4xf32>
    %c2_283 = arith.constant 2 : index
    %c0_284 = arith.constant 0 : index
    %c0_285 = arith.constant 0 : index
    %451 = vector.load %arg5[%c2_283, %c0_284, %c0_285] : memref<3x1x4xf32, #tpu.memory_space<vmem>>, vector<1x1x4xf32>
    %452 = vector.shape_cast %451 : vector<1x1x4xf32> to vector<1x4xf32>
    %453 = vector.broadcast %452 : vector<1x4xf32> to vector<2x4xf32>
    %454 = arith.addf %450, %453 : vector<2x4xf32>
    %455 = math.tanh %454 : vector<2x4xf32>
    %c6_286 = arith.constant 6 : index
    %c0_287 = arith.constant 0 : index
    %456 = vector.load %arg12[%c6_286, %c0_287] : memref<8x4xf32, #tpu.memory_space<vmem>>, vector<2x4xf32>
    tpu.vector_store %arg12[%c6_286, %c0_287], %455 {strides = array<i32>} : memref<8x4xf32, #tpu.memory_space<vmem>>, vector<2x4xf32>,
    %c6_288 = arith.constant 6 : index
    %c0_289 = arith.constant 0 : index
    %457 = vector.load %arg12[%c6_288, %c0_289] : memref<8x4xf32, #tpu.memory_space<vmem>>, vector<1x4xf32>
    %458 = vector.shape_cast %457 : vector<1x4xf32> to vector<1x4xf32>
    %459 = vector.broadcast %458 : vector<1x4xf32> to vector<8x4xf32>
    %c7_290 = arith.constant 7 : index
    %c0_291 = arith.constant 0 : index
    %460 = vector.load %arg12[%c7_290, %c0_291] : memref<8x4xf32, #tpu.memory_space<vmem>>, vector<1x4xf32>
    %461 = vector.shape_cast %460 : vector<1x4xf32> to vector<1x4xf32>
    %462 = vector.broadcast %461 : vector<1x4xf32> to vector<8x4xf32>
    %463 = tpu.concatenate %459, %462 in 0 : vector<8x4xf32>, vector<8x4xf32> -> vector<16x4xf32>
    %c2_292 = arith.constant 2 : index
    %c0_293 = arith.constant 0 : index
    %c0_294 = arith.constant 0 : index
    %464 = vector.load %arg6[%c2_292, %c0_293, %c0_294] : memref<3x4x12xf32, #tpu.memory_space<vmem>>, vector<1x4x12xf32>
    %465 = vector.shape_cast %464 : vector<1x4x12xf32> to vector<4x12xf32>
    %cst_295 = arith.constant dense<0.000000e+00> : vector<16x12xf32>
    %466 = tpu.matmul %463, %465, %cst_295 {dimension_numbers = #tpu.dot_dimension_numbers<[1], [0], [0], [1], [0, 0, 1, 1], [], []>} : vector<16x4xf32>, vector<4x12xf32>, vector<16x12xf32> -> vector<16x12xf32>
    %c2_296 = arith.constant 2 : index
    %c0_297 = arith.constant 0 : index
    %c0_298 = arith.constant 0 : index
    %467 = vector.load %arg9[%c2_296, %c0_297, %c0_298] : memref<3x1x12xf32, #tpu.memory_space<vmem>>, vector<1x1x12xf32>
    %468 = vector.shape_cast %467 : vector<1x1x12xf32> to vector<1x12xf32>
    %469 = vector.broadcast %468 : vector<1x12xf32> to vector<16x12xf32>
    %470 = arith.addf %466, %469 : vector<16x12xf32>
    %c0_299 = arith.constant 0 : index
    %c0_300 = arith.constant 0 : index
    %471 = vector.load %arg12[%c0_299, %c0_300] : memref<8x4xf32, #tpu.memory_space<vmem>>, vector<8x4xf32>
    %472 = tpu.concatenate %471, %471 in 0 : vector<8x4xf32>, vector<8x4xf32> -> vector<16x4xf32>
    %c48_301 = arith.constant 48 : index
    %c0_302 = arith.constant 0 : index
    %473 = vector.load %arg13[%c48_301, %c0_302] : memref<64x4xf32, #tpu.memory_space<vmem>>, vector<16x4xf32>
    %c2_303 = arith.constant 2 : index
    %c0_304 = arith.constant 0 : index
    %c0_305 = arith.constant 0 : index
    %474 = vector.load %arg7[%c2_303, %c0_304, %c0_305] : memref<3x4x12xf32, #tpu.memory_space<vmem>>, vector<1x4x12xf32>
    %475 = vector.shape_cast %474 : vector<1x4x12xf32> to vector<4x12xf32>
    %cst_306 = arith.constant dense<0.000000e+00> : vector<16x12xf32>
    %476 = tpu.matmul %472, %475, %cst_306 {dimension_numbers = #tpu.dot_dimension_numbers<[1], [0], [0], [1], [0, 0, 1, 1], [], []>} : vector<16x4xf32>, vector<4x12xf32>, vector<16x12xf32> -> vector<16x12xf32>
    %477 = arith.addf %470, %476 : vector<16x12xf32>
    %c2_307 = arith.constant 2 : index
    %c0_308 = arith.constant 0 : index
    %c0_309 = arith.constant 0 : index
    %478 = vector.load %arg8[%c2_307, %c0_308, %c0_309] : memref<3x4x12xf32, #tpu.memory_space<vmem>>, vector<1x4x12xf32>
    %479 = vector.shape_cast %478 : vector<1x4x12xf32> to vector<4x12xf32>
    %cst_310 = arith.constant dense<0.000000e+00> : vector<16x12xf32>
    %480 = tpu.matmul %473, %479, %cst_310 {dimension_numbers = #tpu.dot_dimension_numbers<[1], [0], [0], [1], [0, 0, 1, 1], [], []>} : vector<16x4xf32>, vector<4x12xf32>, vector<16x12xf32> -> vector<16x12xf32>
    %c2_311 = arith.constant 2 : index
    %c0_312 = arith.constant 0 : index
    %c0_313 = arith.constant 0 : index
    %481 = vector.load %arg10[%c2_311, %c0_312, %c0_313] : memref<3x1x12xf32, #tpu.memory_space<vmem>>, vector<1x1x12xf32>
    %482 = vector.shape_cast %481 : vector<1x1x12xf32> to vector<1x12xf32>
    %483 = vector.broadcast %482 : vector<1x12xf32> to vector<16x12xf32>
    %484 = arith.addf %480, %483 : vector<16x12xf32>
    %485 = vector.extract_strided_slice %477 {offsets = [0, 0], sizes = [16, 4], strides = [1, 1]} : vector<16x12xf32> to vector<16x4xf32>
    %486 = vector.extract_strided_slice %484 {offsets = [0, 0], sizes = [16, 4], strides = [1, 1]} : vector<16x12xf32> to vector<16x4xf32>
    %487 = arith.addf %485, %486 : vector<16x4xf32>
    %488 = arith.negf %487 : vector<16x4xf32>
    %489 = math.exp %488 : vector<16x4xf32>
    %cst_314 = arith.constant 1.000000e+00 : f32
    %490 = vector.broadcast %cst_314 : f32 to vector<16x4xf32>
    %491 = arith.addf %490, %489 : vector<16x4xf32>
    %492 = arith.divf %490, %491 : vector<16x4xf32>
    %493 = vector.extract_strided_slice %477 {offsets = [0, 4], sizes = [16, 4], strides = [1, 1]} : vector<16x12xf32> to vector<16x4xf32>
    %494 = vector.extract_strided_slice %484 {offsets = [0, 4], sizes = [16, 4], strides = [1, 1]} : vector<16x12xf32> to vector<16x4xf32>
    %495 = arith.addf %493, %494 : vector<16x4xf32>
    %496 = arith.negf %495 : vector<16x4xf32>
    %497 = math.exp %496 : vector<16x4xf32>
    %cst_315 = arith.constant 1.000000e+00 : f32
    %498 = vector.broadcast %cst_315 : f32 to vector<16x4xf32>
    %499 = arith.addf %498, %497 : vector<16x4xf32>
    %500 = arith.divf %498, %499 : vector<16x4xf32>
    %501 = vector.extract_strided_slice %477 {offsets = [0, 8], sizes = [16, 4], strides = [1, 1]} : vector<16x12xf32> to vector<16x4xf32>
    %502 = vector.extract_strided_slice %484 {offsets = [0, 8], sizes = [16, 4], strides = [1, 1]} : vector<16x12xf32> to vector<16x4xf32>
    %503 = arith.mulf %492, %502 : vector<16x4xf32>
    %504 = arith.addf %501, %503 : vector<16x4xf32>
    %505 = math.tanh %504 : vector<16x4xf32>
    %cst_316 = arith.constant 1.000000e+00 : f32
    %506 = vector.broadcast %cst_316 : f32 to vector<16x4xf32>
    %507 = arith.subf %506, %500 : vector<16x4xf32>
    %508 = arith.mulf %507, %505 : vector<16x4xf32>
    %509 = arith.mulf %500, %473 : vector<16x4xf32>
    %510 = arith.addf %508, %509 : vector<16x4xf32>
    %511 = vector.broadcast %0 : f32 to vector<16x4xf32>
    %512 = arith.mulf %510, %511 : vector<16x4xf32>
    %513 = arith.addf %473, %512 : vector<16x4xf32>
    %c48_317 = arith.constant 48 : index
    %c0_318 = arith.constant 0 : index
    %514 = vector.load %arg11[%c48_317, %c0_318] : memref<64x1xf32, #tpu.memory_space<vmem>>, vector<16x1xf32>
    %515 = vector.broadcast %514 : vector<16x1xf32> to vector<16x4xf32>
    %516 = arith.mulf %515, %512 : vector<16x4xf32>
    %517 = arith.addf %473, %516 : vector<16x4xf32>
    %c48_319 = arith.constant 48 : index
    %c0_320 = arith.constant 0 : index
    %518 = vector.load %arg13[%c48_319, %c0_320] : memref<64x4xf32, #tpu.memory_space<vmem>>, vector<16x4xf32>
    tpu.vector_store %arg13[%c48_319, %c0_320], %517 {strides = array<i32>} : memref<64x4xf32, #tpu.memory_space<vmem>>, vector<16x4xf32>,
    %c48_321 = arith.constant 48 : index
    %c0_322 = arith.constant 0 : index
    %519 = vector.load %arg14[%c48_321, %c0_322] : memref<64x4xf32, #tpu.memory_space<vmem>>, vector<16x4xf32>
    %520 = arith.mulf %513, %463 : vector<16x4xf32>
    %521 = arith.subf %520, %519 : vector<16x4xf32>
    %522 = vector.broadcast %514 : vector<16x1xf32> to vector<16x4xf32>
    %523 = arith.mulf %522, %521 : vector<16x4xf32>
    %524 = arith.addf %519, %523 : vector<16x4xf32>
    %c48_323 = arith.constant 48 : index
    %c0_324 = arith.constant 0 : index
    %525 = vector.load %arg14[%c48_323, %c0_324] : memref<64x4xf32, #tpu.memory_space<vmem>>, vector<16x4xf32>
    tpu.vector_store %arg14[%c48_323, %c0_324], %524 {strides = array<i32>} : memref<64x4xf32, #tpu.memory_space<vmem>>, vector<16x4xf32>,
    return
  }
}

</mosaic_0001>

<bundles_post_ra>
// kernel: tpu_custom_call.1
= control target key start
LH: loop header
LB: loop body
LE: loop exit
PB: predicated region body
PF: predicated region fallthrough
CT: control target
= control target key end

     0   :  { %vm82_vm0 = vcmask 1043456   ;;  %vm44_vm1 = vcmask 31744   ;;  %v4774_v0 = vmov 0.0   ;;  %vm3649_vm2 = vmmov 0   ;;  %s3651_s18 = smov 8   ;;  %s3652_s19 = smov 4   ;;  %s4761_s4 = inlined_call_operand.vmem [shape: f32[3,4,4], index: 4, kind: input, shape index: {}]   ;;  %s4762_s1 = inlined_call_operand.vmem [shape: f32[3,4], index: 1, kind: input, shape index: {}]   ;;  %s4763_s6 = inlined_call_operand.vmem [shape: f32[3,4,12], index: 6, kind: input, shape index: {}]   ;;  %s4764_s7 = inlined_call_operand.vmem [shape: f32[3,4,12], index: 7, kind: input, shape index: {}]   ;;  %s4765_s2 = inlined_call_operand.vmem [shape: f32[8,4], index: 2, kind: input, shape index: {}]   ;;  %s4766_s12 = inlined_call_operand.vmem [shape: f32[8,4], index: 12, kind: output, shape index: {}]   ;;  %s4767_s3 = inlined_call_operand.vmem [shape: f32[64,4], index: 3, kind: input, shape index: {}]   ;;  %s4768_s5 = inlined_call_operand.vmem [shape: f32[3,1,4], index: 5, kind: input, shape index: {}]   ;;  %s4769_s8 = inlined_call_operand.vmem [shape: f32[3,4,12], index: 8, kind: input, shape index: {}]   ;;  %s4770_s10 = inlined_call_operand.vmem [shape: f32[3,1,12], index: 10, kind: input, shape index: {}]   ;;  %s4771_s9 = inlined_call_operand.vmem [shape: f32[3,1,12], index: 9, kind: input, shape index: {}]   ;;  %s4772_s11 = inlined_call_operand.vmem [shape: f32[64,1], index: 11, kind: input, shape index: {}]   ;;  %s4773_s0 = inlined_call_operand.<no memory space> [shape: f32[1,1], index: 0, kind: input, shape index: {}]  }
   0x1   :  { %3351 = vmatprep.subr.mxu0 %v4774_v0  ;;  %v71_v1 = vld [vmem:[%s4761_s4] sm:$0xf]  ;;  %3353 = vmatprep.mubr.msk.f32.mxu0 %vm3649_vm2, %v4774_v0  ;;  %62 = vst.msk [vmem:[#allocation3] sm:$0xff] %vm44_vm1, %v4774_v0  ;;  %63 = vst.msk [vmem:[#allocation3 + $0x8] sm:$0xff] %vm44_vm1, %v4774_v0  ;;  %v47_v7 = vld [vmem:[%s4767_s3 + $0x8] sm:$0xff]  ;;  %vm157_vm3 = vcmask 26624  }
   0x2   :  { %v70_v2 = vld [vmem:[%s4762_s1] sm:$0x7]  ;;  %64 = vst.msk [vmem:[#allocation3 + $0x10] sm:$0xff] %vm44_vm1, %v4774_v0  ;;  %65 = vst.msk [vmem:[#allocation3 + $0x18] sm:$0xff] %vm44_vm1, %v4774_v0  ;;  %3352 = vmatpush3.msk.msra.mxu0 %vm82_vm0, %v71_v1  ;;  %3356 = vmatprep.subr.mxu1 %v4774_v0  ;;  %v48_v8 = vld [vmem:[%s4767_s3 + $0x10] sm:$0xff]  ;;  %s3654_s20 = smov 124  }
   0x3   :  { %66 = vst.msk [vmem:[#allocation3 + $0x20] sm:$0xff] %vm44_vm1, %v4774_v0  ;;  %67 = vst.msk [vmem:[#allocation3 + $0x28] sm:$0xff] %vm44_vm1, %v4774_v0  ;;  %3354 = vmatmul.mubr.msk.f32.vlgmr.msra.gmra.mxu0 %vm44_vm1, %v70_v2  ;;  %3367 = vmatprep.subr.mxu0 %v4774_v0  ;;  %v174_v3 = vld [vmem:[%s4763_s6] sm:$0xf]  ;;  %vm1314_vm4 = vcmask 25600  }
   0x4   :  { %68 = vst.msk [vmem:[#allocation3 + $0x30] sm:$0xff] %vm44_vm1, %v4774_v0  ;;  %69 = vst.msk [vmem:[#allocation3 + $0x38] sm:$0xff] %vm44_vm1, %v4774_v0  ;;  %3358 = vmatprep.mubr.msk.f32.mxu1 %vm3649_vm2, %v4774_v0  ;;  %3369 = vmatprep.mubr.msk.f32.mxu0 %vm3649_vm2, %v4774_v0  ;;  %v278_v4 = vld [vmem:[%s4764_s7] sm:$0xf] }
   0x5   :  { %v43_v5 = vld [vmem:[%s4765_s2] sm:$0xff]  ;;  %3357 = vmatpush3.msk.msra.mxu1 %vm82_vm0, %v174_v3  ;;  %3368 = vmatpush3.msk.msra.mxu0 %vm82_vm0, %v278_v4  ;;  %55 = vst.msk [vmem:[#allocation2 + $0x8] sm:$0xff] %vm44_vm1, %v47_v7  ;;  %56 = vst.msk [vmem:[#allocation2 + $0x10] sm:$0xff] %vm44_vm1, %v48_v8  ;;  %s3650_s2 = smov 120  }
   0x6   :  { %45 = vst.msk [vmem:[%s4766_s12] sm:$0xff] %vm44_vm1, %v43_v5  ;;  %3378 = vmatprep.subr.mxu1 %v4774_v0  ;;  %3389 = vmatprep.subr.mxu0 %v4774_v0  ;;  %v46_v6 = vld [vmem:[%s4767_s3] sm:$0xff] }
   0x7   :  { %54 = vst.msk [vmem:[#allocation2] sm:$0xff] %vm44_vm1, %v46_v6  ;;  %v3134_v9 = vld [vmem:[%s4768_s5] ss:$0 sm:$0xff] }
   0x8   :  { %v368_v14 = vld [vmem:[%s4769_s8] sm:$0xf] }
   0x9   :  { %v3854_v34 = vld [vmem:[%s4770_s10] ss:$0 sm:$0xff] }
   0xa   :  { %v3140_v44 = vld [vmem:[%s4771_s9] ss:$0 sm:$0xff] }
   0xc   :  { %v3839_v20 = vld [vmem:[#allocation2 + $0x8] sm:$0xff]  ;;  %v3845_v21 = vld [vmem:[#allocation2 + $0x10] sm:$0xff] }
   0xe   :  { %v3831_v19 = vld [vmem:[#allocation2] sm:$0xff] }
  0xc3   :  { %v152_v10 = vpop.f32.mrf.mxu0 }
  0xc4   :  { %v153_v11 = vadd.f32 %v3134_v9, %v152_v10  ;;  %v3653_v9 = vmov 0  }
  0xc5   :  { %v3355_v12 = vpop.f32.mrf.mxu0  ;;  %3535 = vset.pattern.permute.xlu0 %v3653_v9  ;;  %3534 = vset.pattern.permute.xlu1 %v3653_v9 }
  0xc6   :  { %3536 = vtanh.f32 %v153_v11 }
  0xd3   :  { %v3537_v13 = vpop.eup %3536 }
  0xd4   :  { %158 = vst.msk [vmem:[%s4766_s12] sm:$0x7] %vm157_vm3, %v3537_v13 }
  0xdb   :  { %v3795_v15 = vld [vmem:[%s4766_s12] ss:$0 sm:$0xff]  ;;  %v3812_v17 = vld [vmem:[%s4766_s12 + $0x1] ss:$0 sm:$0xff]  ;;  %v3824_v18 = vld [vmem:[%s4766_s12 + $0x2] ss:$0 sm:$0xff] }
  0xdc   :  { %v274_v16 = vld [vmem:[%s4766_s12] sm:$0xff]  ;;  %3359 = vmatmul.mubr.msk.f32.vlgmr.msra.gmra.mxu1 %vm44_vm1, %v3795_v15 }
  0xdd   :  { %3370 = vmatmul.mubr.msk.f32.vlgmr.msra.gmra.mxu0 %vm44_vm1, %v274_v16  ;;  %3379 = vmatpush3.msk.msra.mxu1 %vm82_vm0, %v368_v14 }
  0xde   :  { %3361 = vmatprep.mubr.msk.f32.mxu1 %vm3649_vm2, %v4774_v0  ;;  %3372 = vmatprep.mubr.msk.f32.mxu0 %vm3649_vm2, %v4774_v0 }
  0xdf   :  { %3405 = vmatprep.subr.mxu1 %v4774_v0 }
  0xe0   :  { %3362 = vmatmul.mubr.msk.f32.gmra.mxu1 %vm44_vm1, %v3812_v17 }
  0xe1   :  { %3373 = vmatmul.mubr.msk.f32.gmra.mxu0 %vm44_vm1, %v274_v16  ;;  %3364 = vmatprep.mubr.msk.f32.mxu1 %vm3649_vm2, %v4774_v0 }
  0xe2   :  { %3375 = vmatprep.mubr.msk.f32.mxu0 %vm3649_vm2, %v4774_v0 }
  0xe4   :  { %3365 = vmatmul.mubr.msk.f32.gmra.mxu1 %vm44_vm1, %v3824_v18 }
  0xe5   :  { %3376 = vmatmul.mubr.msk.f32.gmra.mxu0 %vm44_vm1, %v274_v16  ;;  %3380 = vmatprep.mubr.msk.f32.mxu1 %vm3649_vm2, %v4774_v0 }
  0xe6   :  { %3391 = vmatprep.mubr.msk.f32.mxu0 %vm3649_vm2, %v4774_v0 }
  0xe8   :  { %3381 = vmatmul.mubr.msk.f32.vlgmr.msra.gmra.mxu1 %vm44_vm1, %v3831_v19 }
  0xe9   :  { %3383 = vmatprep.mubr.msk.f32.mxu1 %vm3649_vm2, %v4774_v0 }
  0xec   :  { %3384 = vmatmul.mubr.msk.f32.gmra.mxu1 %vm44_vm1, %v3839_v20 }
  0xed   :  { %3386 = vmatprep.mubr.msk.f32.mxu1 %vm3649_vm2, %v4774_v0 }
  0xf0   :  { %3387 = vmatmul.mubr.msk.f32.gmra.mxu1 %vm44_vm1, %v3845_v21 }
  0xf1   :  { %3407 = vmatprep.mubr.msk.f32.mxu1 %vm3649_vm2, %v4774_v0 }
 0x19c   :  { %v260_v22 = vpop.f32.mrf.mxu1 }
 0x19d   :  { %v351_v23 = vpop.f32.mrf.mxu0  ;;  %v3865_v45 = vadd.f32 %v3140_v44, %v260_v22 }
 0x19e   :  { %v3360_v24 = vpop.f32.mrf.mxu1 }
 0x19f   :  { %v3371_v25 = vpop.f32.mrf.mxu0  ;;  %v365_v46 = vadd.f32 %v351_v23, %v3865_v45 }
 0x1a0   :  { %v265_v26 = vpop.f32.mrf.mxu1  ;;  %v3887_v25 = vld [vmem:[%s4772_s11] sm:$0xff] }
 0x1a1   :  { %v356_v27 = vpop.f32.mrf.mxu0  ;;  %v3868_v47 = vadd.f32 %v3140_v44, %v265_v26 }
 0x1a2   :  { %v3363_v28 = vpop.f32.mrf.mxu1 }
 0x1a3   :  { %v3374_v29 = vpop.f32.mrf.mxu0  ;;  %v366_v49 = vadd.f32 %v356_v27, %v3868_v47 }
 0x1a4   :  { %v270_v30 = vpop.f32.mrf.mxu1 }
 0x1a5   :  { %v361_v31 = vpop.f32.mrf.mxu0  ;;  %v3871_v50 = vadd.f32 %v3140_v44, %v270_v30 }
 0x1a6   :  { %v3366_v32 = vpop.f32.mrf.mxu1 }
 0x1a7   :  { %v3377_v33 = vpop.f32.mrf.mxu0  ;;  %v367_v53 = vadd.f32 %v361_v31, %v3871_v50  ;;  %v3895_v31 = vstv %s4773_s0 }
 0x1a8   :  { %v454_v35 = vpop.f32.mrf.mxu1 }
 0x1a9   :  { %v455_v36 = vadd.f32 %v3854_v34, %v454_v35 }
 0x1aa   :  { %v3382_v37 = vpop.f32.mrf.mxu1 }
 0x1ab   :  { %492 = vrot.lane.b32.xlu0 %v455_v36, %s3650_s2  ;;  %v468_v48 = vadd.f32 %v455_v36, %v365_v46 }
 0x1ac   :  { %v459_v38 = vpop.f32.mrf.mxu1 }
 0x1ad   :  { %v460_v39 = vadd.f32 %v3854_v34, %v459_v38  ;;  %v3154_v51 = vmul.f32 -1.442695, %v468_v48 }
 0x1ae   :  { %v3385_v40 = vpop.f32.mrf.mxu1 }
 0x1af   :  { %494 = vrot.lane.b32.xlu0 %v460_v39, %s3650_s2  ;;  %v469_v52 = vadd.f32 %v460_v39, %v366_v49  ;;  %3538 = vpow2.f32 %v3154_v51  ;;  %v3910_v51 = vld [vmem:[%s4772_s11 + $0x8] sm:$0xff] }
 0x1b0   :  { %v464_v41 = vpop.f32.mrf.mxu1 }
 0x1b1   :  { %v465_v42 = vadd.f32 %v3854_v34, %v464_v41  ;;  %v3155_v54 = vmul.f32 -1.442695, %v469_v52 }
 0x1b2   :  { %v3388_v43 = vpop.f32.mrf.mxu1 }
 0x1b3   :  { %496 = vrot.lane.b32.xlu1 %v465_v42, %s3650_s2  ;;  %v470_v55 = vadd.f32 %v465_v42, %v367_v53  ;;  %3540 = vpow2.f32 %v3155_v54  ;;  %v3157_v54 = vld [vmem:[%s4761_s4 + $0x4] sm:$0xf] }
 0x1b4   :  { %3390 = vmatpush3.msk.msra.mxu0 %vm82_vm0, %v3157_v54 }
 0x1b5   :  { %v3156_v56 = vmul.f32 -1.442695, %v470_v55  ;;  %3394 = vmatprep.subr.mxu0 %v4774_v0 }
 0x1b7   :  { %3542 = vpow2.f32 %v3156_v56 }
 0x1bc   :  { %v3539_v57 = vpop.eup %3538 }
 0x1bd   :  { %v480_v58 = vadd.f32 1.0, %v3539_v57  ;;  %v613_v57 = vld [vmem:[#allocation3] sm:$0xff] }
 0x1bf   :  { %3544 = vrcp.f32 %v480_v58 }
 0x1c0   :  { %v3541_v59 = vpop.eup %3540 }
 0x1c1   :  { %v481_v60 = vadd.f32 1.0, %v3541_v59 }
 0x1c3   :  { %3546 = vrcp.f32 %v481_v60 }
 0x1c4   :  { %v3543_v61 = vpop.eup %3542 }
 0x1c5   :  { %v482_v62 = vadd.f32 1.0, %v3543_v61 }
 0x1c7   :  { %3548 = vrcp.f32 %v482_v62 }
 0x1cc   :  { %v3545_v63 = vpop.eup %3544 }
 0x1cd   :  { %v522_v27 = vsub.f32 1.0, %v3545_v63 }
 0x1d0   :  { %v3547_v3 = vpop.eup %3546 }
 0x1d1   :  { %v523_v41 = vsub.f32 1.0, %v3547_v3 }
 0x1d4   :  { %v3549_v6 = vpop.eup %3548 }
 0x1d5   :  { %v524_v36 = vsub.f32 1.0, %v3549_v6 }
 0x21d   :  { %v493_v1 = vpop.permute.xlu0 %492 }
 0x21e   :  { %v501_v2 = vmul.f32 %v3545_v63, %v493_v1 }
 0x220   :  { %507 = vrot.lane.b32.xlu1 %v501_v2, %s3651_s18 }
 0x221   :  { %v495_v4 = vpop.permute.xlu0 %494 }
 0x222   :  { %v502_v5 = vmul.f32 %v3547_v3, %v495_v4 }
 0x224   :  { %509 = vrot.lane.b32.xlu0 %v502_v5, %s3651_s18  ;;  %v614_v5 = vld [vmem:[#allocation3 + $0x8] sm:$0xff] }
 0x225   :  { %v497_v7 = vpop.permute.xlu1 %496 }
 0x226   :  { %v503_v8 = vmul.f32 %v3549_v6, %v497_v7 }
 0x228   :  { %511 = vrot.lane.b32.xlu1 %v503_v8, %s3651_s18  ;;  %v615_v8 = vld [vmem:[#allocation3 + $0x10] sm:$0xff] }
 0x22c   :  { %540 = vrot.lane.b32.xlu1 %v3831_v19, %s3652_s19 }
 0x292   :  { %v508_v10 = vpop.permute.xlu1 %507 }
 0x293   :  { %v516_v11 = vadd.f32 %v508_v10, %v365_v46 }
 0x295   :  { %3550 = vtanh.f32 %v516_v11 }
 0x296   :  { %v510_v12 = vpop.permute.xlu0 %509 }
 0x297   :  { %v517_v13 = vadd.f32 %v510_v12, %v366_v49 }
 0x299   :  { %3552 = vtanh.f32 %v517_v13 }
 0x29a   :  { %v512_v14 = vpop.permute.xlu1 %511 }
 0x29b   :  { %v518_v16 = vadd.f32 %v512_v14, %v367_v53  ;;  %v3921_v53 = vld [vmem:[%s4772_s11 + $0x10] sm:$0xff] }
 0x29d   :  { %3554 = vtanh.f32 %v518_v16  ;;  %v3951_v16 = vld [vmem:[#allocation3 + $0x30] sm:$0xff] }
 0x29e   :  { %v541_v26 = vpop.permute.xlu1 %540 }
 0x29f   :  { %v549_v29 = vmul.f32 %v3545_v63, %v541_v26 }
 0x2a2   :  { %v3551_v22 = vpop.eup %3550 }
 0x2a3   :  { %528 = vrot.lane.b32.xlu0 %v3551_v22, %s3654_s20  ;;  %v3953_v22 = vld [vmem:[#allocation3 + $0x38] sm:$0xff] }
 0x2a6   :  { %v3553_v23 = vpop.eup %3552 }
 0x2a7   :  { %530 = vrot.lane.b32.xlu1 %v3553_v23, %s3654_s20 }
 0x2aa   :  { %v3555_v24 = vpop.eup %3554 }
 0x2ab   :  { %544 = vrot.lane.b32.xlu1 %v3845_v21, %s3652_s19  ;;  %532 = vrot.lane.b32.xlu0 %v3555_v24, %s3654_s20  ;;  %v3959_v24 = vadd.f32 %v3953_v22, %v3951_v16 }
 0x2af   :  { %579 = vperm.xlu1 %3534, %v3887_v25   ;;  %542 = vrot.lane.b32.xlu0 %v3839_v20, %s3652_s19 }
 0x315   :  { %v529_v28 = vpop.permute.xlu0 %528 }
 0x316   :  { %v537_v30 = vmul.f32 %v529_v28, %v522_v27  ;;  %v3963_v27 = vld [vmem:[#allocation3 + $0x18] sm:$0xff] }
 0x318   :  { %v552_v32 = vadd.f32 %v549_v29, %v537_v30 }
 0x319   :  { %v531_v33 = vpop.permute.xlu1 %530 }
 0x31a   :  { %v3898_v35 = vmul.f32 %v3895_v31, %v552_v32  ;;  %v538_v44 = vmul.f32 %v531_v33, %v523_v41  ;;  %v49_v41 = vld [vmem:[%s4767_s3 + $0x18] sm:$0xff] }
 0x31b   :  { %57 = vst.msk [vmem:[#allocation2 + $0x18] sm:$0xff] %vm44_vm1, %v49_v41 }
 0x31c   :  { %562 = vrot.lane.b32.xlu0 %v3898_v35, %s3654_s20 }
 0x31d   :  { %v533_v37 = vpop.permute.xlu0 %532  ;;  %v545_v38 = vpop.permute.xlu1 %544 }
 0x31e   :  { %v539_v39 = vmul.f32 %v533_v37, %v524_v36  ;;  %v551_v40 = vmul.f32 %v3549_v6, %v545_v38 }
 0x320   :  { %v554_v42 = vadd.f32 %v551_v40, %v539_v39  ;;  %v3165_v39 = vld [vmem:[%s4763_s6 + $0x4] sm:$0xf] }
 0x321   :  { %v543_v43 = vpop.permute.xlu0 %542  ;;  %v3172_v40 = vld [vmem:[%s4764_s7 + $0x4] sm:$0xf] }
 0x322   :  { %v550_v46 = vmul.f32 %v3547_v3, %v543_v43  ;;  %v3903_v48 = vmul.f32 %v3895_v31, %v554_v42  ;;  %3406 = vmatpush3.msk.msra.mxu1 %vm82_vm0, %v3172_v40  ;;  %v50_v42 = vld [vmem:[%s4767_s3 + $0x20] sm:$0xff]  ;;  %v51_v43 = vld [vmem:[%s4767_s3 + $0x28] sm:$0xff] }
 0x323   :  { %3427 = vmatprep.subr.mxu1 %v4774_v0  ;;  %58 = vst.msk [vmem:[#allocation2 + $0x20] sm:$0xff] %vm44_vm1, %v50_v42  ;;  %59 = vst.msk [vmem:[#allocation2 + $0x28] sm:$0xff] %vm44_vm1, %v51_v43 }
 0x324   :  { %v553_v49 = vadd.f32 %v550_v46, %v538_v44  ;;  %566 = vrot.lane.b32.xlu0 %v3903_v48, %s3654_s20  ;;  %v4005_v44 = vld [vmem:[%s4768_s5 + $0x1] ss:$0 sm:$0xff] }
 0x326   :  { %v3913_v52 = vmul.f32 %v3895_v31, %v553_v49 }
 0x328   :  { %564 = vrot.lane.b32.xlu1 %v3913_v52, %s3654_s20  ;;  %584 = vperm.xlu0 %3535, %v3910_v51  }
 0x32a   :  { %v3931_v60 = vpop.permute.xlu1 %579 }
 0x32c   :  { %589 = vperm.xlu1 %3534, %v3921_v53  }
 0x38e   :  { %v563_v55 = vpop.permute.xlu0 %562 }
 0x38f   :  { %v571_v56 = vadd.f32 %v563_v55, %v3831_v19 }
 0x391   :  { %v616_v58 = vmul.f32 %v3795_v15, %v571_v56  ;;  %v3177_v56 = vld [vmem:[%s4769_s8 + $0x4] sm:$0xf] }
 0x393   :  { %v619_v59 = vsub.f32 %v616_v58, %v613_v57 }
 0x395   :  { %v622_v61 = vmul.f32 %v619_v59, %v3931_v60 }
 0x396   :  { %v567_v1 = vpop.permute.xlu0 %566 }
 0x397   :  { %v625_v62 = vadd.f32 %v622_v61, %v613_v57  ;;  %v573_v3 = vadd.f32 %v567_v1, %v3845_v21  ;;  %v4067_v1 = vld [vmem:[#allocation2 + $0x28] sm:$0xff] }
 0x399   :  { %628 = vst.msk [vmem:[#allocation3] sm:$0xff] %vm44_vm1, %v625_v62  ;;  %v618_v6 = vmul.f32 %v3824_v18, %v573_v3  ;;  %v3949_v18 = vld [vmem:[#allocation3 + $0x28] sm:$0xff]  ;;  %v4053_v62 = vld [vmem:[#allocation2 + $0x18] sm:$0xff] }
 0x39a   :  { %v565_v63 = vpop.permute.xlu1 %564 }
 0x39b   :  { %v572_v2 = vadd.f32 %v565_v63, %v3839_v20  ;;  %v621_v11 = vsub.f32 %v618_v6, %v615_v8  ;;  %v4061_v63 = vld [vmem:[#allocation2 + $0x20] sm:$0xff] }
 0x39d   :  { %v617_v4 = vmul.f32 %v3812_v17, %v572_v2  ;;  %v3947_v17 = vld [vmem:[#allocation3 + $0x20] sm:$0xff] }
 0x39e   :  { %v641_v23 = vadd.f32 %v3949_v18, %v3947_v17  ;;  %v4074_v2 = vld [vmem:[%s4771_s9 + $0x1] ss:$0 sm:$0xff] }
 0x39f   :  { %v620_v15 = vsub.f32 %v617_v4, %v614_v5 }
 0x3a0   :  { %v3965_v28 = vld [vmem:[#allocation3] sm:$0xff]  ;;  %v644_v33 = vadd.f32 %v3959_v24, %v641_v23 }
 0x3a3   :  { %v3939_v7 = vpop.permute.xlu0 %584 }
 0x3a4   :  { %v623_v9 = vmul.f32 %v620_v15, %v3939_v7 }
 0x3a6   :  { %v626_v10 = vadd.f32 %v623_v9, %v614_v5 }
 0x3a7   :  { %v3942_v12 = vpop.permute.xlu1 %589 }
 0x3a8   :  { %629 = vst.msk [vmem:[#allocation3 + $0x8] sm:$0xff] %vm44_vm1, %v626_v10  ;;  %v624_v13 = vmul.f32 %v621_v11, %v3942_v12 }
 0x3aa   :  { %v627_v14 = vadd.f32 %v624_v13, %v615_v8 }
 0x3ac   :  { %630 = vst.msk [vmem:[#allocation3 + $0x10] sm:$0xff] %vm44_vm1, %v627_v14 }
 0x3af   :  { %v3961_v26 = vld [vmem:[#allocation3 + $0x8] sm:$0xff] }
 0x3b0   :  { %v3971_v30 = vadd.f32 %v3961_v26, %v3965_v28 }
 0x3b3   :  { %v3967_v29 = vld [vmem:[#allocation3 + $0x10] sm:$0xff] }
 0x3b4   :  { %v640_v32 = vadd.f32 %v3963_v27, %v3967_v29 }
 0x3b6   :  { %v643_v36 = vadd.f32 %v640_v32, %v3971_v30 }
 0x3b8   :  { %v645_v37 = vadd.f32 %v644_v33, %v643_v36 }
 0x3ba   :  { %v657_v38 = vrot.slane %v645_v37, 3 }
 0x3bc   :  { %3392 = vmatmul.mubr.msk.f32.vlgmr.msra.gmra.mxu0 %vm44_vm1, %v657_v38 }
 0x3bd   :  { %3396 = vmatprep.mubr.msk.f32.mxu0 %vm3649_vm2, %v4774_v0  ;;  %3395 = vmatpush3.msk.msra.mxu0 %vm82_vm0, %v3165_v39  ;;  %v4082_v39 = vld [vmem:[%s4770_s10 + $0x1] ss:$0 sm:$0xff] }
 0x3be   :  { %3416 = vmatprep.subr.mxu0 %v4774_v0 }
 0x47c   :  { %v729_v46 = vpop.f32.mrf.mxu0 }
 0x47d   :  { %v730_v49 = vadd.f32 %v4005_v44, %v729_v46 }
 0x47e   :  { %v3393_v54 = vpop.f32.mrf.mxu0 }
 0x47f   :  { %3556 = vtanh.f32 %v730_v49 }
 0x48c   :  { %v3557_v55 = vpop.eup %3556 }
 0x48d   :  { %734 = vst.msk [vmem:[%s4766_s12 + $0x3] sm:$0x7] %vm157_vm3, %v3557_v55 }
 0x494   :  { %v4018_v57 = vld [vmem:[%s4766_s12 + $0x3] ss:$0 sm:$0xff]  ;;  %v4034_v59 = vld [vmem:[%s4766_s12 + $0x4] ss:$0 sm:$0xff]  ;;  %v4046_v61 = vld [vmem:[%s4766_s12 + $0x5] ss:$0 sm:$0xff] }
 0x495   :  { %v852_v58 = vld [vmem:[%s4766_s12] sm:$0xff]  ;;  %3397 = vmatmul.mubr.msk.f32.vlgmr.msra.gmra.mxu0 %vm44_vm1, %v4018_v57 }
 0x496   :  { %3408 = vmatmul.mubr.msk.f32.vlgmr.msra.gmra.mxu1 %vm44_vm1, %v852_v58  ;;  %3417 = vmatpush3.msk.msra.mxu0 %vm82_vm0, %v3177_v56 }
 0x497   :  { %3399 = vmatprep.mubr.msk.f32.mxu0 %vm3649_vm2, %v4774_v0  ;;  %3410 = vmatprep.mubr.msk.f32.mxu1 %vm3649_vm2, %v4774_v0 }
 0x499   :  { %3400 = vmatmul.mubr.msk.f32.gmra.mxu0 %vm44_vm1, %v4034_v59 }
 0x49a   :  { %3411 = vmatmul.mubr.msk.f32.gmra.mxu1 %vm44_vm1, %v852_v58  ;;  %3402 = vmatprep.mubr.msk.f32.mxu0 %vm3649_vm2, %v4774_v0 }
 0x49b   :  { %3413 = vmatprep.mubr.msk.f32.mxu1 %vm3649_vm2, %v4774_v0 }
 0x49d   :  { %3403 = vmatmul.mubr.msk.f32.gmra.mxu0 %vm44_vm1, %v4046_v61 }
 0x49e   :  { %3414 = vmatmul.mubr.msk.f32.gmra.mxu1 %vm44_vm1, %v852_v58  ;;  %3418 = vmatprep.mubr.msk.f32.mxu0 %vm3649_vm2, %v4774_v0 }
 0x49f   :  { %3429 = vmatprep.mubr.msk.f32.mxu1 %vm3649_vm2, %v4774_v0 }
 0x4a1   :  { %3419 = vmatmul.mubr.msk.f32.vlgmr.msra.gmra.mxu0 %vm44_vm1, %v4053_v62 }
 0x4a2   :  { %3421 = vmatprep.mubr.msk.f32.mxu0 %vm3649_vm2, %v4774_v0 }
 0x4a5   :  { %3422 = vmatmul.mubr.msk.f32.gmra.mxu0 %vm44_vm1, %v4061_v63 }
 0x4a6   :  { %3424 = vmatprep.mubr.msk.f32.mxu0 %vm3649_vm2, %v4774_v0 }
 0x4a9   :  { %3425 = vmatmul.mubr.msk.f32.gmra.mxu0 %vm44_vm1, %v4067_v1 }
 0x555   :  { %v838_v3 = vpop.f32.mrf.mxu0 }
 0x556   :  { %v930_v4 = vpop.f32.mrf.mxu1  ;;  %v839_v5 = vadd.f32 %v4074_v2, %v838_v3 }
 0x557   :  { %v3398_v6 = vpop.f32.mrf.mxu0 }
 0x558   :  { %v3409_v15 = vpop.f32.mrf.mxu1  ;;  %v944_v8 = vadd.f32 %v930_v4, %v839_v5 }
 0x559   :  { %v843_v9 = vpop.f32.mrf.mxu0 }
 0x55a   :  { %v935_v10 = vpop.f32.mrf.mxu1  ;;  %v844_v11 = vadd.f32 %v4074_v2, %v843_v9 }
 0x55b   :  { %v3401_v13 = vpop.f32.mrf.mxu0 }
 0x55c   :  { %v3412_v14 = vpop.f32.mrf.mxu1  ;;  %v945_v23 = vadd.f32 %v935_v10, %v844_v11 }
 0x55d   :  { %v848_v32 = vpop.f32.mrf.mxu0 }
 0x55e   :  { %v940_v33 = vpop.f32.mrf.mxu1  ;;  %v849_v36 = vadd.f32 %v4074_v2, %v848_v32 }
 0x55f   :  { %v3404_v37 = vpop.f32.mrf.mxu0 }
 0x560   :  { %v3415_v38 = vpop.f32.mrf.mxu1  ;;  %v946_v40 = vadd.f32 %v940_v33, %v849_v36 }
 0x561   :  { %v1035_v41 = vpop.f32.mrf.mxu0 }
 0x562   :  { %v1036_v42 = vadd.f32 %v4082_v39, %v1035_v41 }
 0x563   :  { %v3420_v43 = vpop.f32.mrf.mxu0 }
 0x564   :  { %1073 = vrot.lane.b32.xlu1 %v1036_v42, %s3650_s2  ;;  %v1049_v3 = vadd.f32 %v1036_v42, %v944_v8 }
 0x565   :  { %v1040_v46 = vpop.f32.mrf.mxu0 }
 0x566   :  { %v1041_v49 = vadd.f32 %v4082_v39, %v1040_v46  ;;  %v3184_v4 = vmul.f32 -1.442695, %v1049_v3 }
 0x567   :  { %v3423_v54 = vpop.f32.mrf.mxu0 }
 0x568   :  { %1075 = vrot.lane.b32.xlu0 %v1041_v49, %s3650_s2  ;;  %v1050_v5 = vadd.f32 %v1041_v49, %v945_v23  ;;  %3558 = vpow2.f32 %v3184_v4 }
 0x569   :  { %v1045_v55 = vpop.f32.mrf.mxu0 }
 0x56a   :  { %v1046_v56 = vadd.f32 %v4082_v39, %v1045_v55  ;;  %v3185_v6 = vmul.f32 -1.442695, %v1050_v5 }
 0x56b   :  { %v3426_v58 = vpop.f32.mrf.mxu0 }
 0x56c   :  { %1077 = vrot.lane.b32.xlu1 %v1046_v56, %s3650_s2  ;;  %v1051_v15 = vadd.f32 %v1046_v56, %v946_v40  ;;  %3560 = vpow2.f32 %v3185_v6 }
 0x56e   :  { %v3186_v9 = vmul.f32 -1.442695, %v1051_v15 }
 0x570   :  { %3562 = vpow2.f32 %v3186_v9 }
 0x575   :  { %v3559_v10 = vpop.eup %3558 }
 0x576   :  { %v1061_v11 = vadd.f32 1.0, %v3559_v10 }
 0x578   :  { %3564 = vrcp.f32 %v1061_v11 }
 0x579   :  { %v3561_v13 = vpop.eup %3560 }
 0x57a   :  { %v1062_v14 = vadd.f32 1.0, %v3561_v13 }
 0x57c   :  { %3566 = vrcp.f32 %v1062_v14 }
 0x57d   :  { %v3563_v32 = vpop.eup %3562 }
 0x57e   :  { %v1063_v33 = vadd.f32 1.0, %v3563_v32 }
 0x580   :  { %3568 = vrcp.f32 %v1063_v33 }
 0x585   :  { %v3565_v36 = vpop.eup %3564 }
 0x589   :  { %v3567_v41 = vpop.eup %3566 }
 0x58d   :  { %v3569_v46 = vpop.eup %3568 }
 0x5d6   :  { %v1074_v37 = vpop.permute.xlu1 %1073 }
 0x5d7   :  { %v1082_v38 = vmul.f32 %v3565_v36, %v1074_v37  ;;  %v1105_v37 = vsub.f32 1.0, %v3569_v46 }
 0x5d9   :  { %1088 = vrot.lane.b32.xlu0 %v1082_v38, %s3651_s18 }
 0x5da   :  { %v1076_v42 = vpop.permute.xlu0 %1075 }
 0x5db   :  { %v1083_v43 = vmul.f32 %v3567_v41, %v1076_v42 }
 0x5dd   :  { %1090 = vrot.lane.b32.xlu1 %v1083_v43, %s3651_s18 }
 0x5de   :  { %v1078_v49 = vpop.permute.xlu1 %1077 }
 0x5df   :  { %v1084_v54 = vmul.f32 %v3569_v46, %v1078_v49 }
 0x5e1   :  { %1092 = vrot.lane.b32.xlu0 %v1084_v54, %s3651_s18  ;;  %v1104_v54 = vsub.f32 1.0, %v3567_v41 }
 0x5e5   :  { %1121 = vrot.lane.b32.xlu0 %v4053_v62, %s3652_s19 }
 0x64b   :  { %v1089_v55 = vpop.permute.xlu0 %1088 }
 0x64c   :  { %v1097_v56 = vadd.f32 %v1089_v55, %v944_v8  ;;  %v4103_v8 = vld [vmem:[%s4772_s11 + $0x18] sm:$0xff] }
 0x64e   :  { %3570 = vtanh.f32 %v1097_v56 }
 0x64f   :  { %v1091_v58 = vpop.permute.xlu1 %1090 }
 0x650   :  { %v1098_v3 = vadd.f32 %v1091_v58, %v945_v23 }
 0x652   :  { %3572 = vtanh.f32 %v1098_v3 }
 0x653   :  { %v1093_v4 = vpop.permute.xlu0 %1092 }
 0x654   :  { %v1099_v5 = vadd.f32 %v1093_v4, %v946_v40  ;;  %v1103_v40 = vsub.f32 1.0, %v3565_v36 }
 0x656   :  { %3574 = vtanh.f32 %v1099_v5  ;;  %v4121_v5 = vld [vmem:[%s4772_s11 + $0x20] sm:$0xff] }
 0x657   :  { %v1122_v23 = vpop.permute.xlu0 %1121 }
 0x658   :  { %v1130_v11 = vmul.f32 %v3565_v36, %v1122_v23  ;;  %v3187_v23 = vld [vmem:[%s4761_s4 + $0x8] sm:$0xf] }
 0x659   :  { %3428 = vmatpush3.msk.msra.mxu1 %vm82_vm0, %v3187_v23 }
 0x65b   :  { %v3571_v6 = vpop.eup %3570 }
 0x65c   :  { %1109 = vrot.lane.b32.xlu1 %v3571_v6, %s3654_s20 }
 0x65f   :  { %v3573_v15 = vpop.eup %3572 }
 0x660   :  { %1111 = vrot.lane.b32.xlu0 %v3573_v15, %s3654_s20  ;;  %v593_v15 = vmul.f32 %v3939_v7, %v3913_v52 }
 0x663   :  { %v3575_v9 = vpop.eup %3574 }
 0x664   :  { %1125 = vrot.lane.b32.xlu0 %v4067_v1, %s3652_s19  ;;  %1113 = vrot.lane.b32.xlu1 %v3575_v9, %s3654_s20  ;;  %v594_v9 = vmul.f32 %v3942_v12, %v3903_v48 }
 0x668   :  { %1159 = vperm.xlu0 %3535, %v4103_v8   ;;  %1123 = vrot.lane.b32.xlu1 %v4061_v63, %s3652_s19 }
 0x6ce   :  { %v1110_v10 = vpop.permute.xlu1 %1109 }
 0x6cf   :  { %v1118_v13 = vmul.f32 %v1110_v10, %v1103_v40 }
 0x6d1   :  { %v1133_v14 = vadd.f32 %v1130_v11, %v1118_v13 }
 0x6d2   :  { %v1112_v32 = vpop.permute.xlu0 %1111 }
 0x6d3   :  { %v4109_v33 = vmul.f32 %v1133_v14, %v3895_v31  ;;  %v1119_v58 = vmul.f32 %v1112_v32, %v1104_v54 }
 0x6d5   :  { %1142 = vrot.lane.b32.xlu1 %v4109_v33, %s3654_s20 }
 0x6d6   :  { %v1114_v38 = vpop.permute.xlu1 %1113  ;;  %v1126_v42 = vpop.permute.xlu0 %1125 }
 0x6d7   :  { %v1120_v43 = vmul.f32 %v1114_v38, %v1105_v37  ;;  %v1132_v49 = vmul.f32 %v3569_v46, %v1126_v42  ;;  %v592_v46 = vmul.f32 %v3931_v60, %v3898_v35 }
 0x6d9   :  { %v1135_v55 = vadd.f32 %v1132_v49, %v1120_v43 }
 0x6da   :  { %v1124_v56 = vpop.permute.xlu1 %1123 }
 0x6db   :  { %v1131_v3 = vmul.f32 %v3567_v41, %v1124_v56  ;;  %v4114_v36 = vmul.f32 %v1135_v55, %v3895_v31  ;;  %v4132_v41 = vld [vmem:[%s4772_s11 + $0x28] sm:$0xff] }
 0x6dd   :  { %v1134_v4 = vadd.f32 %v1131_v3, %v1119_v58  ;;  %1146 = vrot.lane.b32.xlu1 %v4114_v36, %s3654_s20 }
 0x6df   :  { %v4124_v6 = vmul.f32 %v1134_v4, %v3895_v31 }
 0x6e1   :  { %1144 = vrot.lane.b32.xlu0 %v4124_v6, %s3654_s20  ;;  %1164 = vperm.xlu1 %3534, %v4121_v5  }
 0x6e3   :  { %v4151_v7 = vpop.permute.xlu0 %1159 }
 0x6e5   :  { %1169 = vperm.xlu0 %3535, %v4132_v41   ;;  %598 = vrot.lane.b32.xlu1 %v592_v46, %s3654_s20 }
 0x6e9   :  { %600 = vrot.lane.b32.xlu0 %v593_v15, %s3654_s20  ;;  %602 = vrot.lane.b32.xlu1 %v594_v9, %s3654_s20 }
 0x747   :  { %v1143_v35 = vpop.permute.xlu1 %1142 }
 0x748   :  { %v1151_v60 = vadd.f32 %v1143_v35, %v4053_v62  ;;  %v3194_v35 = vld [vmem:[%s4763_s6 + $0x8] sm:$0xf] }
 0x749   :  { %3432 = vmatprep.subr.msk.mxu1 %vm82_vm0, %v3194_v35 }
 0x74a   :  { %v1196_v40 = vmul.f32 %v4018_v57, %v1151_v60  ;;  %v3200_v60 = vld [vmem:[%s4764_s7 + $0x8] sm:$0xf] }
 0x74b   :  { %3437 = vmatprep.subr.msk.mxu0 %vm82_vm0, %v3200_v60 }
 0x74c   :  { %v1199_v52 = vsub.f32 %v1196_v40, %v3963_v27  ;;  %3438 = vmatpush3.msk.msra.mxu0 %vm82_vm0, %v3200_v60  ;;  %v3204_v40 = vld [vmem:[%s4769_s8 + $0x8] sm:$0xf] }
 0x74d   :  { %3447 = vmatprep.subr.mxu0 %v4774_v0 }
 0x74e   :  { %v1202_v48 = vmul.f32 %v1199_v52, %v4151_v7  ;;  %v4220_v52 = vld [vmem:[%s4768_s5 + $0x2] ss:$0 sm:$0xff] }
 0x74f   :  { %v1147_v11 = vpop.permute.xlu1 %1146 }
 0x750   :  { %v1205_v12 = vadd.f32 %v1202_v48, %v3963_v27  ;;  %v1153_v14 = vadd.f32 %v1147_v11, %v4067_v1 }
 0x752   :  { %1208 = vst.msk [vmem:[#allocation3 + $0x18] sm:$0xff] %vm44_vm1, %v1205_v12  ;;  %v1198_v57 = vmul.f32 %v4046_v61, %v1153_v14 }
 0x753   :  { %v1145_v10 = vpop.permute.xlu0 %1144 }
 0x754   :  { %v1152_v13 = vadd.f32 %v1145_v10, %v4061_v63  ;;  %v1201_v43 = vsub.f32 %v1198_v57, %v3949_v18 }
 0x756   :  { %v1197_v32 = vmul.f32 %v4034_v59, %v1152_v13 }
 0x758   :  { %v1200_v37 = vsub.f32 %v1197_v32, %v3947_v17 }
 0x759   :  { %v4178_v4 = vld [vmem:[#allocation3 + $0x18] sm:$0xff] }
 0x75c   :  { %v4161_v38 = vpop.permute.xlu1 %1164 }
 0x75d   :  { %v1203_v42 = vmul.f32 %v1200_v37, %v4161_v38  ;;  %v1714_v37 = vld [vmem:[%s4764_s7] sm:$0xf] }
 0x75f   :  { %v1206_v27 = vadd.f32 %v1203_v42, %v3947_v17 }
 0x760   :  { %v4166_v49 = vpop.permute.xlu0 %1169  ;;  %v599_v54 = vpop.permute.xlu1 %598 }
 0x761   :  { %1209 = vst.msk [vmem:[#allocation3 + $0x20] sm:$0xff] %vm44_vm1, %v1206_v27  ;;  %v1204_v55 = vmul.f32 %v1201_v43, %v4166_v49  ;;  %v607_v59 = vadd.f32 %v599_v54, %v3831_v19  ;;  %v1220_v19 = vadd.f32 %v4178_v4, %v3967_v29  ;;  %v1804_v27 = vld [vmem:[%s4769_s8] sm:$0xf] }
 0x763   :  { %v1207_v61 = vadd.f32 %v1204_v55, %v3949_v18  ;;  %610 = vst.msk [vmem:[#allocation2] sm:$0xff] %vm44_vm1, %v607_v59  ;;  %v4300_v59 = vld [vmem:[%s4771_s9 + $0x2] ss:$0 sm:$0xff] }
 0x764   :  { %v601_v56 = vpop.permute.xlu0 %600  ;;  %v603_v58 = vpop.permute.xlu1 %602 }
 0x765   :  { %1210 = vst.msk [vmem:[#allocation3 + $0x28] sm:$0xff] %vm44_vm1, %v1207_v61  ;;  %v608_v17 = vadd.f32 %v601_v56, %v3839_v20  ;;  %v609_v3 = vadd.f32 %v603_v58, %v3845_v21  ;;  %v1223_v20 = vadd.f32 %v1220_v19, %v3971_v30  ;;  %v53_v30 = vld [vmem:[%s4767_s3 + $0x38] sm:$0xff]  ;;  %v4306_v19 = vld [vmem:[%s4770_s10 + $0x2] ss:$0 sm:$0xff] }
 0x766   :  { %61 = vst.msk [vmem:[#allocation2 + $0x38] sm:$0xff] %vm44_vm1, %v53_v30 }
 0x767   :  { %611 = vst.msk [vmem:[#allocation2 + $0x8] sm:$0xff] %vm44_vm1, %v608_v17  ;;  %612 = vst.msk [vmem:[#allocation2 + $0x10] sm:$0xff] %vm44_vm1, %v609_v3 }
 0x768   :  { %v4182_v18 = vld [vmem:[#allocation3 + $0x20] sm:$0xff] }
 0x76a   :  { %v4273_v43 = vld [vmem:[#allocation2] sm:$0xff] }
 0x76c   :  { %v4184_v46 = vld [vmem:[#allocation3 + $0x28] sm:$0xff] }
 0x76d   :  { %v4188_v15 = vadd.f32 %v4184_v46, %v4182_v18  ;;  %v4254_v42 = vld [vmem:[#allocation2 + $0x38] sm:$0xff] }
 0x76e   :  { %v4282_v54 = vld [vmem:[#allocation2 + $0x8] sm:$0xff]  ;;  %v4291_v55 = vld [vmem:[#allocation2 + $0x10] sm:$0xff] }
 0x76f   :  { %v1224_v21 = vadd.f32 %v4188_v15, %v3959_v24  ;;  %v52_v24 = vld [vmem:[%s4767_s3 + $0x30] sm:$0xff] }
 0x770   :  { %60 = vst.msk [vmem:[#allocation2 + $0x30] sm:$0xff] %vm44_vm1, %v52_v24 }
 0x771   :  { %v1225_v9 = vadd.f32 %v1224_v21, %v1223_v20 }
 0x773   :  { %v1237_v23 = vrot.slane %v1225_v9, 6 }
 0x775   :  { %3430 = vmatmul.mubr.msk.f32.vlgmr.msra.gmra.mxu1 %vm44_vm1, %v1237_v23 }
 0x776   :  { %3433 = vmatpush3.msk.msra.mxu1 %vm82_vm0, %v3194_v35 }
 0x777   :  { %3442 = vmatprep.subr.msk.mxu1 %vm82_vm0, %v3204_v40  ;;  %v4227_v13 = vld [vmem:[#allocation2 + $0x30] sm:$0xff] }
 0x835   :  { %v1309_v48 = vpop.f32.mrf.mxu1 }
 0x836   :  { %v1310_v12 = vadd.f32 %v4220_v52, %v1309_v48 }
 0x837   :  { %v3431_v10 = vpop.f32.mrf.mxu1 }
 0x838   :  { %3576 = vtanh.f32 %v1310_v12 }
 0x845   :  { %v3577_v11 = vpop.eup %3576 }
 0x846   :  { %1315 = vst.msk [vmem:[%s4766_s12 + $0x6] sm:$0x3] %vm1314_vm4, %v3577_v11 }
 0x84d   :  { %v4232_v14 = vld [vmem:[%s4766_s12 + $0x6] ss:$0 sm:$0xff]  ;;  %v4240_v57 = vld [vmem:[%s4766_s12 + $0x7] ss:$0 sm:$0xff] }
 0x84e   :  { %v1420_v32 = vld [vmem:[%s4766_s12] sm:$0xff]  ;;  %3434 = vmatprep.mubr.msk.f32.mxu1 %vm44_vm1, %v4232_v14 }
 0x84f   :  { %3439 = vmatprep.mubr.msk.f32.mxu0 %vm44_vm1, %v1420_v32  ;;  %3435 = vmatmul.mubr.msk.f32.vlgmr.msra.gmra.mxu1 %vm44_vm1, %v4240_v57 }
 0x850   :  { %3440 = vmatmul.mubr.msk.f32.vlgmr.msra.gmra.mxu0 %vm44_vm1, %v1420_v32  ;;  %3443 = vmatpush3.msk.msra.mxu1 %vm82_vm0, %v3204_v40 }
 0x851   :  { %3444 = vmatprep.mubr.msk.f32.mxu1 %vm44_vm1, %v4227_v13  ;;  %3448 = vmatpush3.msk.msra.mxu0 %vm82_vm0, %v1714_v37 }
 0x852   :  { %3449 = vmatprep.mubr.msk.f32.mxu0 %vm3649_vm2, %v4774_v0  ;;  %3458 = vmatprep.subr.mxu1 %v4774_v0 }
 0x853   :  { %3469 = vmatprep.subr.mxu0 %v4774_v0  ;;  %3445 = vmatmul.mubr.msk.f32.vlgmr.msra.gmra.mxu1 %vm44_vm1, %v4254_v42 }
 0x854   :  { %3450 = vmatmul.mubr.msk.f32.vlgmr.msra.gmra.mxu0 %vm44_vm1, %v1420_v32  ;;  %3459 = vmatpush3.msk.msra.mxu1 %vm82_vm0, %v1804_v27 }
 0x855   :  { %3452 = vmatprep.mubr.msk.f32.mxu0 %vm3649_vm2, %v4774_v0  ;;  %3460 = vmatprep.mubr.msk.f32.mxu1 %vm3649_vm2, %v4774_v0 }
 0x856   :  { %3474 = vmatprep.subr.mxu1 %v4774_v0 }
 0x857   :  { %3461 = vmatmul.mubr.msk.f32.vlgmr.msra.gmra.mxu1 %vm44_vm1, %v4273_v43 }
 0x858   :  { %3453 = vmatmul.mubr.msk.f32.gmra.mxu0 %vm44_vm1, %v1420_v32  ;;  %3463 = vmatprep.mubr.msk.f32.mxu1 %vm3649_vm2, %v4774_v0 }
 0x859   :  { %3455 = vmatprep.mubr.msk.f32.mxu0 %vm3649_vm2, %v4774_v0 }
 0x85b   :  { %3464 = vmatmul.mubr.msk.f32.gmra.mxu1 %vm44_vm1, %v4282_v54 }
 0x85c   :  { %3456 = vmatmul.mubr.msk.f32.gmra.mxu0 %vm44_vm1, %v1420_v32  ;;  %3466 = vmatprep.mubr.msk.f32.mxu1 %vm3649_vm2, %v4774_v0 }
 0x85d   :  { %3471 = vmatprep.mubr.msk.f32.mxu0 %vm3649_vm2, %v4774_v0 }
 0x85f   :  { %3467 = vmatmul.mubr.msk.f32.gmra.mxu1 %vm44_vm1, %v4291_v55 }
 0x860   :  { %3476 = vmatprep.mubr.msk.f32.mxu1 %vm3649_vm2, %v4774_v0 }
 0x90f   :  { %v3436_v61 = vpop.f32.mrf.mxu1 }
 0x910   :  { %v3441_v56 = vpop.f32.mrf.mxu0  ;;  %v1417_v58 = vadd.f32 %v3436_v61, %v4300_v59 }
 0x911   :  { %v1411_v17 = vpop.f32.mrf.mxu1 }
 0x912   :  { %v1497_v3 = vpop.f32.mrf.mxu0  ;;  %v4308_v20 = vadd.f32 %v3441_v56, %v1417_v58  ;;  %v1412_v21 = vadd.f32 %v4300_v59, %v1411_v17 }
 0x913   :  { %v3446_v9 = vpop.f32.mrf.mxu1 }
 0x914   :  { %v1787_v23 = vpop.f32.mrf.mxu0  ;;  %v4311_v35 = vadd.f32 %v1497_v3, %v1412_v21  ;;  %v1599_v60 = vadd.f32 %v3446_v9, %v4306_v19 }
 0x915   :  { %v1593_v24 = vpop.f32.mrf.mxu1 }
 0x916   :  { %v3451_v30 = vpop.f32.mrf.mxu0  ;;  %v1594_v40 = vadd.f32 %v4306_v19, %v1593_v24  ;;  %1620 = vrot.lane.b32.xlu1 %v1599_v60, %s3650_s2  ;;  %v1603_v9 = vadd.f32 %v1599_v60, %v4308_v20 }
 0x917   :  { %v1890_v12 = vpop.f32.mrf.mxu1 }
 0x918   :  { %v1792_v48 = vpop.f32.mrf.mxu0  ;;  %1618 = vrot.lane.b32.xlu0 %v1594_v40, %s3650_s2  ;;  %v1891_v32 = vadd.f32 %v3854_v34, %v1890_v12  ;;  %v1602_v24 = vadd.f32 %v1594_v40, %v4311_v35  ;;  %v3211_v30 = vmul.f32 -1.442695, %v1603_v9  ;;  %v1801_v12 = vadd.f32 %v1787_v23, %v3865_v45 }
 0x919   :  { %v3462_v11 = vpop.f32.mrf.mxu1 }
 0x91a   :  { %v3454_v10 = vpop.f32.mrf.mxu0  ;;  %v1802_v11 = vadd.f32 %v1792_v48, %v3868_v47  ;;  %3578 = vpow2.f32 %v3211_v30 }
 0x91b   :  { %v1895_v27 = vpop.f32.mrf.mxu1  ;;  %v3210_v10 = vmul.f32 -1.442695, %v1602_v24 }
 0x91c   :  { %v1797_v37 = vpop.f32.mrf.mxu0  ;;  %v1896_v61 = vadd.f32 %v3854_v34, %v1895_v27  ;;  %1928 = vrot.lane.b32.xlu0 %v1891_v32, %s3650_s2  ;;  %v1904_v27 = vadd.f32 %v1891_v32, %v1801_v12 }
 0x91d   :  { %v3465_v58 = vpop.f32.mrf.mxu1  ;;  %3580 = vpow2.f32 %v3210_v10 }
 0x91e   :  { %v3457_v56 = vpop.f32.mrf.mxu0  ;;  %1930 = vrot.lane.b32.xlu1 %v1896_v61, %s3650_s2  ;;  %v3221_v58 = vmul.f32 -1.442695, %v1904_v27 }
 0x91f   :  { %v1900_v17 = vpop.f32.mrf.mxu1  ;;  %v1905_v56 = vadd.f32 %v1896_v61, %v1802_v11 }
 0x920   :  { %v1901_v3 = vadd.f32 %v3854_v34, %v1900_v17  ;;  %v1803_v34 = vadd.f32 %v1797_v37, %v3871_v50  ;;  %3582 = vpow2.f32 %v3221_v58 }
 0x921   :  { %v3468_v21 = vpop.f32.mrf.mxu1  ;;  %v3222_v17 = vmul.f32 -1.442695, %v1905_v56 }
 0x922   :  { %1932 = vrot.lane.b32.xlu0 %v1901_v3, %s3650_s2  ;;  %v1906_v21 = vadd.f32 %v1901_v3, %v1803_v34 }
 0x923   :  { %3584 = vpow2.f32 %v3222_v17 }
 0x924   :  { %v3223_v60 = vmul.f32 -1.442695, %v1906_v21 }
 0x926   :  { %3586 = vpow2.f32 %v3223_v60 }
 0x927   :  { %v3579_v40 = vpop.eup %3578 }
 0x928   :  { %v1611_v0 = vadd.f32 1.0, %v3579_v40 }
 0x92a   :  { %v3581_v9 = vpop.eup %3580  ;;  %3588 = vrcp.f32 %v1611_v0 }
 0x92b   :  { %v1610_v45 = vadd.f32 1.0, %v3581_v9 }
 0x92d   :  { %v3583_v23 = vpop.eup %3582  ;;  %3590 = vrcp.f32 %v1610_v45 }
 0x92e   :  { %v1916_v48 = vadd.f32 1.0, %v3583_v23 }
 0x930   :  { %v3585_v47 = vpop.eup %3584  ;;  %3592 = vrcp.f32 %v1916_v48 }
 0x931   :  { %v1917_v32 = vadd.f32 1.0, %v3585_v47 }
 0x933   :  { %v3587_v61 = vpop.eup %3586  ;;  %3594 = vrcp.f32 %v1917_v32 }
 0x934   :  { %v1918_v50 = vadd.f32 1.0, %v3587_v61 }
 0x936   :  { %3596 = vrcp.f32 %v1918_v50 }
 0x937   :  { %v3589_v37 = vpop.eup %3588 }
 0x93a   :  { %v4328_v30 = vpop.eup %3590 }
 0x93d   :  { %v4333_v0 = vpop.eup %3592 }
 0x940   :  { %v4336_v17 = vpop.eup %3594 }
 0x943   :  { %v4341_v40 = vpop.eup %3596 }
 0x988   :  { %v1621_v3 = vpop.permute.xlu1 %1620 }
 0x989   :  { %v1625_v24 = vmul.f32 %v3589_v37, %v1621_v3 }
 0x98a   :  { %v1619_v10 = vpop.permute.xlu0 %1618 }
 0x98b   :  { %v1624_v27 = vmul.f32 %v4328_v30, %v1619_v10  ;;  %1630 = vrot.lane.b32.xlu0 %v1625_v24, %s3651_s18 }
 0x98d   :  { %1628 = vrot.lane.b32.xlu1 %v1624_v27, %s3651_s18 }
 0x98e   :  { %v1929_v56 = vpop.permute.xlu0 %1928 }
 0x98f   :  { %v1937_v58 = vmul.f32 %v4333_v0, %v1929_v56 }
 0x990   :  { %v1931_v21 = vpop.permute.xlu1 %1930 }
 0x991   :  { %v1938_v60 = vmul.f32 %v4336_v17, %v1931_v21  ;;  %1943 = vrot.lane.b32.xlu1 %v1937_v58, %s3651_s18 }
 0x993   :  { %1945 = vrot.lane.b32.xlu0 %v1938_v60, %s3651_s18 }
 0x994   :  { %v1933_v9 = vpop.permute.xlu0 %1932 }
 0x995   :  { %v1939_v45 = vmul.f32 %v4341_v40, %v1933_v9 }
 0x997   :  { %1947 = vrot.lane.b32.xlu1 %v1939_v45, %s3651_s18  ;;  %1650 = vrot.lane.b32.xlu0 %v4227_v13, %s3652_s19  ;;  %v1639_v45 = vsub.f32 1.0, %v3589_v37 }
 0x99b   :  { %1652 = vrot.lane.b32.xlu1 %v4254_v42, %s3652_s19 }
 0x99f   :  { %1976 = vrot.lane.b32.xlu1 %v4273_v43, %s3652_s19 }
 0x9fd   :  { %v1631_v23 = vpop.permute.xlu0 %1630 }
 0x9fe   :  { %v1635_v47 = vadd.f32 %v1631_v23, %v4308_v20 }
 0x9ff   :  { %v1629_v48 = vpop.permute.xlu1 %1628 }
 0xa00   :  { %3598 = vtanh.f32 %v1635_v47  ;;  %v1634_v32 = vadd.f32 %v1629_v48, %v4311_v35 }
 0xa02   :  { %3600 = vtanh.f32 %v1634_v32  ;;  %v1638_v32 = vsub.f32 1.0, %v4328_v30 }
 0xa03   :  { %v1944_v61 = vpop.permute.xlu1 %1943 }
 0xa04   :  { %v1952_v50 = vadd.f32 %v1944_v61, %v1801_v12 }
 0xa05   :  { %v1946_v3 = vpop.permute.xlu0 %1945 }
 0xa06   :  { %3602 = vtanh.f32 %v1952_v50  ;;  %v1953_v24 = vadd.f32 %v1946_v3, %v1802_v11  ;;  %v4363_v11 = vld [vmem:[%s4772_s11 + $0x30] sm:$0xff] }
 0xa08   :  { %3604 = vtanh.f32 %v1953_v24 }
 0xa09   :  { %v1948_v10 = vpop.permute.xlu1 %1947  ;;  %v1651_v9 = vpop.permute.xlu0 %1650 }
 0xa0a   :  { %v1954_v27 = vadd.f32 %v1948_v10, %v1803_v34  ;;  %v4371_v34 = vld [vmem:[%s4772_s11 + $0x38] sm:$0xff]  ;;  %v1656_v50 = vmul.f32 %v4328_v30, %v1651_v9 }
 0xa0c   :  { %3606 = vtanh.f32 %v1954_v27  ;;  %v1958_v27 = vsub.f32 1.0, %v4333_v0 }
 0xa0d   :  { %v3599_v56 = vpop.eup %3598  ;;  %v1653_v21 = vpop.permute.xlu1 %1652 }
 0xa0e   :  { %1644 = vrot.lane.b32.xlu1 %v3599_v56, %s3654_s20  ;;  %v1657_v47 = vmul.f32 %v3589_v37, %v1653_v21 }
 0xa0f   :  { %v3601_v58 = vpop.eup %3600 }
 0xa10   :  { %1642 = vrot.lane.b32.xlu0 %v3601_v58, %s3654_s20 }
 0xa11   :  { %v1977_v60 = vpop.permute.xlu1 %1976 }
 0xa12   :  { %v1985_v58 = vmul.f32 %v4333_v0, %v1977_v60 }
 0xa13   :  { %v3603_v20 = vpop.eup %3602 }
 0xa14   :  { %1964 = vrot.lane.b32.xlu0 %v3603_v20, %s3654_s20 }
 0xa15   :  { %v3605_v35 = vpop.eup %3604 }
 0xa16   :  { %1966 = vrot.lane.b32.xlu1 %v3605_v35, %s3654_s20 }
 0xa19   :  { %v3607_v12 = vpop.eup %3606 }
 0xa1a   :  { %1980 = vrot.lane.b32.xlu1 %v4291_v55, %s3652_s19  ;;  %1968 = vrot.lane.b32.xlu0 %v3607_v12, %s3654_s20  ;;  %v1960_v12 = vsub.f32 1.0, %v4341_v40 }
 0xa1e   :  { %1676 = vperm.xlu1 %3534, %v4363_v11   ;;  %1978 = vrot.lane.b32.xlu0 %v4282_v54, %s3652_s19 }
 0xa22   :  { %2014 = vperm.xlu1 %3534, %v3887_v25   ;;  %1681 = vperm.xlu0 %3535, %v4371_v34  }
 0xa80   :  { %v1645_v23 = vpop.permute.xlu1 %1644 }
 0xa81   :  { %v1649_v48 = vmul.f32 %v1645_v23, %v1639_v45  ;;  %v1959_v23 = vsub.f32 1.0, %v4336_v17 }
 0xa82   :  { %v1643_v61 = vpop.permute.xlu0 %1642 }
 0xa83   :  { %v1659_v3 = vadd.f32 %v1657_v47, %v1649_v48  ;;  %v1648_v24 = vmul.f32 %v1643_v61, %v1638_v32 }
 0xa85   :  { %v1658_v10 = vadd.f32 %v1656_v50, %v1648_v24  ;;  %v4379_v25 = vmul.f32 %v1659_v3, %v3895_v31 }
 0xa86   :  { %v1965_v56 = vpop.permute.xlu0 %1964 }
 0xa87   :  { %v1973_v20 = vmul.f32 %v1965_v56, %v1958_v27  ;;  %1666 = vrot.lane.b32.xlu1 %v4379_v25, %s3654_s20  ;;  %v4385_v37 = vmul.f32 %v1658_v10, %v3895_v31  ;;  %v1174_v10 = vmul.f32 %v4166_v49, %v4114_v36  ;;  %v3224_v27 = vld [vmem:[%s4761_s4 + $0x4] sm:$0xf] }
 0xa88   :  { %v1967_v35 = vpop.permute.xlu1 %1966  ;;  %3470 = vmatpush3.msk.msra.mxu0 %vm82_vm0, %v3224_v27 }
 0xa89   :  { %v1988_v30 = vadd.f32 %v1985_v58, %v1973_v20  ;;  %1664 = vrot.lane.b32.xlu0 %v4385_v37, %s3654_s20  ;;  %v1974_v32 = vmul.f32 %v1967_v35, %v1959_v23 }
 0xa8b   :  { %v4391_v21 = vmul.f32 %v1988_v30, %v3895_v31 }
 0xa8c   :  { %v1969_v9 = vpop.permute.xlu0 %1968  ;;  %v1981_v45 = vpop.permute.xlu1 %1980 }
 0xa8d   :  { %v1975_v0 = vmul.f32 %v1969_v9, %v1960_v12  ;;  %v1987_v60 = vmul.f32 %v4341_v40, %v1981_v45  ;;  %1997 = vrot.lane.b32.xlu0 %v4391_v21, %s3654_s20  ;;  %v1172_v40 = vmul.f32 %v4151_v7, %v4109_v33 }
 0xa8f   :  { %v1990_v47 = vadd.f32 %v1987_v60, %v1975_v0 }
 0xa90   :  { %v1979_v48 = vpop.permute.xlu0 %1978 }
 0xa91   :  { %v1986_v61 = vmul.f32 %v4336_v17, %v1979_v48  ;;  %v4399_v50 = vmul.f32 %v1990_v47, %v3895_v31  ;;  %v1173_v17 = vmul.f32 %v4161_v38, %v4124_v6 }
 0xa93   :  { %v1989_v3 = vadd.f32 %v1986_v61, %v1974_v32  ;;  %2001 = vrot.lane.b32.xlu0 %v4399_v50, %s3654_s20 }
 0xa95   :  { %v4404_v24 = vmul.f32 %v1989_v3, %v3895_v31 }
 0xa97   :  { %1999 = vrot.lane.b32.xlu1 %v4404_v24, %s3654_s20  ;;  %2019 = vperm.xlu0 %3535, %v3910_v51   ;;  %v4776_v51 = vmov 0.0  }
 0xa98   :  { %3485 = vmatprep.subr.mxu0 %v4776_v51 }
 0xa9b   :  { %2024 = vperm.xlu1 %3534, %v3921_v53   ;;  %1178 = vrot.lane.b32.xlu0 %v1172_v40, %s3654_s20  ;;  %v4424_v53 = vpop.permute.xlu1 %1676  ;;  %v3644_v40 = vld [vmem:[%s4766_s12 + $0x2] ss:$0 sm:$0xff] }
 0xa9d   :  { %v4428_v6 = vpop.permute.xlu0 %1681 }
 0xa9f   :  { %1180 = vrot.lane.b32.xlu1 %v1173_v17, %s3654_s20  ;;  %1182 = vrot.lane.b32.xlu0 %v1174_v10, %s3654_s20  ;;  %v4426_v33 = vpop.permute.xlu1 %2014 }
 0xaf9   :  { %v1667_v7 = vpop.permute.xlu1 %1666 }
 0xafa   :  { %v1671_v36 = vadd.f32 %v1667_v7, %v4254_v42 }
 0xafb   :  { %v1665_v38 = vpop.permute.xlu0 %1664 }
 0xafc   :  { %v1701_v49 = vmul.f32 %v4240_v57, %v1671_v36  ;;  %v1670_v56 = vadd.f32 %v1665_v38, %v4227_v13  ;;  %v3642_v57 = vld [vmem:[%s4766_s12] ss:$0 sm:$0xff] }
 0xafe   :  { %v1703_v58 = vsub.f32 %v1701_v49, %v3953_v22  ;;  %v1700_v20 = vmul.f32 %v4232_v14, %v1670_v56 }
 0xaff   :  { %v1998_v35 = vpop.permute.xlu0 %1997 }
 0xb00   :  { %v1705_v30 = vmul.f32 %v1703_v58, %v4428_v6  ;;  %v1702_v12 = vsub.f32 %v1700_v20, %v3951_v16  ;;  %v2006_v9 = vadd.f32 %v1998_v35, %v4273_v43 }
 0xb02   :  { %v1707_v45 = vadd.f32 %v1705_v30, %v3953_v22  ;;  %v1704_v0 = vmul.f32 %v1702_v12, %v4424_v53  ;;  %v2051_v60 = vmul.f32 %v3642_v57, %v2006_v9 }
 0xb04   :  { %1709 = vst.msk [vmem:[#allocation3 + $0x38] sm:$0xff] %vm44_vm1, %v1707_v45  ;;  %v1706_v14 = vadd.f32 %v1704_v0, %v3951_v16  ;;  %v2054_v23 = vsub.f32 %v2051_v60, %v3965_v28  ;;  %v3643_v16 = vld [vmem:[%s4766_s12 + $0x1] ss:$0 sm:$0xff] }
 0xb05   :  { %v2002_v48 = vpop.permute.xlu0 %2001 }
 0xb06   :  { %1708 = vst.msk [vmem:[#allocation3 + $0x30] sm:$0xff] %vm44_vm1, %v1706_v14  ;;  %v2057_v47 = vmul.f32 %v2054_v23, %v4426_v33  ;;  %v2008_v61 = vadd.f32 %v2002_v48, %v4291_v55  ;;  %v3232_v23 = vld [vmem:[%s4763_s6 + $0x4] sm:$0xf] }
 0xb07   :  { %3475 = vmatpush3.msk.msra.mxu1 %vm82_vm0, %v3232_v23 }
 0xb08   :  { %v2060_v43 = vadd.f32 %v2057_v47, %v3965_v28  ;;  %v2053_v17 = vmul.f32 %v3644_v40, %v2008_v61  ;;  %v3239_v47 = vld [vmem:[%s4764_s7 + $0x4] sm:$0xf]  ;;  %3496 = vmatprep.subr.mxu1 %v4776_v51 }
 0xb09   :  { %v2000_v22 = vpop.permute.xlu1 %1999 }
 0xb0a   :  { %2063 = vst.msk [vmem:[#allocation3] sm:$0xff] %vm44_vm1, %v2060_v43  ;;  %v2007_v32 = vadd.f32 %v2000_v22, %v4282_v54  ;;  %v2056_v55 = vsub.f32 %v2053_v17, %v3967_v29 }
 0xb0b   :  { %v4478_v12 = vld [vmem:[#allocation3 + $0x38] sm:$0xff] }
 0xb0c   :  { %v2052_v3 = vmul.f32 %v3643_v16, %v2007_v32  ;;  %v3244_v32 = vld [vmem:[%s4769_s8 + $0x4] sm:$0xf] }
 0xb0d   :  { %v4476_v30 = vld [vmem:[#allocation3 + $0x30] sm:$0xff] }
 0xb0e   :  { %v2055_v28 = vsub.f32 %v2052_v3, %v3961_v26 }
 0xb11   :  { %v2066_v9 = vld [vmem:[#allocation3] sm:$0xff] }
 0xb12   :  { %v4459_v10 = vpop.permute.xlu0 %2019 }
 0xb13   :  { %v2058_v27 = vmul.f32 %v2055_v28, %v4459_v10 }
 0xb15   :  { %v2061_v54 = vadd.f32 %v2058_v27, %v3961_v26 }
 0xb16   :  { %v1179_v7 = vpop.permute.xlu0 %1178  ;;  %v4464_v36 = vpop.permute.xlu1 %2024 }
 0xb17   :  { %2064 = vst.msk [vmem:[#allocation3 + $0x8] sm:$0xff] %vm44_vm1, %v2061_v54  ;;  %v1187_v38 = vadd.f32 %v1179_v7, %v4053_v62  ;;  %v2059_v49 = vmul.f32 %v2056_v55, %v4464_v36 }
 0xb19   :  { %1190 = vst.msk [vmem:[#allocation2 + $0x18] sm:$0xff] %vm44_vm1, %v1187_v38  ;;  %v2062_v56 = vadd.f32 %v2059_v49, %v3967_v29  ;;  %v4482_v29 = vadd.f32 %v4478_v12, %v4476_v30 }
 0xb1a   :  { %v1183_v58 = vpop.permute.xlu0 %1182  ;;  %v1181_v20 = vpop.permute.xlu1 %1180 }
 0xb1b   :  { %2065 = vst.msk [vmem:[#allocation3 + $0x10] sm:$0xff] %vm44_vm1, %v2062_v56  ;;  %v1189_v26 = vadd.f32 %v1183_v58, %v4067_v1  ;;  %v1188_v35 = vadd.f32 %v1181_v20, %v4061_v63  ;;  %v2079_v57 = vadd.f32 %v4482_v29, %v4188_v15 }
 0xb1d   :  { %1192 = vst.msk [vmem:[#allocation2 + $0x28] sm:$0xff] %vm44_vm1, %v1189_v26  ;;  %1191 = vst.msk [vmem:[#allocation2 + $0x20] sm:$0xff] %vm44_vm1, %v1188_v35 }
 0xb1e   :  { %v2067_v62 = vld [vmem:[#allocation3 + $0x8] sm:$0xff] }
 0xb1f   :  { %v4486_v0 = vadd.f32 %v2067_v62, %v2066_v9 }
 0xb20   :  { %v4554_v40 = vld [vmem:[#allocation2 + $0x18] sm:$0xff] }
 0xb22   :  { %v4484_v45 = vld [vmem:[#allocation3 + $0x10] sm:$0xff] }
 0xb23   :  { %v2075_v63 = vadd.f32 %v4484_v45, %v4178_v4 }
 0xb24   :  { %v4560_v17 = vld [vmem:[#allocation2 + $0x20] sm:$0xff]  ;;  %v4566_v28 = vld [vmem:[#allocation2 + $0x28] sm:$0xff] }
 0xb25   :  { %v2078_v1 = vadd.f32 %v2075_v63, %v4486_v0 }
 0xb27   :  { %v2080_v60 = vadd.f32 %v2079_v57, %v2078_v1 }
 0xb29   :  { %v2090_v14 = vrot.slane %v2080_v60, 3 }
 0xb2b   :  { %3472 = vmatmul.mubr.msk.f32.vlgmr.msra.gmra.mxu0 %vm44_vm1, %v2090_v14 }
 0xb2c   :  { %3487 = vmatprep.mubr.msk.f32.mxu0 %vm3649_vm2, %v4776_v51  ;;  %3486 = vmatpush3.msk.msra.mxu0 %vm82_vm0, %v3239_v47 }
 0xb2d   :  { %3507 = vmatprep.subr.mxu0 %v4776_v51 }
 0xbeb   :  { %v2162_v15 = vpop.f32.mrf.mxu0 }
 0xbec   :  { %v2163_v43 = vadd.f32 %v4005_v44, %v2162_v15 }
 0xbed   :  { %v3473_v22 = vpop.f32.mrf.mxu0 }
 0xbee   :  { %3608 = vtanh.f32 %v2163_v43 }
 0xbfb   :  { %v3609_v48 = vpop.eup %3608 }
 0xbfc   :  { %2167 = vst.msk [vmem:[%s4766_s12 + $0x3] sm:$0x7] %vm157_vm3, %v3609_v48 }
 0xc03   :  { %v4517_v61 = vld [vmem:[%s4766_s12 + $0x3] ss:$0 sm:$0xff]  ;;  %v4533_v16 = vld [vmem:[%s4766_s12 + $0x4] ss:$0 sm:$0xff]  ;;  %v4545_v3 = vld [vmem:[%s4766_s12 + $0x5] ss:$0 sm:$0xff] }
 0xc04   :  { %v2283_v44 = vld [vmem:[%s4766_s12] sm:$0xff]  ;;  %3477 = vmatmul.mubr.msk.f32.vlgmr.msra.gmra.mxu1 %vm44_vm1, %v4517_v61 }
 0xc05   :  { %3488 = vmatmul.mubr.msk.f32.vlgmr.msra.gmra.mxu0 %vm44_vm1, %v2283_v44  ;;  %3497 = vmatpush3.msk.msra.mxu1 %vm82_vm0, %v3244_v32 }
 0xc06   :  { %3479 = vmatprep.mubr.msk.f32.mxu1 %vm3649_vm2, %v4776_v51  ;;  %3490 = vmatprep.mubr.msk.f32.mxu0 %vm3649_vm2, %v4776_v51 }
 0xc08   :  { %3480 = vmatmul.mubr.msk.f32.gmra.mxu1 %vm44_vm1, %v4533_v16 }
 0xc09   :  { %3491 = vmatmul.mubr.msk.f32.gmra.mxu0 %vm44_vm1, %v2283_v44  ;;  %3482 = vmatprep.mubr.msk.f32.mxu1 %vm3649_vm2, %v4776_v51 }
 0xc0a   :  { %3493 = vmatprep.mubr.msk.f32.mxu0 %vm3649_vm2, %v4776_v51 }
 0xc0c   :  { %3483 = vmatmul.mubr.msk.f32.gmra.mxu1 %vm44_vm1, %v4545_v3 }
 0xc0d   :  { %3494 = vmatmul.mubr.msk.f32.gmra.mxu0 %vm44_vm1, %v2283_v44  ;;  %3498 = vmatprep.mubr.msk.f32.mxu1 %vm3649_vm2, %v4776_v51 }
 0xc0e   :  { %3509 = vmatprep.mubr.msk.f32.mxu0 %vm3649_vm2, %v4776_v51 }
 0xc10   :  { %3499 = vmatmul.mubr.msk.f32.vlgmr.msra.gmra.mxu1 %vm44_vm1, %v4554_v40 }
 0xc11   :  { %3501 = vmatprep.mubr.msk.f32.mxu1 %vm3649_vm2, %v4776_v51 }
 0xc14   :  { %3502 = vmatmul.mubr.msk.f32.gmra.mxu1 %vm44_vm1, %v4560_v17 }
 0xc15   :  { %3504 = vmatprep.mubr.msk.f32.mxu1 %vm3649_vm2, %v4776_v51 }
 0xc18   :  { %3505 = vmatmul.mubr.msk.f32.gmra.mxu1 %vm44_vm1, %v4566_v28 }
 0xcc4   :  { %v2269_v27 = vpop.f32.mrf.mxu1 }
 0xcc5   :  { %v2360_v54 = vpop.f32.mrf.mxu0  ;;  %v2270_v55 = vadd.f32 %v4074_v2, %v2269_v27 }
 0xcc6   :  { %v3478_v7 = vpop.f32.mrf.mxu1 }
 0xcc7   :  { %v3489_v38 = vpop.f32.mrf.mxu0  ;;  %v2374_v49 = vadd.f32 %v2360_v54, %v2270_v55 }
 0xcc8   :  { %v2274_v56 = vpop.f32.mrf.mxu1 }
 0xcc9   :  { %v2365_v58 = vpop.f32.mrf.mxu0  ;;  %v2275_v20 = vadd.f32 %v4074_v2, %v2274_v56 }
 0xcca   :  { %v3481_v26 = vpop.f32.mrf.mxu1 }
 0xccb   :  { %v3492_v35 = vpop.f32.mrf.mxu0  ;;  %v2375_v62 = vadd.f32 %v2365_v58, %v2275_v20 }
 0xccc   :  { %v2279_v51 = vpop.f32.mrf.mxu1 }
 0xccd   :  { %v2370_v9 = vpop.f32.mrf.mxu0  ;;  %v2280_v63 = vadd.f32 %v4074_v2, %v2279_v51 }
 0xcce   :  { %v3484_v1 = vpop.f32.mrf.mxu1 }
 0xccf   :  { %v3495_v57 = vpop.f32.mrf.mxu0  ;;  %v2376_v60 = vadd.f32 %v2370_v9, %v2280_v63 }
 0xcd0   :  { %v2463_v14 = vpop.f32.mrf.mxu1 }
 0xcd1   :  { %v2464_v23 = vadd.f32 %v4082_v39, %v2463_v14 }
 0xcd2   :  { %v3500_v47 = vpop.f32.mrf.mxu1 }
 0xcd3   :  { %2501 = vrot.lane.b32.xlu1 %v2464_v23, %s3650_s2  ;;  %v2477_v2 = vadd.f32 %v2464_v23, %v2374_v49 }
 0xcd4   :  { %v2468_v15 = vpop.f32.mrf.mxu1 }
 0xcd5   :  { %v2469_v43 = vadd.f32 %v4082_v39, %v2468_v15  ;;  %v3251_v27 = vmul.f32 -1.442695, %v2477_v2 }
 0xcd6   :  { %v3503_v22 = vpop.f32.mrf.mxu1 }
 0xcd7   :  { %2503 = vrot.lane.b32.xlu0 %v2469_v43, %s3650_s2  ;;  %v2478_v54 = vadd.f32 %v2469_v43, %v2375_v62  ;;  %3610 = vpow2.f32 %v3251_v27 }
 0xcd8   :  { %v2473_v48 = vpop.f32.mrf.mxu1 }
 0xcd9   :  { %v2474_v32 = vadd.f32 %v4082_v39, %v2473_v48  ;;  %v3252_v55 = vmul.f32 -1.442695, %v2478_v54 }
 0xcda   :  { %v3506_v44 = vpop.f32.mrf.mxu1 }
 0xcdb   :  { %2505 = vrot.lane.b32.xlu1 %v2474_v32, %s3650_s2  ;;  %v2479_v7 = vadd.f32 %v2474_v32, %v2376_v60  ;;  %3612 = vpow2.f32 %v3252_v55 }
 0xcdd   :  { %v3253_v38 = vmul.f32 -1.442695, %v2479_v7 }
 0xcdf   :  { %3614 = vpow2.f32 %v3253_v38 }
 0xce4   :  { %v3611_v56 = vpop.eup %3610 }
 0xce5   :  { %v2489_v58 = vadd.f32 1.0, %v3611_v56 }
 0xce7   :  { %3616 = vrcp.f32 %v2489_v58 }
 0xce8   :  { %v3613_v20 = vpop.eup %3612 }
 0xce9   :  { %v2490_v26 = vadd.f32 1.0, %v3613_v20 }
 0xceb   :  { %3618 = vrcp.f32 %v2490_v26 }
 0xcec   :  { %v3615_v35 = vpop.eup %3614 }
 0xced   :  { %v2491_v39 = vadd.f32 1.0, %v3615_v35 }
 0xcef   :  { %3620 = vrcp.f32 %v2491_v39 }
 0xcf4   :  { %v3617_v51 = vpop.eup %3616 }
 0xcf8   :  { %v3619_v1 = vpop.eup %3618 }
 0xcfc   :  { %v3621_v23 = vpop.eup %3620 }
 0xcfd   :  { %v2533_v26 = vsub.f32 1.0, %v3621_v23 }
 0xd45   :  { %v2502_v9 = vpop.permute.xlu1 %2501 }
 0xd46   :  { %v2510_v63 = vmul.f32 %v3617_v51, %v2502_v9 }
 0xd48   :  { %2516 = vrot.lane.b32.xlu0 %v2510_v63, %s3651_s18 }
 0xd49   :  { %v2504_v57 = vpop.permute.xlu0 %2503 }
 0xd4a   :  { %v2511_v14 = vmul.f32 %v3619_v1, %v2504_v57  ;;  %v2532_v57 = vsub.f32 1.0, %v3619_v1 }
 0xd4c   :  { %2518 = vrot.lane.b32.xlu1 %v2511_v14, %s3651_s18 }
 0xd4d   :  { %v2506_v47 = vpop.permute.xlu1 %2505 }
 0xd4e   :  { %v2512_v15 = vmul.f32 %v3621_v23, %v2506_v47 }
 0xd50   :  { %2520 = vrot.lane.b32.xlu0 %v2512_v15, %s3651_s18 }
 0xd54   :  { %2549 = vrot.lane.b32.xlu0 %v4554_v40, %s3652_s19 }
 0xdba   :  { %v2517_v43 = vpop.permute.xlu0 %2516 }
 0xdbb   :  { %v2525_v22 = vadd.f32 %v2517_v43, %v2374_v49 }
 0xdbd   :  { %3622 = vtanh.f32 %v2525_v22 }
 0xdbe   :  { %v2519_v48 = vpop.permute.xlu1 %2518 }
 0xdbf   :  { %v2526_v32 = vadd.f32 %v2519_v48, %v2375_v62  ;;  %v2531_v62 = vsub.f32 1.0, %v3617_v51  ;;  %v3254_v48 = vld [vmem:[%s4761_s4 + $0x8] sm:$0xf] }
 0xdc0   :  { %3508 = vmatpush3.msk.msra.mxu0 %vm82_vm0, %v3254_v48 }
 0xdc1   :  { %3624 = vtanh.f32 %v2526_v32 }
 0xdc2   :  { %v2521_v44 = vpop.permute.xlu0 %2520 }
 0xdc3   :  { %v2527_v2 = vadd.f32 %v2521_v44, %v2376_v60 }
 0xdc5   :  { %3626 = vtanh.f32 %v2527_v2 }
 0xdc6   :  { %v2550_v49 = vpop.permute.xlu0 %2549 }
 0xdc7   :  { %v2558_v7 = vmul.f32 %v3617_v51, %v2550_v49 }
 0xdca   :  { %v3623_v27 = vpop.eup %3622 }
 0xdcb   :  { %2537 = vrot.lane.b32.xlu1 %v3623_v27, %s3654_s20 }
 0xdce   :  { %v3625_v54 = vpop.eup %3624 }
 0xdcf   :  { %2539 = vrot.lane.b32.xlu0 %v3625_v54, %s3654_s20 }
 0xdd2   :  { %v3627_v55 = vpop.eup %3626 }
 0xdd3   :  { %2541 = vrot.lane.b32.xlu1 %v3627_v55, %s3654_s20  ;;  %2553 = vrot.lane.b32.xlu0 %v4566_v28, %s3652_s19 }
 0xdd7   :  { %2551 = vrot.lane.b32.xlu1 %v4560_v17, %s3652_s19  ;;  %2587 = vperm.xlu0 %3535, %v4103_v8  }
 0xe3d   :  { %v2538_v60 = vpop.permute.xlu1 %2537 }
 0xe3e   :  { %v2546_v38 = vmul.f32 %v2538_v60, %v2531_v62 }
 0xe40   :  { %v2561_v56 = vadd.f32 %v2558_v7, %v2546_v38 }
 0xe41   :  { %v2540_v58 = vpop.permute.xlu0 %2539 }
 0xe42   :  { %v4593_v20 = vmul.f32 %v2561_v56, %v3895_v31  ;;  %v2547_v47 = vmul.f32 %v2540_v58, %v2532_v57 }
 0xe44   :  { %2570 = vrot.lane.b32.xlu1 %v4593_v20, %s3654_s20 }
 0xe45   :  { %v2554_v35 = vpop.permute.xlu0 %2553  ;;  %v2542_v39 = vpop.permute.xlu1 %2541 }
 0xe46   :  { %v2560_v9 = vmul.f32 %v3621_v23, %v2554_v35  ;;  %v2548_v63 = vmul.f32 %v2542_v39, %v2533_v26  ;;  %v1684_v23 = vmul.f32 %v4424_v53, %v4385_v37 }
 0xe48   :  { %v2563_v8 = vadd.f32 %v2560_v9, %v2548_v63 }
 0xe49   :  { %v2552_v14 = vpop.permute.xlu1 %2551 }
 0xe4a   :  { %v2559_v15 = vmul.f32 %v3619_v1, %v2552_v14  ;;  %v4598_v51 = vmul.f32 %v2563_v8, %v3895_v31  ;;  %v1685_v1 = vmul.f32 %v4428_v6, %v4379_v25 }
 0xe4c   :  { %v2562_v43 = vadd.f32 %v2559_v15, %v2547_v47  ;;  %2574 = vrot.lane.b32.xlu1 %v4598_v51, %s3654_s20 }
 0xe4e   :  { %v4603_v22 = vmul.f32 %v2562_v43, %v3895_v31  ;;  %v3267_v43 = vld [vmem:[%s4764_s7 + $0x8] sm:$0xf] }
 0xe50   :  { %2592 = vperm.xlu1 %3534, %v4121_v5   ;;  %2572 = vrot.lane.b32.xlu0 %v4603_v22, %s3654_s20  ;;  %v3271_v5 = vld [vmem:[%s4769_s8 + $0x8] sm:$0xf] }
 0xe51   :  { %3522 = vmatprep.subr.msk.mxu1 %vm82_vm0, %v3271_v5 }
 0xe52   :  { %3523 = vmatpush3.msk.msra.mxu1 %vm82_vm0, %v3271_v5  ;;  %v4627_v6 = vpop.permute.xlu0 %2587 }
 0xe54   :  { %1688 = vrot.lane.b32.xlu1 %v1684_v23, %s3654_s20  ;;  %2597 = vperm.xlu0 %3535, %v4132_v41  }
 0xe58   :  { %1690 = vrot.lane.b32.xlu0 %v1685_v1, %s3654_s20 }
 0xeb6   :  { %v2571_v41 = vpop.permute.xlu1 %2570 }
 0xeb7   :  { %v2579_v37 = vadd.f32 %v2571_v41, %v4554_v40 }
 0xeb9   :  { %v2624_v25 = vmul.f32 %v4517_v61, %v2579_v37 }
 0xebb   :  { %v2627_v53 = vsub.f32 %v2624_v25, %v4178_v4 }
 0xebd   :  { %v2630_v32 = vmul.f32 %v2627_v53, %v4627_v6 }
 0xebe   :  { %v2575_v27 = vpop.permute.xlu1 %2574 }
 0xebf   :  { %v2633_v44 = vadd.f32 %v2630_v32, %v4178_v4  ;;  %v2581_v55 = vadd.f32 %v2575_v27, %v4566_v28 }
 0xec1   :  { %2636 = vst.msk [vmem:[#allocation3 + $0x18] sm:$0xff] %vm44_vm1, %v2633_v44  ;;  %v2626_v61 = vmul.f32 %v4545_v3, %v2581_v55 }
 0xec2   :  { %v2573_v2 = vpop.permute.xlu0 %2572 }
 0xec3   :  { %v2580_v54 = vadd.f32 %v2573_v2, %v4560_v17  ;;  %v2629_v38 = vsub.f32 %v2626_v61, %v4184_v46 }
 0xec5   :  { %v2625_v49 = vmul.f32 %v4533_v16, %v2580_v54 }
 0xec7   :  { %v2628_v62 = vsub.f32 %v2625_v49, %v4182_v18 }
 0xec8   :  { %v2642_v39 = vld [vmem:[#allocation3 + $0x18] sm:$0xff] }
 0xec9   :  { %v2648_v63 = vadd.f32 %v2642_v39, %v4484_v45  ;;  %v3261_v45 = vld [vmem:[%s4763_s6 + $0x8] sm:$0xf] }
 0xeca   :  { %3512 = vmatprep.subr.msk.mxu0 %vm82_vm0, %v3261_v45 }
 0xecb   :  { %v4637_v60 = vpop.permute.xlu1 %2592 }
 0xecc   :  { %v2631_v7 = vmul.f32 %v2628_v62, %v4637_v60 }
 0xece   :  { %v2634_v4 = vadd.f32 %v2631_v7, %v4182_v18 }
 0xecf   :  { %v4642_v56 = vpop.permute.xlu0 %2597  ;;  %v1689_v58 = vpop.permute.xlu1 %1688 }
 0xed0   :  { %2637 = vst.msk [vmem:[#allocation3 + $0x20] sm:$0xff] %vm44_vm1, %v2634_v4  ;;  %v2632_v26 = vmul.f32 %v2629_v38, %v4642_v56  ;;  %v1694_v16 = vadd.f32 %v1689_v58, %v4227_v13 }
 0xed2   :  { %v2635_v3 = vadd.f32 %v2632_v26, %v4184_v46  ;;  %1696 = vst.msk [vmem:[#allocation2 + $0x30] sm:$0xff] %vm44_vm1, %v1694_v16 }
 0xed3   :  { %v1691_v35 = vpop.permute.xlu0 %1690 }
 0xed4   :  { %2638 = vst.msk [vmem:[#allocation3 + $0x28] sm:$0xff] %vm44_vm1, %v2635_v3  ;;  %v1695_v18 = vadd.f32 %v1691_v35, %v4254_v42  ;;  %v2651_v42 = vadd.f32 %v2648_v63, %v4486_v0 }
 0xed6   :  { %1697 = vst.msk [vmem:[#allocation2 + $0x38] sm:$0xff] %vm44_vm1, %v1695_v18 }
 0xed7   :  { %v2643_v13 = vld [vmem:[#allocation3 + $0x20] sm:$0xff] }
 0xed9   :  { %v4652_v9 = vld [vmem:[#allocation2 + $0x30] sm:$0xff] }
 0xeda   :  { %3524 = vmatprep.mubr.msk.f32.mxu1 %vm44_vm1, %v4652_v9 }
 0xedb   :  { %v2644_v57 = vld [vmem:[#allocation3 + $0x28] sm:$0xff] }
 0xedc   :  { %v2649_v46 = vadd.f32 %v2644_v57, %v2643_v13 }
 0xedd   :  { %v4657_v8 = vld [vmem:[#allocation2 + $0x38] sm:$0xff] }
 0xede   :  { %3525 = vmatmul.mubr.msk.f32.vlgmr.msra.gmra.mxu1 %vm44_vm1, %v4657_v8  ;;  %v2652_v14 = vadd.f32 %v2649_v46, %v4482_v29 }
 0xee0   :  { %v2653_v47 = vadd.f32 %v2652_v14, %v2651_v42 }
 0xee2   :  { %v2663_v15 = vrot.slane %v2653_v47, 6 }
 0xee4   :  { %3510 = vmatmul.mubr.msk.f32.vlgmr.msra.gmra.mxu0 %vm44_vm1, %v2663_v15  ;;  %v2028_v15 = vmul.f32 %v4459_v10, %v4404_v24 }
 0xee5   :  { %3513 = vmatpush3.msk.msra.mxu0 %vm82_vm0, %v3261_v45  ;;  %v2027_v45 = vmul.f32 %v4426_v33, %v4391_v21 }
 0xee6   :  { %3517 = vmatprep.subr.msk.mxu0 %vm82_vm0, %v3267_v43 }
 0xf9e   :  { %v3526_v0 = vpop.f32.mrf.mxu1 }
 0xf9f   :  { %v3019_v29 = vadd.f32 %v3526_v0, %v4306_v19  ;;  %v2029_v0 = vmul.f32 %v4464_v36, %v4399_v50  ;;  %v2602_v36 = vmul.f32 %v4642_v56, %v4598_v51  ;;  %v3646_v56 = vld [vmem:[#allocation2] sm:$0xff] }
 0xfa0   :  { %v3013_v23 = vpop.f32.mrf.mxu1 }
 0xfa1   :  { %v3014_v1 = vadd.f32 %v4306_v19, %v3013_v23  ;;  %3040 = vrot.lane.b32.xlu0 %v3019_v29, %s3650_s2 }
 0xfa3   :  { %3038 = vrot.lane.b32.xlu1 %v3014_v1, %s3650_s2 }
 0xfa4   :  { %v2735_v48 = vpop.f32.mrf.mxu0 }
 0xfa5   :  { %v2736_v5 = vadd.f32 %v4220_v52, %v2735_v48 }
 0xfa6   :  { %v3511_v41 = vpop.f32.mrf.mxu0 }
 0xfa7   :  { %3628 = vtanh.f32 %v2736_v5  ;;  %v2601_v41 = vmul.f32 %v4637_v60, %v4603_v22 }
 0xfb4   :  { %v3629_v37 = vpop.eup %3628 }
 0xfb5   :  { %2740 = vst.msk [vmem:[%s4766_s12 + $0x6] sm:$0x3] %vm1314_vm4, %v3629_v37 }
 0xfbc   :  { %v4685_v25 = vld [vmem:[%s4766_s12 + $0x6] ss:$0 sm:$0xff]  ;;  %v4690_v19 = vld [vmem:[%s4766_s12 + $0x7] ss:$0 sm:$0xff] }
 0xfbd   :  { %3514 = vmatprep.mubr.msk.f32.mxu0 %vm44_vm1, %v4685_v25  ;;  %v2843_v52 = vld [vmem:[%s4766_s12] sm:$0xff] }
 0xfbe   :  { %3515 = vmatmul.mubr.msk.f32.vlgmr.msra.gmra.mxu0 %vm44_vm1, %v4690_v19 }
 0xfbf   :  { %3518 = vmatpush3.msk.msra.mxu0 %vm82_vm0, %v3267_v43  ;;  %3519 = vmatprep.mubr.msk.f32.mxu0 %vm44_vm1, %v2843_v52  ;;  %v2600_v43 = vmul.f32 %v4627_v6, %v4593_v20 }
 0xfc2   :  { %3520 = vmatmul.mubr.msk.f32.vlgmr.msra.gmra.mxu0 %vm44_vm1, %v2843_v52 }
0x1013   :  { %v3041_v35 = vpop.permute.xlu0 %3040 }
0x107e   :  { %v3516_v53 = vpop.f32.mrf.mxu0 }
0x107f   :  { %v2840_v44 = vadd.f32 %v3516_v53, %v4300_v59 }
0x1080   :  { %v2834_v32 = vpop.f32.mrf.mxu0 }
0x1081   :  { %v2835_v27 = vadd.f32 %v4300_v59, %v2834_v32  ;;  %v3039_v59 = vpop.permute.xlu1 %3038 }
0x1082   :  { %v3521_v2 = vpop.f32.mrf.mxu0 }
0x1083   :  { %v2929_v54 = vadd.f32 %v3521_v2, %v2840_v44  ;;  %v3645_v44 = vld [vmem:[#allocation2 + $0x8] sm:$0xff] }
0x1084   :  { %v2919_v55 = vpop.f32.mrf.mxu0 }
0x1085   :  { %v3023_v49 = vadd.f32 %v3019_v29, %v2929_v54  ;;  %v2928_v61 = vadd.f32 %v2919_v55, %v2835_v27  ;;  %v3647_v55 = vld [vmem:[#allocation2 + $0x10] sm:$0xff] }
0x1087   :  { %v3278_v62 = vmul.f32 -1.442695, %v3023_v49  ;;  %v3022_v7 = vadd.f32 %v3014_v1, %v2928_v61 }
0x1089   :  { %3630 = vpow2.f32 %v3278_v62  ;;  %v3277_v4 = vmul.f32 -1.442695, %v3022_v7 }
0x108b   :  { %3632 = vpow2.f32 %v3277_v4 }
0x1096   :  { %v3631_v38 = vpop.eup %3630 }
0x1097   :  { %v3031_v58 = vadd.f32 1.0, %v3631_v38 }
0x1098   :  { %v3633_v26 = vpop.eup %3632 }
0x1099   :  { %3634 = vrcp.f32 %v3031_v58  ;;  %v3030_v16 = vadd.f32 1.0, %v3633_v26 }
0x109b   :  { %3636 = vrcp.f32 %v3030_v16 }
0x10a6   :  { %v3635_v3 = vpop.eup %3634 }
0x10a7   :  { %v3045_v18 = vmul.f32 %v3635_v3, %v3041_v35 }
0x10a8   :  { %v3637_v39 = vpop.eup %3636 }
0x10a9   :  { %3050 = vrot.lane.b32.xlu0 %v3045_v18, %s3651_s18  ;;  %v3044_v63 = vmul.f32 %v3637_v39, %v3039_v59  ;;  %v3058_v21 = vsub.f32 1.0, %v3637_v39 }
0x10ab   :  { %3048 = vrot.lane.b32.xlu1 %v3044_v63, %s3651_s18 }
0x111b   :  { %v3051_v13 = vpop.permute.xlu0 %3050 }
0x111c   :  { %v3055_v57 = vadd.f32 %v3051_v13, %v2929_v54 }
0x111d   :  { %v3049_v46 = vpop.permute.xlu1 %3048 }
0x111e   :  { %3638 = vtanh.f32 %v3055_v57  ;;  %v3054_v42 = vadd.f32 %v3049_v46, %v2928_v61 }
0x1120   :  { %3640 = vtanh.f32 %v3054_v42 }
0x112b   :  { %v3639_v14 = vpop.eup %3638 }
0x112c   :  { %3064 = vrot.lane.b32.xlu0 %v3639_v14, %s3654_s20 }
0x112d   :  { %v3641_v47 = vpop.eup %3640 }
0x112e   :  { %3062 = vrot.lane.b32.xlu1 %v3641_v47, %s3654_s20 }
0x1130   :  { %3072 = vrot.lane.b32.xlu0 %v4657_v8, %s3652_s19 }
0x1132   :  { %3070 = vrot.lane.b32.xlu1 %v4652_v9, %s3652_s19 }
0x1134   :  { %3101 = vperm.xlu0 %3535, %v4371_v34  }
0x1136   :  { %3096 = vperm.xlu1 %3534, %v4363_v11   ;;  %v3059_v11 = vsub.f32 1.0, %v3635_v3 }
0x1138   :  { %2035 = vrot.lane.b32.xlu0 %v2028_v15, %s3654_s20 }
0x113a   :  { %2033 = vrot.lane.b32.xlu1 %v2027_v45, %s3654_s20 }
0x113c   :  { %2606 = vrot.lane.b32.xlu0 %v2600_v43, %s3654_s20 }
0x113e   :  { %2037 = vrot.lane.b32.xlu1 %v2029_v0, %s3654_s20 }
0x119e   :  { %v3065_v34 = vpop.permute.xlu0 %3064 }
0x119f   :  { %v3069_v29 = vmul.f32 %v3065_v34, %v3059_v11 }
0x11a0   :  { %v3063_v24 = vpop.permute.xlu1 %3062 }
0x11a1   :  { %v3068_v1 = vmul.f32 %v3063_v24, %v3058_v21 }
0x11a2   :  { %v3073_v10 = vpop.permute.xlu0 %3072 }
0x11a3   :  { %v3077_v33 = vmul.f32 %v3635_v3, %v3073_v10 }
0x11a4   :  { %v3071_v23 = vpop.permute.xlu1 %3070 }
0x11a5   :  { %v3079_v48 = vadd.f32 %v3077_v33, %v3069_v29  ;;  %v3076_v20 = vmul.f32 %v3637_v39, %v3071_v23 }
0x11a7   :  { %v3081_v6 = vmul.f32 %v3079_v48, %v3895_v31  ;;  %v3078_v5 = vadd.f32 %v3076_v20, %v3068_v1 }
0x11a9   :  { %v3080_v50 = vmul.f32 %v3078_v5, %v3895_v31  ;;  %3086 = vrot.lane.b32.xlu0 %v3081_v6, %s3654_s20 }
0x11ab   :  { %3084 = vrot.lane.b32.xlu1 %v3080_v50, %s3654_s20 }
0x11ad   :  { %2610 = vrot.lane.b32.xlu0 %v2602_v36, %s3654_s20 }
0x11af   :  { %v3102_v37 = vpop.permute.xlu0 %3101  ;;  %2608 = vrot.lane.b32.xlu1 %v2601_v41, %s3654_s20 }
0x11b0   :  { %v3105_v52 = vmul.f32 %v3102_v37, %v3081_v6 }
0x11b1   :  { %v3097_v53 = vpop.permute.xlu1 %3096 }
0x11b2   :  { %v3104_v32 = vmul.f32 %v3097_v53, %v3080_v50  ;;  %3110 = vrot.lane.b32.xlu0 %v3105_v52, %s3654_s20 }
0x11b3   :  { %v2036_v31 = vpop.permute.xlu0 %2035 }
0x11b4   :  { %v2043_v2 = vadd.f32 %v3645_v44, %v2036_v31  ;;  %3108 = vrot.lane.b32.xlu1 %v3104_v32, %s3654_s20 }
0x11b5   :  { %v2034_v51 = vpop.permute.xlu1 %2033 }
0x11b6   :  { %2046 = vst.msk [vmem:[#allocation2 + $0x8] sm:$0xff] %vm44_vm1, %v2043_v2  ;;  %v2042_v22 = vadd.f32 %v3646_v56, %v2034_v51 }
0x11b7   :  { %v2607_v60 = vpop.permute.xlu0 %2606 }
0x11b8   :  { %2045 = vst.msk [vmem:[#allocation2] sm:$0xff] %vm44_vm1, %v2042_v22  ;;  %v2615_v27 = vadd.f32 %v2607_v60, %v4554_v40 }
0x11b9   :  { %v2038_v54 = vpop.permute.xlu1 %2037 }
0x11ba   :  { %2618 = vst.msk [vmem:[#allocation2 + $0x18] sm:$0xff] %vm44_vm1, %v2615_v27  ;;  %v2044_v49 = vadd.f32 %v3647_v55, %v2038_v54 }
0x11bc   :  { %2047 = vst.msk [vmem:[#allocation2 + $0x10] sm:$0xff] %vm44_vm1, %v2044_v49 }
0x121b   :  { %v3087_v61 = vpop.permute.xlu0 %3086 }
0x121c   :  { %v3091_v62 = vadd.f32 %v3087_v61, %v4657_v8 }
0x121d   :  { %v3085_v7 = vpop.permute.xlu1 %3084 }
0x121e   :  { %v3121_v4 = vmul.f32 %v4690_v19, %v3091_v62  ;;  %v3090_v38 = vadd.f32 %v3085_v7, %v4652_v9 }
0x121f   :  { %v2611_v58 = vpop.permute.xlu0 %2610 }
0x1220   :  { %v3123_v26 = vsub.f32 %v3121_v4, %v4478_v12  ;;  %v3120_v40 = vmul.f32 %v4685_v25, %v3090_v38  ;;  %v2617_v16 = vadd.f32 %v2611_v58, %v4566_v28 }
0x1221   :  { %v2609_v3 = vpop.permute.xlu1 %2608 }
0x1222   :  { %v3125_v35 = vmul.f32 %v3123_v26, %v3102_v37  ;;  %v3122_v18 = vsub.f32 %v3120_v40, %v4476_v30  ;;  %2620 = vst.msk [vmem:[#allocation2 + $0x28] sm:$0xff] %vm44_vm1, %v2617_v16  ;;  %v2616_v39 = vadd.f32 %v2609_v3, %v4560_v17 }
0x1224   :  { %v3127_v59 = vadd.f32 %v3125_v35, %v4478_v12  ;;  %v3124_v19 = vmul.f32 %v3122_v18, %v3097_v53  ;;  %2619 = vst.msk [vmem:[#allocation2 + $0x20] sm:$0xff] %vm44_vm1, %v2616_v39  ;;  %v3111_v63 = vpop.permute.xlu0 %3110 }
0x1225   :  { %v3115_v13 = vadd.f32 %v3111_v63, %v4657_v8 }
0x1226   :  { %3129 = vst.msk [vmem:[#allocation3 + $0x38] sm:$0xff] %vm44_vm1, %v3127_v59  ;;  %v3126_v28 = vadd.f32 %v3124_v19, %v4476_v30  ;;  %v3109_v25 = vpop.permute.xlu1 %3108 }
0x1227   :  { %3117 = vst.msk [vmem:[#allocation2 + $0x38] sm:$0xff] %vm44_vm1, %v3115_v13  ;;  %v3114_v57 = vadd.f32 %v3109_v25, %v4652_v9 }
0x1228   :  { %3128 = vst.msk [vmem:[#allocation3 + $0x30] sm:$0xff] %vm44_vm1, %v3126_v28 }
0x1229   :  { %3116 = vst.msk [vmem:[#allocation2 + $0x30] sm:$0xff] %vm44_vm1, %v3114_v57 }

</bundles_post_ra>
